<compile_context>
chip_gen: v6e
topology: v6e:2x2x1
jax: 0.10.0
libtpu: 0.0.40
codegen_flags: <defaults>
</compile_context>

<pallas_src>
import jax
import jax.numpy as jnp
from jax import lax
from jax.experimental import pallas as pl
from jax.experimental.pallas import tpu as pltpu


# ----------------------------------------------------------------------------
# Pallas kernel: one encoder stage, lane-dense (Cout, M) layout.
#   t_ref   : (9*Cin, M)  bf16   packed im2col taps, M ordered (di,dj,n,i,j)
#   w_ref   : (Cout, 9*Cin) bf16 packed conv weights
#   bgb_ref : (Cout, 3)   f32    [bias | gamma | beta]
#   conv_ref: (Cout, M)   f32    conv+bias output (hook_c)
#   pool_ref: (Cout, M//4) f32   avg-pooled post-BN/LeakyReLU activation
# ----------------------------------------------------------------------------
def make_stage_kernel(neg_slope=0.2, eps=1e-5):
    def kernel(t_ref, w_ref, bgb_ref, conv_ref, pool_ref):
        # --- conv 3x3 (stride 1, pad 1): ONE MXU matmul, K = 9*Cin ----------
        conv = jnp.dot(w_ref[...], t_ref[...],
                       preferred_element_type=jnp.float32)          # (Cout, M)
        bgb = bgb_ref[...]
        bias = bgb[:, 0:1]
        gamma = bgb[:, 1:2]
        beta = bgb[:, 2:3]
        conv = conv + bias
        conv_ref[...] = conv                                          # hook_c

        # --- BatchNorm2d (training mode, biased batch stats), fused affine --
        mu = jnp.mean(conv, axis=-1, keepdims=True)                   # (Cout,1)
        var = jnp.maximum(
            jnp.mean(conv * conv, axis=-1, keepdims=True) - mu * mu, 0.0)
        scale = gamma * lax.rsqrt(var + eps)                          # EUP
        shift = beta - mu * scale
        y = conv * scale + shift                                      # 1 mul+add

        # --- LeakyReLU(0.2) --------------------------------------------------
        act = jnp.where(y >= 0.0, y, neg_slope * y)

        # --- AvgPool2d(2) on the VPU -----------------------------------------
        # M is ordered (di, dj, n, i, j): the four pooling taps of every 2x2
        # window are four contiguous lane blocks of size Mp = M // 4.
        m = act.shape[-1]
        mp = m // 4
        pool_ref[...] = 0.25 * (act[:, 0:mp] + act[:, mp:2 * mp]
                                + act[:, 2 * mp:3 * mp] + act[:, 3 * mp:4 * mp])

    return kernel


# ----------------------------------------------------------------------------
# Host-side glue: packed im2col tap slab with pool-block ordering.
# ----------------------------------------------------------------------------
def build_tap_slab(x_nhwc):
    """Return (9*C, M) tap slab; M ordered as (di, dj, n, i, j) with the full-
    resolution output pixel being (n, 2*i+di, 2*j+dj)."""
    N, H, W, C = x_nhwc.shape
    Hh, Wh = H // 2, W // 2
    xp = jnp.pad(x_nhwc, ((0, 0), (1, 1), (1, 1), (0, 0)))
    taps = jnp.stack([xp[:, dy:dy + H, dx:dx + W, :]
                      for dy in range(3) for dx in range(3)], axis=0)
    # (9, N, H, W, C) -> (9, N, Hh, 2, Wh, 2, C): axes (tap, n, i, di, j, dj, c)
    taps = taps.reshape(9, N, Hh, 2, Wh, 2, C)
    # -> (tap, c, di, dj, n, i, j)
    taps = jnp.transpose(taps, (0, 6, 3, 5, 1, 2, 4))
    return taps.reshape(9 * C, 4 * N * Hh * Wh)


def encoder_stage(x_nhwc, w_oihw, b, gamma, beta):
    N, H, W, Cin = x_nhwc.shape
    Cout = w_oihw.shape[0]
    Hh, Wh = H // 2, W // 2
    M = N * H * W
    Mp = N * Hh * Wh

    # bf16 MXU operands (f32 accumulation inside the kernel).
    taps = build_tap_slab(x_nhwc).astype(jnp.bfloat16)                 # (9Cin, M)
    w2 = jnp.transpose(w_oihw, (0, 2, 3, 1)).reshape(Cout, 9 * Cin)
    w2 = w2.astype(jnp.bfloat16)                                       # (Cout, 9Cin)
    bgb = jnp.stack([b, gamma, beta], axis=-1).astype(jnp.float32)     # (Cout, 3)

    vmem = pl.BlockSpec(memory_space=pltpu.MemorySpace.VMEM)
    conv_cm, pool_cm = pl.pallas_call(
        make_stage_kernel(),
        out_shape=(jax.ShapeDtypeStruct((Cout, M), jnp.float32),
                   jax.ShapeDtypeStruct((Cout, Mp), jnp.float32)),
        in_specs=[vmem, vmem, vmem],
        out_specs=(vmem, vmem),
    )(taps, w2, bgb)

    # (Cout, di, dj, n, i, j) -> NCHW hook output (pre-BN conv, matches torch).
    conv_nchw = (conv_cm.reshape(Cout, 2, 2, N, Hh, Wh)
                 .transpose(3, 0, 4, 1, 5, 2)
                 .reshape(N, Cout, H, W))
    # (Cout, n, i, j) -> NHWC pooled activation feeding the next stage.
    pool_nhwc = pool_cm.reshape(Cout, N, Hh, Wh).transpose(1, 2, 3, 0)
    return conv_nchw, pool_nhwc


# ----------------------------------------------------------------------------
# Parameter setup (deterministic, synthetic) -- shapes from EncoderR.__init__
# ----------------------------------------------------------------------------
def spectral_normalize(w_oihw, key, n_iter=5, eps=1e-12):
    """Deterministic power-iteration spectral norm of the (Cout, Cin*3*3) matrix."""
    cout = w_oihw.shape[0]
    wmat = w_oihw.reshape(cout, -1)
    u = jax.random.normal(key, (cout,), jnp.float32)
    u = u / (jnp.linalg.norm(u) + eps)
    v = None
    for _ in range(n_iter):
        v = wmat.T @ u
        v = v / (jnp.linalg.norm(v) + eps)
        u = wmat @ v
        u = u / (jnp.linalg.norm(u) + eps)
    sigma = u @ (wmat @ v)
    return w_oihw / sigma


def init_params(key):
    # (Cin, Cout) per stage: base_dim=16, ch_style=3
    dims = [(3, 16), (16, 32), (32, 64), (64, 64)]
    params = []
    for cin, cout in dims:
        key, k1, k2, k3, k4, k5 = jax.random.split(key, 6)
        w = 0.1 * jax.random.normal(k1, (cout, cin, 3, 3), jnp.float32)
        w = spectral_normalize(w, k2)                    # spectral_norm(Conv2d)
        b = 0.05 * jax.random.normal(k3, (cout,), jnp.float32)
        gamma = 1.0 + 0.1 * jax.random.normal(k4, (cout,), jnp.float32)
        beta = 0.05 * jax.random.normal(k5, (cout,), jnp.float32)
        params.append(dict(w=w, b=b, gamma=gamma, beta=beta))
    return params


# ----------------------------------------------------------------------------
# EncoderR.forward (single jit: 4 pallas_calls + cheap XLA layout glue)
# ----------------------------------------------------------------------------
@jax.jit
def encoder_r_forward(image_nchw, params):
    x = jnp.transpose(image_nchw, (0, 2, 3, 1))          # NCHW -> NHWC
    hook_convs = []                                      # conv outputs [0,4,8,12]
    pooled = []                                          # pool outputs [3,7,11,15]
    for p in params:
        conv_nchw, pool_nhwc = encoder_stage(x, p["w"], p["b"],
                                             p["gamma"], p["beta"])
        hook_convs.append(conv_nchw)
        pooled.append(pool_nhwc)
        x = pool_nhwc

    last = pooled[-1]                                    # last_feature (NHWC)
    _, Hf, Wf, _ = last.shape
    prev = []
    for f in pooled[:-1]:                                # hook_features (idx 3,7,11)
        r = f.shape[1] // Hf
        # F.interpolate(mode='nearest', size=(Hf, Wf)) with integer ratio:
        prev.append(f[:, ::r, ::r, :])
    out = jnp.concatenate(prev + [last], axis=-1)        # channel concat
    out_nchw = jnp.transpose(out, (0, 3, 1, 2))          # -> NCHW
    return out_nchw, hook_convs


# ----------------------------------------------------------------------------
if __name__ == "__main__":
    key = jax.random.PRNGKey(0)
    kx, kp = jax.random.split(key)
    # ch_style = 3 is fixed by the module; 32x32 spatial -> last feature 2x2.
    image = jax.random.normal(kx, (2, 3, 32, 32), jnp.float32)
    params = init_params(kp)

    output, hook_convs = encoder_r_forward(image, params)
    jax.block_until_ready(output)
    for h in hook_convs:
        jax.block_until_ready(h)

    # Sanity checks against the PyTorch module's shape semantics.
    assert output.shape == (2, 16 + 32 + 64 + 64, 2, 2), output.shape
    expected_conv_shapes = [(2, 16, 32, 32), (2, 32, 16, 16),
                            (2, 64, 8, 8), (2, 64, 4, 4)]
    assert [tuple(h.shape) for h in hook_convs] == expected_conv_shapes
    assert bool(jnp.all(jnp.isfinite(output)))

    print("KERNEL_OK")
</pallas_src>

<mosaic_0001>
module attributes {stable_mosaic.version = 11 : i64} {
  func.func @kernel(%arg0: memref<27x2048xbf16, #tpu.memory_space<vmem>>, %arg1: memref<16x27xbf16, #tpu.memory_space<vmem>>, %arg2: memref<16x3xf32, #tpu.memory_space<vmem>>, %arg3: memref<16x2048xf32, #tpu.memory_space<vmem>>, %arg4: memref<16x512xf32, #tpu.memory_space<vmem>>) attributes {dimension_semantics = [], scalar_prefetch = 0 : i64, scratch_operands = 0 : i64, tpu.core_type = #tpu.core_type<tc>} {
    %c0 = arith.constant 0 : index
    %c0_0 = arith.constant 0 : index
    %0 = vector.load %arg1[%c0, %c0_0] : memref<16x27xbf16, #tpu.memory_space<vmem>>, vector<16x27xbf16>
    %c0_1 = arith.constant 0 : index
    %c0_2 = arith.constant 0 : index
    %1 = vector.load %arg0[%c0_1, %c0_2] : memref<27x2048xbf16, #tpu.memory_space<vmem>>, vector<27x2048xbf16>
    %cst = arith.constant dense<0.000000e+00> : vector<16x2048xf32>
    %2 = tpu.matmul %0, %1, %cst {dimension_numbers = #tpu.dot_dimension_numbers<[1], [0], [0], [1], [0, 0, 1, 1], [], []>} : vector<16x27xbf16>, vector<27x2048xbf16>, vector<16x2048xf32> -> vector<16x2048xf32>
    %c0_3 = arith.constant 0 : index
    %c0_4 = arith.constant 0 : index
    %3 = vector.load %arg2[%c0_3, %c0_4] : memref<16x3xf32, #tpu.memory_space<vmem>>, vector<16x3xf32>
    %4 = vector.extract_strided_slice %3 {offsets = [0, 0], sizes = [16, 1], strides = [1, 1]} : vector<16x3xf32> to vector<16x1xf32>
    %5 = vector.extract_strided_slice %3 {offsets = [0, 1], sizes = [16, 1], strides = [1, 1]} : vector<16x3xf32> to vector<16x1xf32>
    %6 = vector.extract_strided_slice %3 {offsets = [0, 2], sizes = [16, 1], strides = [1, 1]} : vector<16x3xf32> to vector<16x1xf32>
    %7 = vector.broadcast %4 : vector<16x1xf32> to vector<16x2048xf32>
    %8 = arith.addf %2, %7 : vector<16x2048xf32>
    %c0_5 = arith.constant 0 : index
    %c0_6 = arith.constant 0 : index
    %9 = vector.load %arg3[%c0_5, %c0_6] : memref<16x2048xf32, #tpu.memory_space<vmem>>, vector<16x2048xf32>
    tpu.vector_store %arg3[%c0_5, %c0_6], %8 {strides = array<i32>} : memref<16x2048xf32, #tpu.memory_space<vmem>>, vector<16x2048xf32>,
    %cst_7 = arith.constant dense<0.000000e+00> : vector<16xf32>
    %10 = vector.multi_reduction <add>, %8, %cst_7 [1] : vector<16x2048xf32> to vector<16xf32>
    %11 = vector.shape_cast %10 : vector<16xf32> to vector<16x1xf32>
    %cst_8 = arith.constant 2.048000e+03 : f32
    %12 = vector.broadcast %cst_8 : f32 to vector<16x1xf32>
    %13 = arith.divf %11, %12 : vector<16x1xf32>
    %14 = arith.mulf %8, %8 : vector<16x2048xf32>
    %cst_9 = arith.constant dense<0.000000e+00> : vector<16xf32>
    %15 = vector.multi_reduction <add>, %14, %cst_9 [1] : vector<16x2048xf32> to vector<16xf32>
    %16 = vector.shape_cast %15 : vector<16xf32> to vector<16x1xf32>
    %cst_10 = arith.constant 2.048000e+03 : f32
    %17 = vector.broadcast %cst_10 : f32 to vector<16x1xf32>
    %18 = arith.divf %16, %17 : vector<16x1xf32>
    %19 = arith.mulf %13, %13 : vector<16x1xf32>
    %20 = arith.subf %18, %19 : vector<16x1xf32>
    %cst_11 = arith.constant 0.000000e+00 : f32
    %21 = vector.broadcast %cst_11 : f32 to vector<16x1xf32>
    %22 = arith.maximumf %20, %21 : vector<16x1xf32>
    %cst_12 = arith.constant 9.99999974E-6 : f32
    %23 = vector.broadcast %cst_12 : f32 to vector<16x1xf32>
    %24 = arith.addf %22, %23 : vector<16x1xf32>
    %25 = math.rsqrt %24 : vector<16x1xf32>
    %26 = arith.mulf %5, %25 : vector<16x1xf32>
    %27 = arith.mulf %13, %26 : vector<16x1xf32>
    %28 = arith.subf %6, %27 : vector<16x1xf32>
    %29 = vector.broadcast %26 : vector<16x1xf32> to vector<16x2048xf32>
    %30 = arith.mulf %8, %29 : vector<16x2048xf32>
    %31 = vector.broadcast %28 : vector<16x1xf32> to vector<16x2048xf32>
    %32 = arith.addf %30, %31 : vector<16x2048xf32>
    %cst_13 = arith.constant 0.000000e+00 : f32
    %33 = vector.broadcast %cst_13 : f32 to vector<16x2048xf32>
    %34 = arith.cmpf oge, %32, %33 : vector<16x2048xf32>
    %cst_14 = arith.constant 2.000000e-01 : f32
    %35 = vector.broadcast %cst_14 : f32 to vector<16x2048xf32>
    %36 = arith.mulf %35, %32 : vector<16x2048xf32>
    %37 = arith.select %34, %32, %36 : vector<16x2048xi1>, vector<16x2048xf32>
    %38 = vector.extract_strided_slice %37 {offsets = [0, 0], sizes = [16, 512], strides = [1, 1]} : vector<16x2048xf32> to vector<16x512xf32>
    %39 = vector.extract_strided_slice %37 {offsets = [0, 512], sizes = [16, 512], strides = [1, 1]} : vector<16x2048xf32> to vector<16x512xf32>
    %40 = arith.addf %38, %39 : vector<16x512xf32>
    %41 = vector.extract_strided_slice %37 {offsets = [0, 1024], sizes = [16, 512], strides = [1, 1]} : vector<16x2048xf32> to vector<16x512xf32>
    %42 = arith.addf %40, %41 : vector<16x512xf32>
    %43 = vector.extract_strided_slice %37 {offsets = [0, 1536], sizes = [16, 512], strides = [1, 1]} : vector<16x2048xf32> to vector<16x512xf32>
    %44 = arith.addf %42, %43 : vector<16x512xf32>
    %cst_15 = arith.constant 2.500000e-01 : f32
    %45 = vector.broadcast %cst_15 : f32 to vector<16x512xf32>
    %46 = arith.mulf %45, %44 : vector<16x512xf32>
    %c0_16 = arith.constant 0 : index
    %c0_17 = arith.constant 0 : index
    %47 = vector.load %arg4[%c0_16, %c0_17] : memref<16x512xf32, #tpu.memory_space<vmem>>, vector<16x512xf32>
    tpu.vector_store %arg4[%c0_16, %c0_17], %46 {strides = array<i32>} : memref<16x512xf32, #tpu.memory_space<vmem>>, vector<16x512xf32>,
    return
  }
}

module attributes {stable_mosaic.version = 11 : i64} {
  func.func @kernel(%arg0: memref<144x512xbf16, #tpu.memory_space<vmem>>, %arg1: memref<32x144xbf16, #tpu.memory_space<vmem>>, %arg2: memref<32x3xf32, #tpu.memory_space<vmem>>, %arg3: memref<32x512xf32, #tpu.memory_space<vmem>>, %arg4: memref<32x128xf32, #tpu.memory_space<vmem>>) attributes {dimension_semantics = [], scalar_prefetch = 0 : i64, scratch_operands = 0 : i64, tpu.core_type = #tpu.core_type<tc>} {
    %c0 = arith.constant 0 : index
    %c0_0 = arith.constant 0 : index
    %0 = vector.load %arg1[%c0, %c0_0] : memref<32x144xbf16, #tpu.memory_space<vmem>>, vector<32x144xbf16>
    %c0_1 = arith.constant 0 : index
    %c0_2 = arith.constant 0 : index
    %1 = vector.load %arg0[%c0_1, %c0_2] : memref<144x512xbf16, #tpu.memory_space<vmem>>, vector<144x512xbf16>
    %cst = arith.constant dense<0.000000e+00> : vector<32x512xf32>
    %2 = tpu.matmul %0, %1, %cst {dimension_numbers = #tpu.dot_dimension_numbers<[1], [0], [0], [1], [0, 0, 1, 1], [], []>} : vector<32x144xbf16>, vector<144x512xbf16>, vector<32x512xf32> -> vector<32x512xf32>
    %c0_3 = arith.constant 0 : index
    %c0_4 = arith.constant 0 : index
    %3 = vector.load %arg2[%c0_3, %c0_4] : memref<32x3xf32, #tpu.memory_space<vmem>>, vector<32x3xf32>
    %4 = vector.extract_strided_slice %3 {offsets = [0, 0], sizes = [32, 1], strides = [1, 1]} : vector<32x3xf32> to vector<32x1xf32>
    %5 = vector.extract_strided_slice %3 {offsets = [0, 1], sizes = [32, 1], strides = [1, 1]} : vector<32x3xf32> to vector<32x1xf32>
    %6 = vector.extract_strided_slice %3 {offsets = [0, 2], sizes = [32, 1], strides = [1, 1]} : vector<32x3xf32> to vector<32x1xf32>
    %7 = vector.broadcast %4 : vector<32x1xf32> to vector<32x512xf32>
    %8 = arith.addf %2, %7 : vector<32x512xf32>
    %c0_5 = arith.constant 0 : index
    %c0_6 = arith.constant 0 : index
    %9 = vector.load %arg3[%c0_5, %c0_6] : memref<32x512xf32, #tpu.memory_space<vmem>>, vector<32x512xf32>
    tpu.vector_store %arg3[%c0_5, %c0_6], %8 {strides = array<i32>} : memref<32x512xf32, #tpu.memory_space<vmem>>, vector<32x512xf32>,
    %cst_7 = arith.constant dense<0.000000e+00> : vector<32xf32>
    %10 = vector.multi_reduction <add>, %8, %cst_7 [1] : vector<32x512xf32> to vector<32xf32>
    %11 = vector.shape_cast %10 : vector<32xf32> to vector<32x1xf32>
    %cst_8 = arith.constant 5.120000e+02 : f32
    %12 = vector.broadcast %cst_8 : f32 to vector<32x1xf32>
    %13 = arith.divf %11, %12 : vector<32x1xf32>
    %14 = arith.mulf %8, %8 : vector<32x512xf32>
    %cst_9 = arith.constant dense<0.000000e+00> : vector<32xf32>
    %15 = vector.multi_reduction <add>, %14, %cst_9 [1] : vector<32x512xf32> to vector<32xf32>
    %16 = vector.shape_cast %15 : vector<32xf32> to vector<32x1xf32>
    %cst_10 = arith.constant 5.120000e+02 : f32
    %17 = vector.broadcast %cst_10 : f32 to vector<32x1xf32>
    %18 = arith.divf %16, %17 : vector<32x1xf32>
    %19 = arith.mulf %13, %13 : vector<32x1xf32>
    %20 = arith.subf %18, %19 : vector<32x1xf32>
    %cst_11 = arith.constant 0.000000e+00 : f32
    %21 = vector.broadcast %cst_11 : f32 to vector<32x1xf32>
    %22 = arith.maximumf %20, %21 : vector<32x1xf32>
    %cst_12 = arith.constant 9.99999974E-6 : f32
    %23 = vector.broadcast %cst_12 : f32 to vector<32x1xf32>
    %24 = arith.addf %22, %23 : vector<32x1xf32>
    %25 = math.rsqrt %24 : vector<32x1xf32>
    %26 = arith.mulf %5, %25 : vector<32x1xf32>
    %27 = arith.mulf %13, %26 : vector<32x1xf32>
    %28 = arith.subf %6, %27 : vector<32x1xf32>
    %29 = vector.broadcast %26 : vector<32x1xf32> to vector<32x512xf32>
    %30 = arith.mulf %8, %29 : vector<32x512xf32>
    %31 = vector.broadcast %28 : vector<32x1xf32> to vector<32x512xf32>
    %32 = arith.addf %30, %31 : vector<32x512xf32>
    %cst_13 = arith.constant 0.000000e+00 : f32
    %33 = vector.broadcast %cst_13 : f32 to vector<32x512xf32>
    %34 = arith.cmpf oge, %32, %33 : vector<32x512xf32>
    %cst_14 = arith.constant 2.000000e-01 : f32
    %35 = vector.broadcast %cst_14 : f32 to vector<32x512xf32>
    %36 = arith.mulf %35, %32 : vector<32x512xf32>
    %37 = arith.select %34, %32, %36 : vector<32x512xi1>, vector<32x512xf32>
    %38 = vector.extract_strided_slice %37 {offsets = [0, 0], sizes = [32, 128], strides = [1, 1]} : vector<32x512xf32> to vector<32x128xf32>
    %39 = vector.extract_strided_slice %37 {offsets = [0, 128], sizes = [32, 128], strides = [1, 1]} : vector<32x512xf32> to vector<32x128xf32>
    %40 = arith.addf %38, %39 : vector<32x128xf32>
    %41 = vector.extract_strided_slice %37 {offsets = [0, 256], sizes = [32, 128], strides = [1, 1]} : vector<32x512xf32> to vector<32x128xf32>
    %42 = arith.addf %40, %41 : vector<32x128xf32>
    %43 = vector.extract_strided_slice %37 {offsets = [0, 384], sizes = [32, 128], strides = [1, 1]} : vector<32x512xf32> to vector<32x128xf32>
    %44 = arith.addf %42, %43 : vector<32x128xf32>
    %cst_15 = arith.constant 2.500000e-01 : f32
    %45 = vector.broadcast %cst_15 : f32 to vector<32x128xf32>
    %46 = arith.mulf %45, %44 : vector<32x128xf32>
    %c0_16 = arith.constant 0 : index
    %c0_17 = arith.constant 0 : index
    %47 = vector.load %arg4[%c0_16, %c0_17] : memref<32x128xf32, #tpu.memory_space<vmem>>, vector<32x128xf32>
    tpu.vector_store %arg4[%c0_16, %c0_17], %46 {strides = array<i32>} : memref<32x128xf32, #tpu.memory_space<vmem>>, vector<32x128xf32>,
    return
  }
}

module attributes {stable_mosaic.version = 11 : i64} {
  func.func @kernel(%arg0: memref<288x128xbf16, #tpu.memory_space<vmem>>, %arg1: memref<64x288xbf16, #tpu.memory_space<vmem>>, %arg2: memref<64x3xf32, #tpu.memory_space<vmem>>, %arg3: memref<64x128xf32, #tpu.memory_space<vmem>>, %arg4: memref<64x32xf32, #tpu.memory_space<vmem>>) attributes {dimension_semantics = [], scalar_prefetch = 0 : i64, scratch_operands = 0 : i64, tpu.core_type = #tpu.core_type<tc>} {
    %c0 = arith.constant 0 : index
    %c0_0 = arith.constant 0 : index
    %0 = vector.load %arg1[%c0, %c0_0] : memref<64x288xbf16, #tpu.memory_space<vmem>>, vector<64x288xbf16>
    %c0_1 = arith.constant 0 : index
    %c0_2 = arith.constant 0 : index
    %1 = vector.load %arg0[%c0_1, %c0_2] : memref<288x128xbf16, #tpu.memory_space<vmem>>, vector<288x128xbf16>
    %cst = arith.constant dense<0.000000e+00> : vector<64x128xf32>
    %2 = tpu.matmul %0, %1, %cst {dimension_numbers = #tpu.dot_dimension_numbers<[1], [0], [0], [1], [0, 0, 1, 1], [], []>} : vector<64x288xbf16>, vector<288x128xbf16>, vector<64x128xf32> -> vector<64x128xf32>
    %c0_3 = arith.constant 0 : index
    %c0_4 = arith.constant 0 : index
    %3 = vector.load %arg2[%c0_3, %c0_4] : memref<64x3xf32, #tpu.memory_space<vmem>>, vector<64x3xf32>
    %4 = vector.extract_strided_slice %3 {offsets = [0, 0], sizes = [64, 1], strides = [1, 1]} : vector<64x3xf32> to vector<64x1xf32>
    %5 = vector.extract_strided_slice %3 {offsets = [0, 1], sizes = [64, 1], strides = [1, 1]} : vector<64x3xf32> to vector<64x1xf32>
    %6 = vector.extract_strided_slice %3 {offsets = [0, 2], sizes = [64, 1], strides = [1, 1]} : vector<64x3xf32> to vector<64x1xf32>
    %7 = vector.broadcast %4 : vector<64x1xf32> to vector<64x128xf32>
    %8 = arith.addf %2, %7 : vector<64x128xf32>
    %c0_5 = arith.constant 0 : index
    %c0_6 = arith.constant 0 : index
    %9 = vector.load %arg3[%c0_5, %c0_6] : memref<64x128xf32, #tpu.memory_space<vmem>>, vector<64x128xf32>
    tpu.vector_store %arg3[%c0_5, %c0_6], %8 {strides = array<i32>} : memref<64x128xf32, #tpu.memory_space<vmem>>, vector<64x128xf32>,
    %cst_7 = arith.constant dense<0.000000e+00> : vector<64xf32>
    %10 = vector.multi_reduction <add>, %8, %cst_7 [1] : vector<64x128xf32> to vector<64xf32>
    %11 = vector.shape_cast %10 : vector<64xf32> to vector<64x1xf32>
    %cst_8 = arith.constant 1.280000e+02 : f32
    %12 = vector.broadcast %cst_8 : f32 to vector<64x1xf32>
    %13 = arith.divf %11, %12 : vector<64x1xf32>
    %14 = arith.mulf %8, %8 : vector<64x128xf32>
    %cst_9 = arith.constant dense<0.000000e+00> : vector<64xf32>
    %15 = vector.multi_reduction <add>, %14, %cst_9 [1] : vector<64x128xf32> to vector<64xf32>
    %16 = vector.shape_cast %15 : vector<64xf32> to vector<64x1xf32>
    %cst_10 = arith.constant 1.280000e+02 : f32
    %17 = vector.broadcast %cst_10 : f32 to vector<64x1xf32>
    %18 = arith.divf %16, %17 : vector<64x1xf32>
    %19 = arith.mulf %13, %13 : vector<64x1xf32>
    %20 = arith.subf %18, %19 : vector<64x1xf32>
    %cst_11 = arith.constant 0.000000e+00 : f32
    %21 = vector.broadcast %cst_11 : f32 to vector<64x1xf32>
    %22 = arith.maximumf %20, %21 : vector<64x1xf32>
    %cst_12 = arith.constant 9.99999974E-6 : f32
    %23 = vector.broadcast %cst_12 : f32 to vector<64x1xf32>
    %24 = arith.addf %22, %23 : vector<64x1xf32>
    %25 = math.rsqrt %24 : vector<64x1xf32>
    %26 = arith.mulf %5, %25 : vector<64x1xf32>
    %27 = arith.mulf %13, %26 : vector<64x1xf32>
    %28 = arith.subf %6, %27 : vector<64x1xf32>
    %29 = vector.broadcast %26 : vector<64x1xf32> to vector<64x128xf32>
    %30 = arith.mulf %8, %29 : vector<64x128xf32>
    %31 = vector.broadcast %28 : vector<64x1xf32> to vector<64x128xf32>
    %32 = arith.addf %30, %31 : vector<64x128xf32>
    %cst_13 = arith.constant 0.000000e+00 : f32
    %33 = vector.broadcast %cst_13 : f32 to vector<64x128xf32>
    %34 = arith.cmpf oge, %32, %33 : vector<64x128xf32>
    %cst_14 = arith.constant 2.000000e-01 : f32
    %35 = vector.broadcast %cst_14 : f32 to vector<64x128xf32>
    %36 = arith.mulf %35, %32 : vector<64x128xf32>
    %37 = arith.select %34, %32, %36 : vector<64x128xi1>, vector<64x128xf32>
    %38 = vector.extract_strided_slice %37 {offsets = [0, 0], sizes = [64, 32], strides = [1, 1]} : vector<64x128xf32> to vector<64x32xf32>
    %39 = vector.extract_strided_slice %37 {offsets = [0, 32], sizes = [64, 32], strides = [1, 1]} : vector<64x128xf32> to vector<64x32xf32>
    %40 = arith.addf %38, %39 : vector<64x32xf32>
    %41 = vector.extract_strided_slice %37 {offsets = [0, 64], sizes = [64, 32], strides = [1, 1]} : vector<64x128xf32> to vector<64x32xf32>
    %42 = arith.addf %40, %41 : vector<64x32xf32>
    %43 = vector.extract_strided_slice %37 {offsets = [0, 96], sizes = [64, 32], strides = [1, 1]} : vector<64x128xf32> to vector<64x32xf32>
    %44 = arith.addf %42, %43 : vector<64x32xf32>
    %cst_15 = arith.constant 2.500000e-01 : f32
    %45 = vector.broadcast %cst_15 : f32 to vector<64x32xf32>
    %46 = arith.mulf %45, %44 : vector<64x32xf32>
    %c0_16 = arith.constant 0 : index
    %c0_17 = arith.constant 0 : index
    %47 = vector.load %arg4[%c0_16, %c0_17] : memref<64x32xf32, #tpu.memory_space<vmem>>, vector<64x32xf32>
    tpu.vector_store %arg4[%c0_16, %c0_17], %46 {strides = array<i32>} : memref<64x32xf32, #tpu.memory_space<vmem>>, vector<64x32xf32>,
    return
  }
}

module attributes {stable_mosaic.version = 11 : i64} {
  func.func @kernel(%arg0: memref<576x32xbf16, #tpu.memory_space<vmem>>, %arg1: memref<64x576xbf16, #tpu.memory_space<vmem>>, %arg2: memref<64x3xf32, #tpu.memory_space<vmem>>, %arg3: memref<64x32xf32, #tpu.memory_space<vmem>>, %arg4: memref<64x8xf32, #tpu.memory_space<vmem>>) attributes {dimension_semantics = [], scalar_prefetch = 0 : i64, scratch_operands = 0 : i64, tpu.core_type = #tpu.core_type<tc>} {
    %c0 = arith.constant 0 : index
    %c0_0 = arith.constant 0 : index
    %0 = vector.load %arg1[%c0, %c0_0] : memref<64x576xbf16, #tpu.memory_space<vmem>>, vector<64x576xbf16>
    %c0_1 = arith.constant 0 : index
    %c0_2 = arith.constant 0 : index
    %1 = vector.load %arg0[%c0_1, %c0_2] : memref<576x32xbf16, #tpu.memory_space<vmem>>, vector<576x32xbf16>
    %cst = arith.constant dense<0.000000e+00> : vector<64x32xf32>
    %2 = tpu.matmul %0, %1, %cst {dimension_numbers = #tpu.dot_dimension_numbers<[1], [0], [0], [1], [0, 0, 1, 1], [], []>} : vector<64x576xbf16>, vector<576x32xbf16>, vector<64x32xf32> -> vector<64x32xf32>
    %c0_3 = arith.constant 0 : index
    %c0_4 = arith.constant 0 : index
    %3 = vector.load %arg2[%c0_3, %c0_4] : memref<64x3xf32, #tpu.memory_space<vmem>>, vector<64x3xf32>
    %4 = vector.extract_strided_slice %3 {offsets = [0, 0], sizes = [64, 1], strides = [1, 1]} : vector<64x3xf32> to vector<64x1xf32>
    %5 = vector.extract_strided_slice %3 {offsets = [0, 1], sizes = [64, 1], strides = [1, 1]} : vector<64x3xf32> to vector<64x1xf32>
    %6 = vector.extract_strided_slice %3 {offsets = [0, 2], sizes = [64, 1], strides = [1, 1]} : vector<64x3xf32> to vector<64x1xf32>
    %7 = vector.broadcast %4 : vector<64x1xf32> to vector<64x32xf32>
    %8 = arith.addf %2, %7 : vector<64x32xf32>
    %c0_5 = arith.constant 0 : index
    %c0_6 = arith.constant 0 : index
    %9 = vector.load %arg3[%c0_5, %c0_6] : memref<64x32xf32, #tpu.memory_space<vmem>>, vector<64x32xf32>
    tpu.vector_store %arg3[%c0_5, %c0_6], %8 {strides = array<i32>} : memref<64x32xf32, #tpu.memory_space<vmem>>, vector<64x32xf32>,
    %cst_7 = arith.constant dense<0.000000e+00> : vector<64xf32>
    %10 = vector.multi_reduction <add>, %8, %cst_7 [1] : vector<64x32xf32> to vector<64xf32>
    %11 = vector.shape_cast %10 : vector<64xf32> to vector<64x1xf32>
    %cst_8 = arith.constant 3.200000e+01 : f32
    %12 = vector.broadcast %cst_8 : f32 to vector<64x1xf32>
    %13 = arith.divf %11, %12 : vector<64x1xf32>
    %14 = arith.mulf %8, %8 : vector<64x32xf32>
    %cst_9 = arith.constant dense<0.000000e+00> : vector<64xf32>
    %15 = vector.multi_reduction <add>, %14, %cst_9 [1] : vector<64x32xf32> to vector<64xf32>
    %16 = vector.shape_cast %15 : vector<64xf32> to vector<64x1xf32>
    %cst_10 = arith.constant 3.200000e+01 : f32
    %17 = vector.broadcast %cst_10 : f32 to vector<64x1xf32>
    %18 = arith.divf %16, %17 : vector<64x1xf32>
    %19 = arith.mulf %13, %13 : vector<64x1xf32>
    %20 = arith.subf %18, %19 : vector<64x1xf32>
    %cst_11 = arith.constant 0.000000e+00 : f32
    %21 = vector.broadcast %cst_11 : f32 to vector<64x1xf32>
    %22 = arith.maximumf %20, %21 : vector<64x1xf32>
    %cst_12 = arith.constant 9.99999974E-6 : f32
    %23 = vector.broadcast %cst_12 : f32 to vector<64x1xf32>
    %24 = arith.addf %22, %23 : vector<64x1xf32>
    %25 = math.rsqrt %24 : vector<64x1xf32>
    %26 = arith.mulf %5, %25 : vector<64x1xf32>
    %27 = arith.mulf %13, %26 : vector<64x1xf32>
    %28 = arith.subf %6, %27 : vector<64x1xf32>
    %29 = vector.broadcast %26 : vector<64x1xf32> to vector<64x32xf32>
    %30 = arith.mulf %8, %29 : vector<64x32xf32>
    %31 = vector.broadcast %28 : vector<64x1xf32> to vector<64x32xf32>
    %32 = arith.addf %30, %31 : vector<64x32xf32>
    %cst_13 = arith.constant 0.000000e+00 : f32
    %33 = vector.broadcast %cst_13 : f32 to vector<64x32xf32>
    %34 = arith.cmpf oge, %32, %33 : vector<64x32xf32>
    %cst_14 = arith.constant 2.000000e-01 : f32
    %35 = vector.broadcast %cst_14 : f32 to vector<64x32xf32>
    %36 = arith.mulf %35, %32 : vector<64x32xf32>
    %37 = arith.select %34, %32, %36 : vector<64x32xi1>, vector<64x32xf32>
    %38 = vector.extract_strided_slice %37 {offsets = [0, 0], sizes = [64, 8], strides = [1, 1]} : vector<64x32xf32> to vector<64x8xf32>
    %39 = vector.extract_strided_slice %37 {offsets = [0, 8], sizes = [64, 8], strides = [1, 1]} : vector<64x32xf32> to vector<64x8xf32>
    %40 = arith.addf %38, %39 : vector<64x8xf32>
    %41 = vector.extract_strided_slice %37 {offsets = [0, 16], sizes = [64, 8], strides = [1, 1]} : vector<64x32xf32> to vector<64x8xf32>
    %42 = arith.addf %40, %41 : vector<64x8xf32>
    %43 = vector.extract_strided_slice %37 {offsets = [0, 24], sizes = [64, 8], strides = [1, 1]} : vector<64x32xf32> to vector<64x8xf32>
    %44 = arith.addf %42, %43 : vector<64x8xf32>
    %cst_15 = arith.constant 2.500000e-01 : f32
    %45 = vector.broadcast %cst_15 : f32 to vector<64x8xf32>
    %46 = arith.mulf %45, %44 : vector<64x8xf32>
    %c0_16 = arith.constant 0 : index
    %c0_17 = arith.constant 0 : index
    %47 = vector.load %arg4[%c0_16, %c0_17] : memref<64x8xf32, #tpu.memory_space<vmem>>, vector<64x8xf32>
    tpu.vector_store %arg4[%c0_16, %c0_17], %46 {strides = array<i32>} : memref<64x8xf32, #tpu.memory_space<vmem>>, vector<64x8xf32>,
    return
  }
}

</mosaic_0001>

<bundles_post_ra>
// kernel: encoder_r_forward.4
= control target key start
LH: loop header
LB: loop body
LE: loop exit
PB: predicated region body
PF: predicated region fallthrough
CT: control target
= control target key end

     0   :  { %vm216_vm0 = vcmask 1044480   ;;  %vm217_vm1 = vcmask 1045504   ;;  %v1056_v2 = vmov 65535   ;;  %v1057_v5 = vmov 0   ;;  %s1748_s0 = inlined_call_operand.vmem [shape: bf16[27,2048], index: 0, kind: input, shape index: {}]   ;;  %s1749_s1 = inlined_call_operand.vmem [shape: bf16[16,27], index: 1, kind: input, shape index: {}]   ;;  %s1750_s2 = inlined_call_operand.vmem [shape: f32[16,3], index: 2, kind: input, shape index: {}]   ;;  %s1751_s3 = inlined_call_operand.vmem [shape: f32[16,2048], index: 3, kind: output, shape index: {0}]   ;;  %s1752_s4 = inlined_call_operand.vmem [shape: f32[16,512], index: 4, kind: output, shape index: {1}]  }
   0x1   :  { %v35_v0 = vld [vmem:[%s1748_s0 + $0x80] sm:$0xff]  ;;  %v218_v3 = vsel %vm216_vm0, 4294967295, %v1056_v2  ;;  %v36_v4 = vld [vmem:[%s1748_s0 + $0x88] sm:$0xff]  ;;  %300 = vmatprep.mubr.bf16.mxu0 %v1057_v5  ;;  %343 = vmatprep.mubr.bf16.mxu1 %v1057_v5  ;;  %v37_v19 = vld [vmem:[%s1748_s0 + $0x90] sm:$0xff]  ;;  %vm212_vm2 = vcmask 220160  }
   0x2   :  { %v43_v1 = vld [vmem:[%s1748_s0 + $0xc0] sm:$0x33]  ;;  %v1097_v7 = vsel %vm217_vm1, %v218_v3, 0  ;;  %v44_v8 = vld [vmem:[%s1748_s0 + $0xc8] sm:$0x33]  ;;  %1047 = vset.pattern.permute.xlu0 %v1057_v5  ;;  %v38_v24 = vld [vmem:[%s1748_s0 + $0x98] sm:$0xff] }
   0x3   :  { %v1019_v6 = vcombine.high %v35_v0, %v43_v1  ;;  %v1018_v9 = vcombine.low %v35_v0, %v43_v1  ;;  %v19_v10 = vld [vmem:[%s1748_s0] sm:$0xff]  ;;  %v1021_v12 = vcombine.high %v36_v4, %v44_v8  ;;  %v1020_v13 = vcombine.low %v36_v4, %v44_v8  ;;  %v20_v14 = vld [vmem:[%s1748_s0 + $0x8] sm:$0xff]  ;;  %v45_v23 = vld [vmem:[%s1748_s0 + $0xd0] sm:$0x33] }
   0x4   :  { %v27_v11 = vld [vmem:[%s1748_s0 + $0x40] sm:$0xff]  ;;  %v28_v15 = vld [vmem:[%s1748_s0 + $0x48] sm:$0xff]  ;;  %v46_v25 = vld [vmem:[%s1748_s0 + $0xd8] sm:$0x33]  ;;  %v1023_v26 = vcombine.high %v37_v19, %v45_v23  ;;  %v1022_v29 = vcombine.low %v37_v19, %v45_v23 }
   0x5   :  { %v224_v16 = vand.u32 %v1019_v6, %v1097_v7  ;;  %v221_v17 = vand.u32 %v1018_v9, %v1097_v7  ;;  %v1003_v18 = vcombine.high %v19_v10, %v27_v11  ;;  %v230_v20 = vand.u32 %v1021_v12, %v1097_v7  ;;  %v1134_v31 = vld [vmem:[%s1749_s1] sm:$0xff]   ;;  %v21_v34 = vld [vmem:[%s1748_s0 + $0x10] sm:$0xff]  ;;  %v22_v37 = vld [vmem:[%s1748_s0 + $0x18] sm:$0xff] }
   0x6   :  { %v227_v21 = vand.u32 %v1020_v13, %v1097_v7  ;;  %v1005_v22 = vcombine.high %v20_v14, %v28_v15  ;;  %v1025_v27 = vcombine.high %v38_v24, %v46_v25  ;;  %v1002_v28 = vcombine.low %v19_v10, %v27_v11  ;;  %v29_v35 = vld [vmem:[%s1748_s0 + $0x50] sm:$0xff]  ;;  %v39_v38 = vld [vmem:[%s1748_s0 + $0xa0] sm:$0xff]  ;;  %v30_v40 = vld [vmem:[%s1748_s0 + $0x58] sm:$0xff] }
   0x7   :  { %280 = vmatprep.subr.bf16.mxu0 %v224_v16  ;;  %323 = vmatprep.subr.bf16.mxu1 %v230_v20  ;;  %v1004_v30 = vcombine.low %v20_v14, %v28_v15  ;;  %v236_v32 = vand.u32 %v1023_v26, %v1097_v7  ;;  %v1024_v33 = vcombine.low %v38_v24, %v46_v25  ;;  %v47_v39 = vld [vmem:[%s1748_s0 + $0xe0] sm:$0x33]  ;;  %v40_v41 = vld [vmem:[%s1748_s0 + $0xa8] sm:$0xff]  ;;  %v41_v59 = vld [vmem:[%s1748_s0 + $0xb0] sm:$0xff] }
   0x8   :  { %281 = vmatpush1.bf16.msra.mxu0 %v221_v17  ;;  %324 = vmatpush1.bf16.msra.mxu1 %v227_v21  ;;  %v242_v36 = vand.u32 %v1025_v27, %v1097_v7  ;;  %v48_v42 = vld [vmem:[%s1748_s0 + $0xe8] sm:$0x33]  ;;  %v233_v43 = vand.u32 %v1022_v29, %v1097_v7  ;;  %v1007_v45 = vcombine.high %v21_v34, %v29_v35  ;;  %v1171_v51 = vld [vmem:[%s1750_s2] sm:$0xff]  ;;  %v49_v60 = vld [vmem:[%s1748_s0 + $0xf0] sm:$0x33] }
   0x9   :  { %282 = vmatprep.subr.bf16.mxu0 %v1003_v18  ;;  %325 = vmatprep.subr.bf16.mxu1 %v1005_v22  ;;  %v239_v44 = vand.u32 %v1024_v33, %v1097_v7  ;;  %v1027_v46 = vcombine.high %v39_v38, %v47_v39  ;;  %v1009_v47 = vcombine.high %v22_v37, %v30_v40  ;;  %v23_v55 = vld [vmem:[%s1748_s0 + $0x20] sm:$0xff]  ;;  %v24_v58 = vld [vmem:[%s1748_s0 + $0x28] sm:$0xff]  ;;  %v42_v62 = vld [vmem:[%s1748_s0 + $0xb8] sm:$0xff] }
   0xa   :  { %v1029_v48 = vcombine.high %v40_v41, %v48_v42  ;;  %v1006_v49 = vcombine.low %v21_v34, %v29_v35  ;;  %v1026_v50 = vcombine.low %v39_v38, %v47_v39  ;;  %v1008_v52 = vcombine.low %v22_v37, %v30_v40  ;;  %v31_v56 = vld [vmem:[%s1748_s0 + $0x60] sm:$0xff]  ;;  %v32_v61 = vld [vmem:[%s1748_s0 + $0x68] sm:$0xff]  ;;  %v50_v63 = vld [vmem:[%s1748_s0 + $0xf8] sm:$0x33]  ;;  %55 = vperm.xlu0 %1047, %v1171_v51  }
   0xb   :  { %v248_v53 = vand.u32 %v1027_v46, %v1097_v7  ;;  %v1028_v54 = vcombine.low %v40_v41, %v48_v42  ;;  %v1206_v1 = vld [vmem:[%s1750_s2 + $0x8] sm:$0xff]  ;;  %v1011_v3 = vcombine.high %v23_v55, %v31_v56  ;;  %v1031_v4 = vcombine.high %v41_v59, %v49_v60  ;;  %v25_v15 = vld [vmem:[%s1748_s0 + $0x30] sm:$0xff]  ;;  %v26_v17 = vld [vmem:[%s1748_s0 + $0x38] sm:$0xff] }
   0xc   :  { %283 = vmatpush1.bf16.msra.mxu0 %v1002_v28  ;;  %326 = vmatpush1.bf16.msra.mxu1 %v1004_v30  ;;  %v254_v57 = vand.u32 %v1029_v48, %v1097_v7  ;;  %v245_v0 = vand.u32 %v1026_v50, %v1097_v7  ;;  %v1013_v6 = vcombine.high %v24_v58, %v32_v61  ;;  %v33_v16 = vld [vmem:[%s1748_s0 + $0x70] sm:$0xff]  ;;  %v34_v18 = vld [vmem:[%s1748_s0 + $0x78] sm:$0xff] }
   0xd   :  { %366 = vmatprep.subr.bf16.mxu0 %v236_v32  ;;  %409 = vmatprep.subr.bf16.mxu1 %v242_v36  ;;  %v251_v2 = vand.u32 %v1028_v54, %v1097_v7  ;;  %v1033_v8 = vcombine.high %v42_v62, %v50_v63  ;;  %v1010_v9 = vcombine.low %v23_v55, %v31_v56 }
   0xe   :  { %60 = vperm.xlu0 %1047, %v1206_v1   ;;  %v1030_v10 = vcombine.low %v41_v59, %v49_v60  ;;  %v1012_v11 = vcombine.low %v24_v58, %v32_v61  ;;  %v260_v12 = vand.u32 %v1031_v4, %v1097_v7  ;;  %v1032_v13 = vcombine.low %v42_v62, %v50_v63 }
   0xf   :  { %1034 = vmatmul.mubr.msk.bf16.vlgmr.msra.gmra.mxu0 %vm212_vm2, %v1134_v31  ;;  %1035 = vmatmul.mubr.msk.bf16.vlgmr.msra.gmra.mxu1 %vm212_vm2, %v1134_v31  ;;  %v266_v14 = vand.u32 %v1033_v8, %v1097_v7  ;;  %v1015_v21 = vcombine.high %v25_v15, %v33_v16  ;;  %v1017_v22 = vcombine.high %v26_v17, %v34_v18 }
  0x10   :  { %367 = vmatpush1.bf16.msra.mxu0 %v233_v43  ;;  %410 = vmatpush1.bf16.msra.mxu1 %v239_v44  ;;  %v257_v19 = vand.u32 %v1030_v10, %v1097_v7  ;;  %v263_v20 = vand.u32 %v1032_v13, %v1097_v7  ;;  %v1014_v23 = vcombine.low %v25_v15, %v33_v16 }
  0x11   :  { %368 = vmatprep.subr.bf16.mxu0 %v1007_v45  ;;  %411 = vmatprep.subr.bf16.mxu1 %v1009_v47  ;;  %v1016_v24 = vcombine.low %v26_v17, %v34_v18 }
  0x12   :  { %386 = vmatprep.mubr.bf16.mxu0 %v1057_v5  ;;  %429 = vmatprep.mubr.bf16.mxu1 %v1057_v5 }
  0x14   :  { %369 = vmatpush1.bf16.msra.mxu0 %v1006_v49  ;;  %412 = vmatpush1.bf16.msra.mxu1 %v1008_v52 }
  0x15   :  { %452 = vmatprep.subr.bf16.mxu0 %v248_v53  ;;  %495 = vmatprep.subr.bf16.mxu1 %v254_v57 }
  0x17   :  { %1036 = vmatmul.mubr.msk.bf16.vlgmr.msra.gmra.mxu0 %vm212_vm2, %v1134_v31  ;;  %1037 = vmatmul.mubr.msk.bf16.vlgmr.msra.gmra.mxu1 %vm212_vm2, %v1134_v31 }
  0x18   :  { %453 = vmatpush1.bf16.msra.mxu0 %v245_v0  ;;  %496 = vmatpush1.bf16.msra.mxu1 %v251_v2 }
  0x19   :  { %454 = vmatprep.subr.bf16.mxu0 %v1011_v3  ;;  %497 = vmatprep.subr.bf16.mxu1 %v1013_v6 }
  0x1a   :  { %472 = vmatprep.mubr.bf16.mxu0 %v1057_v5  ;;  %515 = vmatprep.mubr.bf16.mxu1 %v1057_v5 }
  0x1c   :  { %455 = vmatpush1.bf16.msra.mxu0 %v1010_v9  ;;  %498 = vmatpush1.bf16.msra.mxu1 %v1012_v11 }
  0x1d   :  { %538 = vmatprep.subr.bf16.mxu0 %v260_v12  ;;  %581 = vmatprep.subr.bf16.mxu1 %v266_v14 }
  0x1f   :  { %1038 = vmatmul.mubr.msk.bf16.vlgmr.msra.gmra.mxu0 %vm212_vm2, %v1134_v31  ;;  %1039 = vmatmul.mubr.msk.bf16.vlgmr.msra.gmra.mxu1 %vm212_vm2, %v1134_v31 }
  0x20   :  { %539 = vmatpush1.bf16.msra.mxu0 %v257_v19  ;;  %582 = vmatpush1.bf16.msra.mxu1 %v263_v20 }
  0x21   :  { %540 = vmatprep.subr.bf16.mxu0 %v1015_v21  ;;  %583 = vmatprep.subr.bf16.mxu1 %v1017_v22 }
  0x22   :  { %558 = vmatprep.mubr.bf16.mxu0 %v1057_v5  ;;  %601 = vmatprep.mubr.bf16.mxu1 %v1057_v5 }
  0x24   :  { %541 = vmatpush1.bf16.msra.mxu0 %v1014_v23  ;;  %584 = vmatpush1.bf16.msra.mxu1 %v1016_v24 }
  0x27   :  { %1040 = vmatmul.mubr.msk.bf16.vlgmr.msra.gmra.mxu0 %vm212_vm2, %v1134_v31  ;;  %1041 = vmatmul.mubr.msk.bf16.vlgmr.msra.gmra.mxu1 %vm212_vm2, %v1134_v31 }
  0x85   :  { %v1242_v7 = vpop.permute.xlu0 %55 }
  0x89   :  { %v1264_v32 = vpop.permute.xlu0 %60 }
  0xcf   :  { %v302_v25 = vpop.f32.mrf.mxu0  ;;  %v345_v27 = vpop.f32.mrf.mxu1 }
  0xd0   :  { %v1245_v26 = vadd.f32 %v302_v25, %v1242_v7  ;;  %v1248_v28 = vadd.f32 %v345_v27, %v1242_v7 }
  0xd1   :  { %v304_v29 = vpop.f32.mrf.mxu0  ;;  %v347_v30 = vpop.f32.mrf.mxu1 }
  0xd2   :  { %612 = vst [vmem:[%s1751_s3] sm:$0xff] %v1245_v26  ;;  %v1255_v5 = vadd.f32 %v304_v29, %v1242_v7  ;;  %614 = vst [vmem:[%s1751_s3 + $0x10] sm:$0xff] %v1248_v28  ;;  %v1262_v31 = vadd.f32 %v347_v30, %v1242_v7  ;;  %v681_v34 = vmul.f32 %v1245_v26, %v1245_v26 }
  0xd3   :  { %v306_v33 = vpop.f32.mrf.mxu0  ;;  %v349_v38 = vpop.f32.mrf.mxu1  ;;  %v683_v41 = vmul.f32 %v1248_v28, %v1248_v28 }
  0xd4   :  { %613 = vst [vmem:[%s1751_s3 + $0x8] sm:$0xff] %v1255_v5  ;;  %v644_v35 = vadd.f32 %v1255_v5, %v1245_v26  ;;  %v682_v36 = vmul.f32 %v1255_v5, %v1255_v5  ;;  %v1277_v37 = vadd.f32 %v306_v33, %v1264_v32  ;;  %615 = vst [vmem:[%s1751_s3 + $0x18] sm:$0xff] %v1262_v31 }
  0xd5   :  { %v1284_v39 = vadd.f32 %v349_v38, %v1264_v32  ;;  %v308_v40 = vpop.f32.mrf.mxu0  ;;  %v351_v45 = vpop.f32.mrf.mxu1  ;;  %v684_v46 = vmul.f32 %v1262_v31, %v1262_v31 }
  0xd6   :  { %v713_v42 = vadd.f32 %v682_v36, %v681_v34  ;;  %v645_v43 = vadd.f32 %v644_v35, %v1248_v28  ;;  %628 = vst [vmem:[%s1751_s3 + $0x80] sm:$0xff] %v1277_v37  ;;  %v1294_v44 = vadd.f32 %v308_v40, %v1264_v32  ;;  %v697_v47 = vmul.f32 %v1277_v37, %v1277_v37 }
  0xd7   :  { %630 = vst [vmem:[%s1751_s3 + $0x90] sm:$0xff] %v1284_v39  ;;  %v1305_v48 = vadd.f32 %v351_v45, %v1264_v32  ;;  %v388_v49 = vpop.f32.mrf.mxu0  ;;  %v431_v55 = vpop.f32.mrf.mxu1  ;;  %v699_v56 = vmul.f32 %v1284_v39, %v1284_v39 }
  0xd8   :  { %v646_v50 = vadd.f32 %v645_v43, %v1262_v31  ;;  %v714_v52 = vadd.f32 %v713_v42, %v683_v41  ;;  %629 = vst [vmem:[%s1751_s3 + $0x88] sm:$0xff] %v1294_v44  ;;  %v661_v53 = vadd.f32 %v1294_v44, %v1277_v37  ;;  %v698_v54 = vmul.f32 %v1294_v44, %v1294_v44 }
  0xd9   :  { %631 = vst [vmem:[%s1751_s3 + $0x98] sm:$0xff] %v1305_v48  ;;  %v1323_v57 = vadd.f32 %v388_v49, %v1242_v7  ;;  %v1326_v58 = vadd.f32 %v431_v55, %v1242_v7  ;;  %v390_v59 = vpop.f32.mrf.mxu0  ;;  %v433_v0 = vpop.f32.mrf.mxu1  ;;  %v700_v2 = vmul.f32 %v1305_v48, %v1305_v48 }
  0xda   :  { %v715_v60 = vadd.f32 %v714_v52, %v684_v46  ;;  %v730_v61 = vadd.f32 %v698_v54, %v697_v47  ;;  %v662_v62 = vadd.f32 %v661_v53, %v1284_v39  ;;  %v1330_v63 = vadd.f32 %v390_v59, %v1242_v7 }
  0xdb   :  { %616 = vst [vmem:[%s1751_s3 + $0x20] sm:$0xff] %v1323_v57  ;;  %v647_v3 = vadd.f32 %v646_v50, %v1323_v57  ;;  %v685_v4 = vmul.f32 %v1323_v57, %v1323_v57  ;;  %618 = vst [vmem:[%s1751_s3 + $0x30] sm:$0xff] %v1326_v58  ;;  %v1346_v6 = vadd.f32 %v433_v0, %v1242_v7  ;;  %v392_v8 = vpop.f32.mrf.mxu0  ;;  %v435_v13 = vpop.f32.mrf.mxu1 }
  0xdc   :  { %v663_v9 = vadd.f32 %v662_v62, %v1305_v48  ;;  %v731_v10 = vadd.f32 %v730_v61, %v699_v56  ;;  %617 = vst [vmem:[%s1751_s3 + $0x28] sm:$0xff] %v1330_v63  ;;  %v686_v11 = vmul.f32 %v1330_v63, %v1330_v63  ;;  %v1356_v12 = vadd.f32 %v392_v8, %v1264_v32 }
  0xdd   :  { %v716_v14 = vadd.f32 %v715_v60, %v685_v4  ;;  %v687_v15 = vmul.f32 %v1326_v58, %v1326_v58  ;;  %v648_v16 = vadd.f32 %v647_v3, %v1330_v63  ;;  %619 = vst [vmem:[%s1751_s3 + $0x38] sm:$0xff] %v1346_v6  ;;  %v1366_v17 = vadd.f32 %v435_v13, %v1264_v32  ;;  %v394_v18 = vpop.f32.mrf.mxu0  ;;  %v437_v23 = vpop.f32.mrf.mxu1 }
  0xde   :  { %v732_v19 = vadd.f32 %v731_v10, %v700_v2  ;;  %632 = vst [vmem:[%s1751_s3 + $0xa0] sm:$0xff] %v1356_v12  ;;  %v664_v20 = vadd.f32 %v663_v9, %v1356_v12  ;;  %v701_v21 = vmul.f32 %v1356_v12, %v1356_v12  ;;  %v1376_v22 = vadd.f32 %v394_v18, %v1264_v32 }
  0xdf   :  { %v717_v24 = vadd.f32 %v716_v14, %v686_v11  ;;  %v649_v25 = vadd.f32 %v648_v16, %v1326_v58  ;;  %v688_v27 = vmul.f32 %v1346_v6, %v1346_v6  ;;  %634 = vst [vmem:[%s1751_s3 + $0xb0] sm:$0xff] %v1366_v17  ;;  %v1386_v29 = vadd.f32 %v437_v23, %v1264_v32  ;;  %v474_v30 = vpop.f32.mrf.mxu0  ;;  %v517_v38 = vpop.f32.mrf.mxu1 }
  0xe0   :  { %v733_v33 = vadd.f32 %v732_v19, %v701_v21  ;;  %633 = vst [vmem:[%s1751_s3 + $0xa8] sm:$0xff] %v1376_v22  ;;  %v665_v34 = vadd.f32 %v664_v20, %v1376_v22  ;;  %v702_v35 = vmul.f32 %v1376_v22, %v1376_v22  ;;  %v1396_v36 = vadd.f32 %v474_v30, %v1242_v7 }
  0xe1   :  { %v650_v40 = vadd.f32 %v649_v25, %v1346_v6  ;;  %v718_v41 = vadd.f32 %v717_v24, %v687_v15  ;;  %v703_v42 = vmul.f32 %v1366_v17, %v1366_v17  ;;  %635 = vst [vmem:[%s1751_s3 + $0xb8] sm:$0xff] %v1386_v29  ;;  %v1406_v43 = vadd.f32 %v517_v38, %v1242_v7  ;;  %v476_v45 = vpop.f32.mrf.mxu0  ;;  %v519_v52 = vpop.f32.mrf.mxu1 }
  0xe2   :  { %v734_v46 = vadd.f32 %v733_v33, %v702_v35  ;;  %v666_v47 = vadd.f32 %v665_v34, %v1366_v17  ;;  %620 = vst [vmem:[%s1751_s3 + $0x40] sm:$0xff] %v1396_v36  ;;  %v689_v49 = vmul.f32 %v1396_v36, %v1396_v36  ;;  %v1416_v50 = vadd.f32 %v476_v45, %v1242_v7 }
  0xe3   :  { %v719_v53 = vadd.f32 %v718_v41, %v688_v27  ;;  %v704_v54 = vmul.f32 %v1386_v29, %v1386_v29  ;;  %v651_v55 = vadd.f32 %v650_v40, %v1396_v36  ;;  %622 = vst [vmem:[%s1751_s3 + $0x50] sm:$0xff] %v1406_v43  ;;  %v1426_v56 = vadd.f32 %v519_v52, %v1242_v7  ;;  %v478_v59 = vpop.f32.mrf.mxu0  ;;  %v521_v2 = vpop.f32.mrf.mxu1 }
  0xe4   :  { %v667_v60 = vadd.f32 %v666_v47, %v1386_v29  ;;  %v735_v61 = vadd.f32 %v734_v46, %v703_v42  ;;  %621 = vst [vmem:[%s1751_s3 + $0x48] sm:$0xff] %v1416_v50  ;;  %v690_v62 = vmul.f32 %v1416_v50, %v1416_v50  ;;  %v1436_v0 = vadd.f32 %v478_v59, %v1264_v32 }
  0xe5   :  { %v720_v3 = vadd.f32 %v719_v53, %v689_v49  ;;  %v691_v4 = vmul.f32 %v1406_v43, %v1406_v43  ;;  %v652_v8 = vadd.f32 %v651_v55, %v1416_v50  ;;  %623 = vst [vmem:[%s1751_s3 + $0x58] sm:$0xff] %v1426_v56  ;;  %v1446_v9 = vadd.f32 %v521_v2, %v1264_v32  ;;  %v480_v10 = vpop.f32.mrf.mxu0  ;;  %v523_v16 = vpop.f32.mrf.mxu1 }
  0xe6   :  { %v736_v11 = vadd.f32 %v735_v61, %v704_v54  ;;  %636 = vst [vmem:[%s1751_s3 + $0xc0] sm:$0xff] %v1436_v0  ;;  %v668_v13 = vadd.f32 %v667_v60, %v1436_v0  ;;  %v705_v14 = vmul.f32 %v1436_v0, %v1436_v0  ;;  %v1456_v15 = vadd.f32 %v480_v10, %v1264_v32 }
  0xe7   :  { %v721_v18 = vadd.f32 %v720_v3, %v690_v62  ;;  %v692_v19 = vmul.f32 %v1426_v56, %v1426_v56  ;;  %638 = vst [vmem:[%s1751_s3 + $0xd0] sm:$0xff] %v1446_v9  ;;  %v1465_v20 = vadd.f32 %v523_v16, %v1264_v32  ;;  %v560_v21 = vpop.f32.mrf.mxu0  ;;  %v653_v23 = vadd.f32 %v652_v8, %v1406_v43  ;;  %v603_v33 = vpop.f32.mrf.mxu1 }
  0xe8   :  { %v737_v24 = vadd.f32 %v736_v11, %v705_v14  ;;  %637 = vst [vmem:[%s1751_s3 + $0xc8] sm:$0xff] %v1456_v15  ;;  %v669_v25 = vadd.f32 %v668_v13, %v1456_v15  ;;  %v706_v27 = vmul.f32 %v1456_v15, %v1456_v15  ;;  %v1476_v30 = vadd.f32 %v560_v21, %v1242_v7 }
  0xe9   :  { %v707_v34 = vmul.f32 %v1446_v9, %v1446_v9  ;;  %639 = vst [vmem:[%s1751_s3 + $0xd8] sm:$0xff] %v1465_v20  ;;  %v1485_v35 = vadd.f32 %v603_v33, %v1242_v7  ;;  %v562_v38 = vpop.f32.mrf.mxu0  ;;  %v654_v40 = vadd.f32 %v653_v23, %v1426_v56  ;;  %v722_v41 = vadd.f32 %v721_v18, %v691_v4  ;;  %v605_v49 = vpop.f32.mrf.mxu1 }
  0xea   :  { %v738_v42 = vadd.f32 %v737_v24, %v706_v27  ;;  %v670_v45 = vadd.f32 %v669_v25, %v1446_v9  ;;  %624 = vst [vmem:[%s1751_s3 + $0x60] sm:$0xff] %v1476_v30  ;;  %v693_v46 = vmul.f32 %v1476_v30, %v1476_v30  ;;  %v1496_v47 = vadd.f32 %v562_v38, %v1242_v7 }
  0xeb   :  { %v708_v52 = vmul.f32 %v1465_v20, %v1465_v20  ;;  %626 = vst [vmem:[%s1751_s3 + $0x70] sm:$0xff] %v1485_v35  ;;  %v1505_v53 = vadd.f32 %v605_v49, %v1242_v7  ;;  %v564_v54 = vpop.f32.mrf.mxu0  ;;  %v655_v55 = vadd.f32 %v654_v40, %v1476_v30  ;;  %v723_v59 = vadd.f32 %v722_v41, %v692_v19  ;;  %v607_v62 = vpop.f32.mrf.mxu1 }
  0xec   :  { %v671_v60 = vadd.f32 %v670_v45, %v1465_v20  ;;  %625 = vst [vmem:[%s1751_s3 + $0x68] sm:$0xff] %v1496_v47  ;;  %v1514_v61 = vadd.f32 %v564_v54, %v1264_v32  ;;  %v694_v2 = vmul.f32 %v1496_v47, %v1496_v47  ;;  %v739_v7 = vadd.f32 %v738_v42, %v707_v34 }
  0xed   :  { %627 = vst [vmem:[%s1751_s3 + $0x78] sm:$0xff] %v1505_v53  ;;  %v1523_v3 = vadd.f32 %v607_v62, %v1264_v32  ;;  %v566_v4 = vpop.f32.mrf.mxu0  ;;  %v656_v8 = vadd.f32 %v655_v55, %v1496_v47  ;;  %v724_v10 = vadd.f32 %v723_v59, %v693_v46  ;;  %v609_v14 = vpop.f32.mrf.mxu1  ;;  %v695_v23 = vmul.f32 %v1485_v35, %v1485_v35 }
  0xee   :  { %640 = vst [vmem:[%s1751_s3 + $0xe0] sm:$0xff] %v1514_v61  ;;  %v709_v11 = vmul.f32 %v1514_v61, %v1514_v61  ;;  %v1533_v13 = vadd.f32 %v566_v4, %v1264_v32  ;;  %v672_v16 = vadd.f32 %v671_v60, %v1514_v61  ;;  %v740_v18 = vadd.f32 %v739_v7, %v708_v52 }
  0xef   :  { %642 = vst [vmem:[%s1751_s3 + $0xf0] sm:$0xff] %v1523_v3  ;;  %v1541_v19 = vadd.f32 %v609_v14, %v1264_v32  ;;  %v657_v21 = vadd.f32 %v656_v8, %v1485_v35  ;;  %v725_v24 = vadd.f32 %v724_v10, %v694_v2  ;;  %v696_v34 = vmul.f32 %v1505_v53, %v1505_v53 }
  0xf0   :  { %641 = vst [vmem:[%s1751_s3 + $0xe8] sm:$0xff] %v1533_v13  ;;  %v673_v25 = vadd.f32 %v672_v16, %v1533_v13  ;;  %v710_v27 = vmul.f32 %v1533_v13, %v1533_v13  ;;  %v741_v33 = vadd.f32 %v740_v18, %v709_v11  ;;  %v711_v45 = vmul.f32 %v1523_v3, %v1523_v3 }
  0xf1   :  { %643 = vst [vmem:[%s1751_s3 + $0xf8] sm:$0xff] %v1541_v19  ;;  %v658_v32 = vadd.f32 %v657_v21, %v1505_v53  ;;  %v726_v38 = vadd.f32 %v725_v24, %v695_v23  ;;  %v712_v52 = vmul.f32 %v1541_v19, %v1541_v19  ;;  %v1058_v55 = vmov 1   ;;  %s1060_s3 = smov 1  }
  0xf2   :  { %v674_v40 = vadd.f32 %v673_v25, %v1523_v3  ;;  %v742_v41 = vadd.f32 %v741_v33, %v710_v27  ;;  %1048 = vset.pattern.permute.xlu1 %v1058_v55  ;;  %v1059_v27 = vmov 2  }
  0xf3   :  { %659 = vadd.xlane.f32.xlu1 %v658_v32  ;;  %v727_v42 = vadd.f32 %v726_v38, %v696_v34  ;;  %1049 = vset.pattern.permute.xlu0 %v1059_v27 }
  0xf4   :  { %v675_v46 = vadd.f32 %v674_v40, %v1541_v19  ;;  %v743_v49 = vadd.f32 %v742_v41, %v711_v45 }
  0xf5   :  { %728 = vadd.xlane.f32.xlu0 %v727_v42 }
  0xf6   :  { %v744_v54 = vadd.f32 %v743_v49, %v712_v52 }
  0xf7   :  { %676 = vadd.xlane.f32.xlu1 %v675_v46 }
  0xfb   :  { %745 = vadd.xlane.f32.xlu1 %v744_v54 }
 0x17c   :  { %v660_v59 = vpop.xlane.xlu1 %659 }
 0x17d   :  { %v679_v60 = vmul.f32 0.00048828125, %v660_v59 }
 0x17e   :  { %v729_v62 = vpop.xlane.xlu0 %728 }
 0x17f   :  { %v749_v2 = vmul.f32 %v679_v60, %v679_v60  ;;  %v747_v7 = vmul.f32 0.00048828125, %v729_v62 }
 0x180   :  { %v677_v4 = vpop.xlane.xlu1 %676 }
 0x181   :  { %v751_v8 = vsub.f32 %v747_v7, %v749_v2  ;;  %v680_v10 = vmul.f32 0.00048828125, %v677_v4 }
 0x183   :  { %v753_v11 = vmax.f32 %v751_v8, 0.0  ;;  %v750_v18 = vmul.f32 %v680_v10, %v680_v10 }
 0x184   :  { %v746_v14 = vpop.xlane.xlu1 %745 }
 0x185   :  { %v755_v16 = vadd.f32 1e-05, %v753_v11  ;;  %v748_v21 = vmul.f32 0.00048828125, %v746_v14 }
 0x187   :  { %1052 = vrsqrt.f32 %v755_v16  ;;  %v752_v23 = vsub.f32 %v748_v21, %v750_v18 }
 0x189   :  { %v754_v24 = vmax.f32 %v752_v23, 0.0 }
 0x18b   :  { %v756_v25 = vadd.f32 1e-05, %v754_v24 }
 0x18d   :  { %1054 = vrsqrt.f32 %v756_v25 }
 0x194   :  { %v1053_v33 = vpop.eup %1052 }
 0x195   :  { %v759_v32 = vmul.f32 %v1053_v33, %v1171_v51 }
 0x197   :  { %v761_v34 = vmul.f32 %v759_v32, %v679_v60 }
 0x199   :  { %765 = vrot.lane.b32.xlu1 %v761_v34, %s1060_s3 }
 0x19a   :  { %v1055_v38 = vpop.eup %1054 }
 0x19b   :  { %v760_v40 = vmul.f32 %v1055_v38, %v1206_v1 }
 0x19d   :  { %v762_v41 = vmul.f32 %v760_v40, %v680_v10 }
 0x19f   :  { %767 = vrot.lane.b32.xlu1 %v762_v41, %s1060_s3 }
 0x1a3   :  { %775 = vperm.xlu1 %1048, %v759_v32  }
 0x1a7   :  { %780 = vperm.xlu1 %1048, %v760_v40  }
 0x1ab   :  { %1050 = vset.pattern.permute.xlu1 %v1059_v27 }
 0x20b   :  { %v766_v42 = vpop.permute.xlu1 %765 }
 0x20c   :  { %v771_v45 = vsub.f32 %v1171_v51, %v766_v42 }
 0x20e   :  { %817 = vperm.xlu0 %1049, %v771_v45  }
 0x211   :  { %v768_v46 = vpop.permute.xlu1 %767 }
 0x212   :  { %v772_v49 = vsub.f32 %v1206_v1, %v768_v46 }
 0x214   :  { %822 = vperm.xlu1 %1050, %v772_v49  }
 0x21e   :  { %v776_v52 = vpop.permute.xlu1 %775 }
 0x21f   :  { %v783_v54 = vmul.f32 %v776_v52, %v1245_v26  ;;  %v784_v55 = vmul.f32 %v776_v52, %v1255_v5  ;;  %v785_v60 = vmul.f32 %v776_v52, %v1248_v28  ;;  %v786_v62 = vmul.f32 %v776_v52, %v1262_v31 }
 0x220   :  { %v787_v2 = vmul.f32 %v776_v52, %v1323_v57  ;;  %v788_v51 = vmul.f32 %v776_v52, %v1330_v63  ;;  %v789_v7 = vmul.f32 %v776_v52, %v1326_v58  ;;  %v790_v1 = vmul.f32 %v776_v52, %v1346_v6 }
 0x221   :  { %v791_v4 = vmul.f32 %v776_v52, %v1396_v36  ;;  %v792_v26 = vmul.f32 %v776_v52, %v1416_v50  ;;  %v793_v5 = vmul.f32 %v776_v52, %v1406_v43  ;;  %v794_v8 = vmul.f32 %v776_v52, %v1426_v56 }
 0x222   :  { %v1572_v59 = vpop.permute.xlu1 %780  ;;  %v795_v28 = vmul.f32 %v776_v52, %v1476_v30  ;;  %v796_v31 = vmul.f32 %v776_v52, %v1496_v47  ;;  %v797_v57 = vmul.f32 %v776_v52, %v1485_v35  ;;  %v798_v63 = vmul.f32 %v776_v52, %v1505_v53 }
 0x223   :  { %v1590_v58 = vmul.f32 %v1572_v59, %v1277_v37  ;;  %v1594_v6 = vmul.f32 %v1572_v59, %v1294_v44  ;;  %v1598_v43 = vmul.f32 %v1572_v59, %v1284_v39  ;;  %v1602_v50 = vmul.f32 %v1572_v59, %v1305_v48 }
 0x224   :  { %v1606_v56 = vmul.f32 %v1572_v59, %v1356_v12  ;;  %v1610_v37 = vmul.f32 %v1572_v59, %v1376_v22  ;;  %v1614_v44 = vmul.f32 %v1572_v59, %v1366_v17  ;;  %v1618_v39 = vmul.f32 %v1572_v59, %v1386_v29 }
 0x225   :  { %v1622_v48 = vmul.f32 %v1572_v59, %v1436_v0  ;;  %v1626_v12 = vmul.f32 %v1572_v59, %v1456_v15  ;;  %v1630_v22 = vmul.f32 %v1572_v59, %v1446_v9  ;;  %v1634_v17 = vmul.f32 %v1572_v59, %v1465_v20 }
 0x226   :  { %v1638_v34 = vmul.f32 %v1572_v59, %v1514_v61  ;;  %v1642_v42 = vmul.f32 %v1572_v59, %v1533_v13 }
 0x289   :  { %v818_v36 = vpop.permute.xlu0 %817 }
 0x28a   :  { %v825_v30 = vadd.f32 %v818_v36, %v783_v54  ;;  %v826_v35 = vadd.f32 %v818_v36, %v784_v55  ;;  %v827_v29 = vadd.f32 %v818_v36, %v785_v60  ;;  %v828_v47 = vadd.f32 %v818_v36, %v786_v62 }
 0x28b   :  { %v829_v53 = vadd.f32 %v818_v36, %v787_v2  ;;  %v830_v10 = vadd.f32 %v818_v36, %v788_v51  ;;  %v831_v0 = vadd.f32 %v818_v36, %v789_v7  ;;  %v832_v11 = vadd.f32 %v818_v36, %v790_v1 }
 0x28c   :  { %v833_v14 = vadd.f32 %v818_v36, %v791_v4  ;;  %v834_v16 = vadd.f32 %v818_v36, %v792_v26  ;;  %v835_v15 = vadd.f32 %v818_v36, %v793_v5  ;;  %v836_v18 = vadd.f32 %v818_v36, %v794_v8 }
 0x28d   :  { %v837_v21 = vadd.f32 %v818_v36, %v795_v28  ;;  %v838_v23 = vadd.f32 %v818_v36, %v796_v31  ;;  %v839_v24 = vadd.f32 %v818_v36, %v797_v57  ;;  %v840_v25 = vadd.f32 %v818_v36, %v798_v63 }
 0x28e   :  { %vm857_vm3 = vcmp.ge.f32.partialorder %v825_v30, 0.0  ;;  %vm858_vm4 = vcmp.ge.f32.partialorder %v826_v35, 0.0  ;;  %vm859_vm5 = vcmp.ge.f32.partialorder %v827_v29, 0.0  ;;  %vm860_vm6 = vcmp.ge.f32.partialorder %v828_v47, 0.0 }
 0x28f   :  { %vm861_vm7 = vcmp.ge.f32.partialorder %v829_v53, 0.0  ;;  %vm862_vm8 = vcmp.ge.f32.partialorder %v830_v10, 0.0  ;;  %vm863_vm9 = vcmp.ge.f32.partialorder %v831_v0, 0.0  ;;  %vm864_vm10 = vcmp.ge.f32.partialorder %v832_v11, 0.0  ;;  %v1645_v54 = vpop.permute.xlu1 %822 }
 0x290   :  { %vm865_vm11 = vcmp.ge.f32.partialorder %v833_v14, 0.0  ;;  %vm866_vm12 = vcmp.ge.f32.partialorder %v834_v16, 0.0  ;;  %vm867_vm13 = vcmp.ge.f32.partialorder %v835_v15, 0.0  ;;  %vm868_vm14 = vcmp.ge.f32.partialorder %v836_v18, 0.0 }
 0x291   :  { %v889_v9 = vmul.f32 0.2, %v825_v30  ;;  %v890_v20 = vmul.f32 0.2, %v826_v35  ;;  %v891_v27 = vmul.f32 0.2, %v827_v29  ;;  %v1656_v26 = vadd.f32 %v1645_v54, %v1590_v58 }
 0x292   :  { %v893_v33 = vmul.f32 0.2, %v829_v53  ;;  %v894_v32 = vmul.f32 0.2, %v830_v10  ;;  %v892_v38 = vmul.f32 0.2, %v828_v47  ;;  %v1660_v5 = vadd.f32 %v1645_v54, %v1594_v6 }
 0x293   :  { %v895_v40 = vmul.f32 0.2, %v831_v0  ;;  %v896_v41 = vmul.f32 0.2, %v832_v11  ;;  %vm869_vm15 = vcmp.ge.f32.partialorder %v837_v21, 0.0  ;;  %vm870_vm0 = vcmp.ge.f32.partialorder %v838_v23, 0.0 }
 0x294   :  { %vm871_vm1 = vcmp.ge.f32.partialorder %v839_v24, 0.0  ;;  %vm872_vm2 = vcmp.ge.f32.partialorder %v840_v25, 0.0  ;;  %v897_v45 = vmul.f32 0.2, %v833_v14  ;;  %v898_v46 = vmul.f32 0.2, %v834_v16 }
 0x295   :  { %v899_v49 = vmul.f32 0.2, %v835_v15  ;;  %v921_v52 = vsel %vm857_vm3, %v825_v30, %v889_v9  ;;  %v900_v61 = vmul.f32 0.2, %v836_v18  ;;  %v922_v55 = vsel %vm858_vm4, %v826_v35, %v890_v20 }
 0x296   :  { %v925_v60 = vsel %vm861_vm7, %v829_v53, %v893_v33  ;;  %v926_v62 = vsel %vm862_vm8, %v830_v10, %v894_v32  ;;  %v923_v13 = vsel %vm859_vm5, %v827_v29, %v891_v27  ;;  %v924_v2 = vsel %vm860_vm6, %v828_v47, %v892_v38 }
 0x297   :  { %v927_v51 = vsel %vm863_vm9, %v831_v0, %v895_v40  ;;  %v928_v7 = vsel %vm864_vm10, %v832_v11, %v896_v41  ;;  %v901_v1 = vmul.f32 0.2, %v837_v21  ;;  %v902_v4 = vmul.f32 0.2, %v838_v23 }
 0x298   :  { %v903_v8 = vmul.f32 0.2, %v839_v24  ;;  %v904_v28 = vmul.f32 0.2, %v840_v25  ;;  %v953_v31 = vadd.f32 %v925_v60, %v921_v52  ;;  %v954_v57 = vadd.f32 %v926_v62, %v922_v55 }
 0x299   :  { %v929_v63 = vsel %vm865_vm11, %v833_v14, %v897_v45  ;;  %v930_v36 = vsel %vm866_vm12, %v834_v16, %v898_v46  ;;  %v955_v30 = vadd.f32 %v927_v51, %v923_v13  ;;  %v956_v35 = vadd.f32 %v928_v7, %v924_v2 }
 0x29a   :  { %v931_v29 = vsel %vm867_vm13, %v835_v15, %v899_v49  ;;  %v932_v47 = vsel %vm868_vm14, %v836_v18, %v900_v61  ;;  %v961_v58 = vadd.f32 %v953_v31, %v929_v63  ;;  %v962_v53 = vadd.f32 %v954_v57, %v930_v36 }
 0x29b   :  { %v933_v10 = vsel %vm869_vm15, %v837_v21, %v901_v1  ;;  %v934_v6 = vsel %vm870_vm0, %v838_v23, %v902_v4  ;;  %v963_v0 = vadd.f32 %v955_v30, %v931_v29  ;;  %v964_v11 = vadd.f32 %v956_v35, %v932_v47 }
 0x29c   :  { %v935_v9 = vsel %vm871_vm1, %v839_v24, %v903_v8  ;;  %v936_v14 = vsel %vm872_vm2, %v840_v25, %v904_v28  ;;  %v969_v20 = vadd.f32 %v961_v58, %v933_v10  ;;  %v970_v16 = vadd.f32 %v962_v53, %v934_v6 }
 0x29d   :  { %v971_v27 = vadd.f32 %v963_v0, %v935_v9  ;;  %v972_v33 = vadd.f32 %v964_v11, %v936_v14  ;;  %v843_v15 = vadd.f32 %v1645_v54, %v1598_v43  ;;  %v844_v18 = vadd.f32 %v1645_v54, %v1602_v50 }
 0x29e   :  { %v977_v32 = vmul.f32 0.25, %v969_v20  ;;  %v978_v21 = vmul.f32 0.25, %v970_v16  ;;  %v845_v23 = vadd.f32 %v1645_v54, %v1606_v56  ;;  %v846_v24 = vadd.f32 %v1645_v54, %v1610_v37 }
 0x29f   :  { %v979_v38 = vmul.f32 0.25, %v971_v27  ;;  %v980_v25 = vmul.f32 0.25, %v972_v33  ;;  %v847_v40 = vadd.f32 %v1645_v54, %v1614_v44  ;;  %v848_v41 = vadd.f32 %v1645_v54, %v1618_v39 }
 0x2a0   :  { %985 = vst [vmem:[%s1752_s4] sm:$0xff] %v977_v32  ;;  %986 = vst [vmem:[%s1752_s4 + $0x8] sm:$0xff] %v978_v21  ;;  %v813_v43 = vmul.f32 %v1572_v59, %v1523_v3  ;;  %v814_v50 = vmul.f32 %v1572_v59, %v1541_v19  ;;  %v849_v56 = vadd.f32 %v1645_v54, %v1622_v48  ;;  %vm873_vm3 = vcmp.ge.f32.partialorder %v1656_v26, 0.0 }
 0x2a1   :  { %v850_v37 = vadd.f32 %v1645_v54, %v1626_v12  ;;  %987 = vst [vmem:[%s1752_s4 + $0x10] sm:$0xff] %v979_v38  ;;  %988 = vst [vmem:[%s1752_s4 + $0x18] sm:$0xff] %v980_v25  ;;  %v851_v3 = vadd.f32 %v1645_v54, %v1630_v22  ;;  %v852_v19 = vadd.f32 %v1645_v54, %v1634_v17  ;;  %vm874_vm4 = vcmp.ge.f32.partialorder %v1660_v5, 0.0 }
 0x2a2   :  { %v853_v59 = vadd.f32 %v1645_v54, %v1638_v34  ;;  %v854_v44 = vadd.f32 %v1645_v54, %v1642_v42  ;;  %vm875_vm5 = vcmp.ge.f32.partialorder %v843_v15, 0.0  ;;  %vm876_vm6 = vcmp.ge.f32.partialorder %v844_v18, 0.0 }
 0x2a3   :  { %vm877_vm7 = vcmp.ge.f32.partialorder %v845_v23, 0.0  ;;  %vm878_vm8 = vcmp.ge.f32.partialorder %v846_v24, 0.0  ;;  %vm879_vm9 = vcmp.ge.f32.partialorder %v847_v40, 0.0  ;;  %vm880_vm10 = vcmp.ge.f32.partialorder %v848_v41, 0.0 }
 0x2a4   :  { %vm881_vm11 = vcmp.ge.f32.partialorder %v849_v56, 0.0  ;;  %vm882_vm12 = vcmp.ge.f32.partialorder %v850_v37, 0.0  ;;  %v905_v39 = vmul.f32 0.2, %v1656_v26  ;;  %v906_v48 = vmul.f32 0.2, %v1660_v5 }
 0x2a5   :  { %v855_v12 = vadd.f32 %v1645_v54, %v813_v43  ;;  %v907_v22 = vmul.f32 0.2, %v843_v15  ;;  %v909_v17 = vmul.f32 0.2, %v845_v23  ;;  %v910_v34 = vmul.f32 0.2, %v846_v24 }
 0x2a6   :  { %v856_v42 = vadd.f32 %v1645_v54, %v814_v50  ;;  %v908_v45 = vmul.f32 0.2, %v844_v18  ;;  %v911_v46 = vmul.f32 0.2, %v847_v40  ;;  %v912_v49 = vmul.f32 0.2, %v848_v41 }
 0x2a7   :  { %vm883_vm13 = vcmp.ge.f32.partialorder %v851_v3, 0.0  ;;  %vm884_vm14 = vcmp.ge.f32.partialorder %v852_v19, 0.0  ;;  %vm885_vm15 = vcmp.ge.f32.partialorder %v853_v59, 0.0  ;;  %vm886_vm0 = vcmp.ge.f32.partialorder %v854_v44, 0.0 }
 0x2a8   :  { %v913_v52 = vmul.f32 0.2, %v849_v56  ;;  %v914_v61 = vmul.f32 0.2, %v850_v37  ;;  %v915_v55 = vmul.f32 0.2, %v851_v3  ;;  %v937_v60 = vsel %vm873_vm3, %v1656_v26, %v905_v39 }
 0x2a9   :  { %v916_v62 = vmul.f32 0.2, %v852_v19  ;;  %v938_v13 = vsel %vm874_vm4, %v1660_v5, %v906_v48  ;;  %v941_v54 = vsel %vm877_vm7, %v845_v23, %v909_v17  ;;  %v942_v2 = vsel %vm878_vm8, %v846_v24, %v910_v34 }
 0x2aa   :  { %v939_v51 = vsel %vm875_vm5, %v843_v15, %v907_v22  ;;  %v940_v7 = vsel %vm876_vm6, %v844_v18, %v908_v45  ;;  %v943_v1 = vsel %vm879_vm9, %v847_v40, %v911_v46  ;;  %v944_v4 = vsel %vm880_vm10, %v848_v41, %v912_v49 }
 0x2ab   :  { %vm887_vm1 = vcmp.ge.f32.partialorder %v855_v12, 0.0  ;;  %vm888_vm2 = vcmp.ge.f32.partialorder %v856_v42, 0.0  ;;  %v917_v26 = vmul.f32 0.2, %v853_v59  ;;  %v918_v8 = vmul.f32 0.2, %v854_v44 }
 0x2ac   :  { %v919_v28 = vmul.f32 0.2, %v855_v12  ;;  %v920_v31 = vmul.f32 0.2, %v856_v42  ;;  %v957_v57 = vadd.f32 %v941_v54, %v937_v60  ;;  %v958_v5 = vadd.f32 %v942_v2, %v938_v13 }
 0x2ad   :  { %v945_v63 = vsel %vm881_vm11, %v849_v56, %v913_v52  ;;  %v946_v36 = vsel %vm882_vm12, %v850_v37, %v914_v61  ;;  %v959_v30 = vadd.f32 %v943_v1, %v939_v51  ;;  %v960_v35 = vadd.f32 %v944_v4, %v940_v7 }
 0x2ae   :  { %v947_v29 = vsel %vm883_vm13, %v851_v3, %v915_v55  ;;  %v948_v47 = vsel %vm884_vm14, %v852_v19, %v916_v62  ;;  %v965_v58 = vadd.f32 %v957_v57, %v945_v63  ;;  %v966_v53 = vadd.f32 %v958_v5, %v946_v36 }
 0x2af   :  { %v949_v10 = vsel %vm885_vm15, %v853_v59, %v917_v26  ;;  %v950_v6 = vsel %vm886_vm0, %v854_v44, %v918_v8  ;;  %v967_v0 = vadd.f32 %v959_v30, %v947_v29  ;;  %v968_v11 = vadd.f32 %v960_v35, %v948_v47 }
 0x2b0   :  { %v951_v9 = vsel %vm887_vm1, %v855_v12, %v919_v28  ;;  %v952_v14 = vsel %vm888_vm2, %v856_v42, %v920_v31  ;;  %v973_v20 = vadd.f32 %v965_v58, %v949_v10  ;;  %v974_v16 = vadd.f32 %v966_v53, %v950_v6 }
 0x2b1   :  { %v975_v27 = vadd.f32 %v967_v0, %v951_v9  ;;  %v976_v33 = vadd.f32 %v968_v11, %v952_v14 }
 0x2b2   :  { %v981_v15 = vmul.f32 0.25, %v973_v20  ;;  %v982_v18 = vmul.f32 0.25, %v974_v16 }
 0x2b3   :  { %v983_v32 = vmul.f32 0.25, %v975_v27  ;;  %v984_v21 = vmul.f32 0.25, %v976_v33 }
 0x2b4   :  { %989 = vst [vmem:[%s1752_s4 + $0x20] sm:$0xff] %v981_v15  ;;  %990 = vst [vmem:[%s1752_s4 + $0x28] sm:$0xff] %v982_v18 }
 0x2b5   :  { %991 = vst [vmem:[%s1752_s4 + $0x30] sm:$0xff] %v983_v32  ;;  %992 = vst [vmem:[%s1752_s4 + $0x38] sm:$0xff] %v984_v21 }

// kernel: encoder_r_forward.5
= control target key start
LH: loop header
LB: loop body
LE: loop exit
PB: predicated region body
PF: predicated region fallthrough
CT: control target
= control target key end

     0   :  { %v791_v1 = vmov 0   ;;  %vm279_vm0 = vcmask 130048   ;;  %s1158_s0 = inlined_call_operand.vmem [shape: bf16[144,512], index: 0, kind: input, shape index: {}]   ;;  %s1159_s1 = inlined_call_operand.vmem [shape: bf16[32,144], index: 1, kind: input, shape index: {}]   ;;  %s1160_s2 = inlined_call_operand.vmem [shape: f32[32,3], index: 2, kind: input, shape index: {}]   ;;  %s1161_s3 = inlined_call_operand.vmem [shape: f32[32,512], index: 3, kind: output, shape index: {0}]   ;;  %s1162_s4 = inlined_call_operand.vmem [shape: f32[32,128], index: 4, kind: output, shape index: {1}]  }
   0x1   :  { %v723_v0 = vld [vmem:[%s1158_s0 + $0xe4] ss:$16 sps:$4 sm:$0xff]   ;;  %717 = vset.pattern.permute.xlu0 %v791_v1  ;;  %718 = vset.pattern.permute.xlu1 %v791_v1  ;;  %v725_v2 = vld [vmem:[%s1158_s0 + $0xec] ss:$16 sps:$4 sm:$0xff]   ;;  %v727_v3 = vld [vmem:[%s1158_s0 + $0xe0] ss:$16 sps:$4 sm:$0xff]  }
   0x2   :  { %286 = vmatprep.subr.bf16.mxu0 %v723_v0  ;;  %v728_v4 = vld [vmem:[%s1158_s0 + $0xe8] ss:$16 sps:$4 sm:$0xff]   ;;  %339 = vmatprep.subr.bf16.mxu1 %v725_v2  ;;  %v729_v5 = vld [vmem:[%s1158_s0 + $0xc4] ss:$16 sps:$4 sm:$0xff]   ;;  %v731_v6 = vld [vmem:[%s1158_s0 + $0xcc] ss:$16 sps:$4 sm:$0xff]  }
   0x3   :  { %287 = vmatpush1.bf16.msra.mxu0 %v727_v3  ;;  %340 = vmatpush1.bf16.msra.mxu1 %v728_v4  ;;  %v733_v7 = vld [vmem:[%s1158_s0 + $0xc0] ss:$16 sps:$4 sm:$0xff]   ;;  %v734_v8 = vld [vmem:[%s1158_s0 + $0xc8] ss:$16 sps:$4 sm:$0xff]   ;;  %v735_v9 = vld [vmem:[%s1158_s0 + $0xa4] ss:$16 sps:$4 sm:$0xff]  }
   0x4   :  { %288 = vmatprep.subr.bf16.mxu0 %v729_v5  ;;  %341 = vmatprep.subr.bf16.mxu1 %v731_v6  ;;  %v737_v10 = vld [vmem:[%s1158_s0 + $0xac] ss:$16 sps:$4 sm:$0xff]   ;;  %v739_v11 = vld [vmem:[%s1158_s0 + $0xa0] ss:$16 sps:$4 sm:$0xff]   ;;  %v740_v12 = vld [vmem:[%s1158_s0 + $0xa8] ss:$16 sps:$4 sm:$0xff]  }
   0x5   :  { %v741_v13 = vld [vmem:[%s1158_s0 + $0x84] ss:$16 sps:$4 sm:$0xff]   ;;  %v743_v14 = vld [vmem:[%s1158_s0 + $0x8c] ss:$16 sps:$4 sm:$0xff]   ;;  %v745_v15 = vld [vmem:[%s1158_s0 + $0x80] ss:$16 sps:$4 sm:$0xff]  }
   0x6   :  { %v746_v16 = vld [vmem:[%s1158_s0 + $0x88] ss:$16 sps:$4 sm:$0xff]   ;;  %v747_v17 = vld [vmem:[%s1158_s0 + $0x64] ss:$16 sps:$4 sm:$0xff]   ;;  %v749_v18 = vld [vmem:[%s1158_s0 + $0x6c] ss:$16 sps:$4 sm:$0xff]  }
   0x7   :  { %289 = vmatpush1.bf16.msra.mxu0 %v733_v7  ;;  %342 = vmatpush1.bf16.msra.mxu1 %v734_v8  ;;  %v751_v19 = vld [vmem:[%s1158_s0 + $0x60] ss:$16 sps:$4 sm:$0xff]   ;;  %v752_v20 = vld [vmem:[%s1158_s0 + $0x68] ss:$16 sps:$4 sm:$0xff]   ;;  %v753_v21 = vld [vmem:[%s1158_s0 + $0x44] ss:$16 sps:$4 sm:$0xff]  }
   0x8   :  { %290 = vmatprep.subr.bf16.mxu0 %v735_v9  ;;  %343 = vmatprep.subr.bf16.mxu1 %v737_v10  ;;  %v755_v22 = vld [vmem:[%s1158_s0 + $0x4c] ss:$16 sps:$4 sm:$0xff]   ;;  %v757_v23 = vld [vmem:[%s1158_s0 + $0x40] ss:$16 sps:$4 sm:$0xff]   ;;  %v758_v24 = vld [vmem:[%s1158_s0 + $0x48] ss:$16 sps:$4 sm:$0xff]  }
   0x9   :  { %v759_v25 = vld [vmem:[%s1158_s0 + $0x24] ss:$16 sps:$4 sm:$0xff]   ;;  %v761_v26 = vld [vmem:[%s1158_s0 + $0x2c] ss:$16 sps:$4 sm:$0xff]   ;;  %v763_v27 = vld [vmem:[%s1158_s0 + $0x20] ss:$16 sps:$4 sm:$0xff]  }
   0xa   :  { %v764_v28 = vld [vmem:[%s1158_s0 + $0x28] ss:$16 sps:$4 sm:$0xff]   ;;  %v765_v29 = vld [vmem:[%s1158_s0 + $0x4] ss:$16 sps:$4 sm:$0xff]   ;;  %v767_v30 = vld [vmem:[%s1158_s0 + $0xc] ss:$16 sps:$4 sm:$0xff]  }
   0xb   :  { %291 = vmatpush1.bf16.msra.mxu0 %v739_v11  ;;  %344 = vmatpush1.bf16.msra.mxu1 %v740_v12  ;;  %v779_v31 = vld [vmem:[%s1159_s1 + $0x4] ss:$8 sps:$4 sm:$0xff]   ;;  %v923_v33 = vld [vmem:[%s1160_s2 + $0x10] sm:$0xff]  ;;  %v770_v35 = vld [vmem:[%s1158_s0 + $0x8] ss:$16 sps:$4 sm:$0xff]  }
   0xc   :  { %292 = vmatprep.subr.bf16.mxu0 %v741_v13  ;;  %345 = vmatprep.subr.bf16.mxu1 %v743_v14  ;;  %v918_v32 = vld [vmem:[%s1160_s2] sm:$0xff]  ;;  %v773_v37 = vld [vmem:[%s1158_s0 + $0x10c] ss:$16 sps:$4 sm:$0xff]   ;;  %v776_v41 = vld [vmem:[%s1158_s0 + $0x108] ss:$16 sps:$4 sm:$0xff]  }
   0xd   :  { %709 = vmatprep.mubr.msk.bf16.mxu0 %vm279_vm0, %v779_v31  ;;  %711 = vmatprep.mubr.msk.bf16.mxu1 %vm279_vm0, %v779_v31  ;;  %v769_v34 = vld [vmem:[%s1158_s0] ss:$16 sps:$4 sm:$0xff]   ;;  %v771_v36 = vld [vmem:[%s1158_s0 + $0x104] ss:$16 sps:$4 sm:$0xff]   ;;  %v942_v38 = vld [vmem:[%s1160_s2 + $0x8] sm:$0xff] }
   0xe   :  { %63 = vperm.xlu0 %717, %v918_v32   ;;  %73 = vperm.xlu1 %718, %v923_v33   ;;  %v947_v39 = vld [vmem:[%s1160_s2 + $0x18] sm:$0xff]  ;;  %v775_v40 = vld [vmem:[%s1158_s0 + $0x100] ss:$16 sps:$4 sm:$0xff]  }
   0xf   :  { %293 = vmatpush1.bf16.msra.mxu0 %v745_v15  ;;  %346 = vmatpush1.bf16.msra.mxu1 %v746_v16  ;;  %v777_v42 = vld [vmem:[%s1159_s1] ss:$8 sps:$4 sm:$0xff]   ;;  %v780_v43 = vld [vmem:[%s1159_s1 + $0x14] ss:$8 sps:$4 sm:$0xff]   ;;  %v782_v44 = vld [vmem:[%s1159_s1 + $0x10] ss:$8 sps:$4 sm:$0xff]  }
  0x10   :  { %294 = vmatprep.subr.bf16.mxu0 %v747_v17  ;;  %347 = vmatprep.subr.bf16.mxu1 %v749_v18 }
  0x12   :  { %68 = vperm.xlu0 %717, %v942_v38   ;;  %78 = vperm.xlu1 %718, %v947_v39  }
  0x13   :  { %295 = vmatpush1.bf16.msra.mxu0 %v751_v19  ;;  %348 = vmatpush1.bf16.msra.mxu1 %v752_v20 }
  0x14   :  { %296 = vmatprep.subr.bf16.mxu0 %v753_v21  ;;  %349 = vmatprep.subr.bf16.mxu1 %v755_v22 }
  0x17   :  { %297 = vmatpush1.bf16.msra.mxu0 %v757_v23  ;;  %350 = vmatpush1.bf16.msra.mxu1 %v758_v24 }
  0x18   :  { %298 = vmatprep.subr.bf16.mxu0 %v759_v25  ;;  %351 = vmatprep.subr.bf16.mxu1 %v761_v26 }
  0x1b   :  { %299 = vmatpush1.bf16.msra.mxu0 %v763_v27  ;;  %352 = vmatpush1.bf16.msra.mxu1 %v764_v28 }
  0x1c   :  { %300 = vmatprep.subr.bf16.mxu0 %v765_v29  ;;  %353 = vmatprep.subr.bf16.mxu1 %v767_v30 }
  0x1f   :  { %301 = vmatpush1.bf16.msra.mxu0 %v769_v34  ;;  %354 = vmatpush1.bf16.msra.mxu1 %v770_v35 }
  0x20   :  { %316 = vmatprep.subr.bf16.mxu0 %v771_v36  ;;  %369 = vmatprep.subr.bf16.mxu1 %v773_v37 }
  0x23   :  { %317 = vmatpush2.bf16.msra.mxu0 %v775_v40  ;;  %370 = vmatpush2.bf16.msra.mxu1 %v776_v41 }
  0x26   :  { %319 = vmatmul.mubr.bf16.vlgmr.msra.gmra.mxu0 %v777_v42  ;;  %372 = vmatmul.mubr.bf16.vlgmr.msra.gmra.mxu1 %v777_v42 }
  0x27   :  { %710 = vmatprep.mubr.msk.bf16.mxu0 %vm279_vm0, %v780_v43  ;;  %712 = vmatprep.mubr.msk.bf16.mxu1 %vm279_vm0, %v780_v43 }
  0x2e   :  { %329 = vmatmul.mubr.bf16.gmra.mxu0 %v782_v44  ;;  %382 = vmatmul.mubr.bf16.gmra.mxu1 %v782_v44 }
  0x89   :  { %v64_v45 = vpop.permute.xlu0 %63  ;;  %v74_v55 = vpop.permute.xlu1 %73 }
  0x8d   :  { %v69_v52 = vpop.permute.xlu0 %68  ;;  %v79_v12 = vpop.permute.xlu1 %78 }
  0xe6   :  { %v320_v46 = vpop.f32.mrf.mxu0  ;;  %v373_v47 = vpop.f32.mrf.mxu1 }
  0xe7   :  { %v968_v48 = vadd.f32 %v320_v46, %v64_v45  ;;  %v970_v49 = vadd.f32 %v373_v47, %v64_v45 }
  0xe8   :  { %v322_v50 = vpop.f32.mrf.mxu0  ;;  %v375_v51 = vpop.f32.mrf.mxu1 }
  0xe9   :  { %392 = vst [vmem:[%s1161_s3] sm:$0xff] %v968_v48  ;;  %394 = vst [vmem:[%s1161_s3 + $0x10] sm:$0xff] %v970_v49  ;;  %v980_v53 = vadd.f32 %v322_v50, %v64_v45  ;;  %v982_v54 = vadd.f32 %v375_v51, %v64_v45  ;;  %v433_v58 = vmul.f32 %v968_v48, %v968_v48 }
  0xea   :  { %v324_v56 = vpop.f32.mrf.mxu0  ;;  %v377_v57 = vpop.f32.mrf.mxu1  ;;  %v435_v1 = vmul.f32 %v970_v49, %v970_v49 }
  0xeb   :  { %393 = vst [vmem:[%s1161_s3 + $0x8] sm:$0xff] %v980_v53  ;;  %395 = vst [vmem:[%s1161_s3 + $0x18] sm:$0xff] %v982_v54  ;;  %v994_v59 = vadd.f32 %v324_v56, %v69_v52  ;;  %v996_v60 = vadd.f32 %v377_v57, %v69_v52  ;;  %v408_v61 = vadd.f32 %v980_v53, %v968_v48 }
  0xec   :  { %v434_v62 = vmul.f32 %v980_v53, %v980_v53  ;;  %v326_v63 = vpop.f32.mrf.mxu0  ;;  %v379_v0 = vpop.f32.mrf.mxu1  ;;  %v436_v8 = vmul.f32 %v982_v54, %v982_v54 }
  0xed   :  { %396 = vst [vmem:[%s1161_s3 + $0x20] sm:$0xff] %v994_v59  ;;  %398 = vst [vmem:[%s1161_s3 + $0x30] sm:$0xff] %v996_v60  ;;  %v1012_v2 = vadd.f32 %v326_v63, %v69_v52  ;;  %v1014_v3 = vadd.f32 %v379_v0, %v69_v52  ;;  %v409_v4 = vadd.f32 %v408_v61, %v970_v49 }
  0xee   :  { %v449_v5 = vadd.f32 %v434_v62, %v433_v58  ;;  %v330_v6 = vpop.f32.mrf.mxu0  ;;  %v383_v7 = vpop.f32.mrf.mxu1  ;;  %v437_v17 = vmul.f32 %v994_v59, %v994_v59  ;;  %v439_v26 = vmul.f32 %v996_v60, %v996_v60 }
  0xef   :  { %397 = vst [vmem:[%s1161_s3 + $0x28] sm:$0xff] %v1012_v2  ;;  %399 = vst [vmem:[%s1161_s3 + $0x38] sm:$0xff] %v1014_v3  ;;  %v1027_v9 = vadd.f32 %v330_v6, %v74_v55  ;;  %v1029_v10 = vadd.f32 %v383_v7, %v74_v55  ;;  %v410_v11 = vadd.f32 %v409_v4, %v982_v54 }
  0xf0   :  { %v450_v13 = vadd.f32 %v449_v5, %v435_v1  ;;  %v332_v14 = vpop.f32.mrf.mxu0  ;;  %v385_v15 = vpop.f32.mrf.mxu1  ;;  %v413_v16 = vadd.f32 %v1012_v2, %v994_v59  ;;  %v438_v18 = vmul.f32 %v1012_v2, %v1012_v2  ;;  %v440_v36 = vmul.f32 %v1014_v3, %v1014_v3 }
  0xf1   :  { %400 = vst [vmem:[%s1161_s3 + $0x40] sm:$0xff] %v1027_v9  ;;  %402 = vst [vmem:[%s1161_s3 + $0x50] sm:$0xff] %v1029_v10  ;;  %v1046_v19 = vadd.f32 %v332_v14, %v74_v55  ;;  %v1048_v20 = vadd.f32 %v385_v15, %v74_v55  ;;  %411 = vadd.xlane.f32.xlu0 %v410_v11  ;;  %v441_v22 = vmul.f32 %v1027_v9, %v1027_v9  ;;  %v792_v5 = vmov 1  }
  0xf2   :  { %v451_v21 = vadd.f32 %v450_v13, %v436_v8  ;;  %v334_v23 = vpop.f32.mrf.mxu0  ;;  %v387_v24 = vpop.f32.mrf.mxu1  ;;  %v414_v25 = vadd.f32 %v413_v16, %v996_v60  ;;  %v454_v27 = vadd.f32 %v438_v18, %v437_v17  ;;  %v443_v31 = vmul.f32 %v1029_v10, %v1029_v10  ;;  %719 = vset.pattern.permute.xlu0 %v792_v5 }
  0xf3   :  { %401 = vst [vmem:[%s1161_s3 + $0x48] sm:$0xff] %v1046_v19  ;;  %403 = vst [vmem:[%s1161_s3 + $0x58] sm:$0xff] %v1048_v20  ;;  %v1063_v28 = vadd.f32 %v334_v23, %v79_v12  ;;  %v1065_v29 = vadd.f32 %v387_v24, %v79_v12  ;;  %v442_v30 = vmul.f32 %v1046_v19, %v1046_v19  ;;  %720 = vset.pattern.permute.xlu1 %v792_v5 }
  0xf4   :  { %452 = vadd.xlane.f32.xlu1 %v451_v21  ;;  %v336_v34 = vpop.f32.mrf.mxu0  ;;  %v389_v35 = vpop.f32.mrf.mxu1  ;;  %v455_v37 = vadd.f32 %v454_v27, %v439_v26  ;;  %v418_v40 = vadd.f32 %v1046_v19, %v1027_v9  ;;  %v415_v43 = vadd.f32 %v414_v25, %v1014_v3  ;;  %v444_v47 = vmul.f32 %v1048_v20, %v1048_v20 }
  0xf5   :  { %404 = vst [vmem:[%s1161_s3 + $0x60] sm:$0xff] %v1063_v28  ;;  %406 = vst [vmem:[%s1161_s3 + $0x70] sm:$0xff] %v1065_v29  ;;  %v1083_v41 = vadd.f32 %v336_v34, %v79_v12  ;;  %v1085_v42 = vadd.f32 %v389_v35, %v79_v12  ;;  %v459_v44 = vadd.f32 %v442_v30, %v441_v22 }
  0xf6   :  { %v456_v45 = vadd.f32 %v455_v37, %v440_v36  ;;  %v419_v46 = vadd.f32 %v418_v40, %v1029_v10  ;;  %v445_v55 = vmul.f32 %v1063_v28, %v1063_v28  ;;  %v447_v62 = vmul.f32 %v1065_v29, %v1065_v29 }
  0xf7   :  { %405 = vst [vmem:[%s1161_s3 + $0x68] sm:$0xff] %v1083_v41  ;;  %407 = vst [vmem:[%s1161_s3 + $0x78] sm:$0xff] %v1085_v42  ;;  %v460_v50 = vadd.f32 %v459_v44, %v443_v31  ;;  %v423_v51 = vadd.f32 %v1083_v41, %v1063_v28  ;;  %v446_v52 = vmul.f32 %v1083_v41, %v1083_v41  ;;  %s793_s3 = smov 1  }
  0xf8   :  { %416 = vadd.xlane.f32.xlu1 %v415_v43  ;;  %457 = vadd.xlane.f32.xlu0 %v456_v45  ;;  %v420_v57 = vadd.f32 %v419_v46, %v1048_v20  ;;  %v448_v1 = vmul.f32 %v1085_v42, %v1085_v42 }
  0xf9   :  { %v461_v56 = vadd.f32 %v460_v50, %v444_v47  ;;  %v424_v58 = vadd.f32 %v423_v51, %v1065_v29  ;;  %v464_v61 = vadd.f32 %v446_v52, %v445_v55 }
  0xfb   :  { %v425_v63 = vadd.f32 %v424_v58, %v1085_v42  ;;  %v465_v0 = vadd.f32 %v464_v61, %v447_v62 }
  0xfc   :  { %462 = vadd.xlane.f32.xlu1 %v461_v56  ;;  %421 = vadd.xlane.f32.xlu0 %v420_v57 }
  0xfd   :  { %v466_v4 = vadd.f32 %v465_v0, %v448_v1 }
 0x100   :  { %426 = vadd.xlane.f32.xlu0 %v425_v63 }
 0x104   :  { %467 = vadd.xlane.f32.xlu0 %v466_v4 }
 0x17a   :  { %v412_v6 = vpop.xlane.xlu0 %411 }
 0x17b   :  { %v429_v7 = vmul.f32 0.001953125, %v412_v6  ;;  %v794_v6 = vmov 2  }
 0x17d   :  { %v453_v8 = vpop.xlane.xlu1 %452  ;;  %v473_v11 = vmul.f32 %v429_v7, %v429_v7 }
 0x17e   :  { %v469_v12 = vmul.f32 0.001953125, %v453_v8 }
 0x180   :  { %v477_v13 = vsub.f32 %v469_v12, %v473_v11 }
 0x181   :  { %v417_v14 = vpop.xlane.xlu1 %416  ;;  %v458_v17 = vpop.xlane.xlu0 %457 }
 0x182   :  { %v481_v15 = vmax.f32 %v477_v13, 0.0  ;;  %v430_v16 = vmul.f32 0.001953125, %v417_v14  ;;  %v470_v22 = vmul.f32 0.001953125, %v458_v17 }
 0x184   :  { %v485_v18 = vadd.f32 1e-05, %v481_v15  ;;  %v474_v21 = vmul.f32 %v430_v16, %v430_v16 }
 0x185   :  { %v463_v24 = vpop.xlane.xlu1 %462  ;;  %v422_v25 = vpop.xlane.xlu0 %421 }
 0x186   :  { %783 = vrsqrt.f32 %v485_v18  ;;  %v478_v23 = vsub.f32 %v470_v22, %v474_v21  ;;  %v431_v26 = vmul.f32 0.001953125, %v422_v25  ;;  %v471_v30 = vmul.f32 0.001953125, %v463_v24 }
 0x188   :  { %v482_v27 = vmax.f32 %v478_v23, 0.0  ;;  %v475_v31 = vmul.f32 %v431_v26, %v431_v26 }
 0x189   :  { %v427_v35 = vpop.xlane.xlu0 %426 }
 0x18a   :  { %v486_v34 = vadd.f32 1e-05, %v482_v27  ;;  %v479_v36 = vsub.f32 %v471_v30, %v475_v31  ;;  %v432_v37 = vmul.f32 0.001953125, %v427_v35 }
 0x18c   :  { %785 = vrsqrt.f32 %v486_v34  ;;  %v483_v40 = vmax.f32 %v479_v36, 0.0  ;;  %v476_v45 = vmul.f32 %v432_v37, %v432_v37 }
 0x18d   :  { %v468_v43 = vpop.xlane.xlu0 %467 }
 0x18e   :  { %v487_v44 = vadd.f32 1e-05, %v483_v40  ;;  %v472_v46 = vmul.f32 0.001953125, %v468_v43 }
 0x190   :  { %787 = vrsqrt.f32 %v487_v44  ;;  %v480_v47 = vsub.f32 %v472_v46, %v476_v45 }
 0x192   :  { %v484_v51 = vmax.f32 %v480_v47, 0.0 }
 0x193   :  { %v784_v50 = vpop.eup %783 }
 0x194   :  { %v493_v52 = vmul.f32 %v784_v50, %v918_v32  ;;  %v488_v55 = vadd.f32 1e-05, %v484_v51 }
 0x196   :  { %v497_v56 = vmul.f32 %v493_v52, %v429_v7  ;;  %789 = vrsqrt.f32 %v488_v55 }
 0x198   :  { %505 = vrot.lane.b32.xlu1 %v497_v56, %s793_s3 }
 0x199   :  { %v786_v57 = vpop.eup %785 }
 0x19a   :  { %v494_v58 = vmul.f32 %v786_v57, %v942_v38 }
 0x19c   :  { %v498_v61 = vmul.f32 %v494_v58, %v430_v16 }
 0x19d   :  { %v788_v62 = vpop.eup %787 }
 0x19e   :  { %507 = vrot.lane.b32.xlu0 %v498_v61, %s793_s3  ;;  %v495_v63 = vmul.f32 %v788_v62, %v923_v33 }
 0x1a0   :  { %v499_v0 = vmul.f32 %v495_v63, %v431_v26 }
 0x1a2   :  { %523 = vperm.xlu0 %719, %v493_v52   ;;  %509 = vrot.lane.b32.xlu1 %v499_v0, %s793_s3 }
 0x1a3   :  { %v790_v1 = vpop.eup %789 }
 0x1a4   :  { %v496_v4 = vmul.f32 %v790_v1, %v947_v39 }
 0x1a6   :  { %538 = vperm.xlu0 %719, %v496_v4   ;;  %v500_v5 = vmul.f32 %v496_v4, %v432_v37 }
 0x1a8   :  { %511 = vrot.lane.b32.xlu1 %v500_v5, %s793_s3 }
 0x1aa   :  { %722 = vset.pattern.permute.xlu0 %v794_v6 }
 0x1ac   :  { %528 = vperm.xlu1 %720, %v494_v58  }
 0x1b0   :  { %533 = vperm.xlu1 %720, %v495_v63  }
 0x1b4   :  { %721 = vset.pattern.permute.xlu1 %v794_v6 }
 0x20a   :  { %v506_v7 = vpop.permute.xlu1 %505 }
 0x20b   :  { %v517_v8 = vsub.f32 %v918_v32, %v506_v7 }
 0x20d   :  { %559 = vperm.xlu1 %721, %v517_v8  }
 0x210   :  { %v508_v11 = vpop.permute.xlu0 %507 }
 0x211   :  { %v518_v12 = vsub.f32 %v942_v38, %v508_v11 }
 0x213   :  { %564 = vperm.xlu0 %722, %v518_v12  }
 0x214   :  { %v510_v13 = vpop.permute.xlu1 %509 }
 0x215   :  { %v519_v14 = vsub.f32 %v923_v33, %v510_v13 }
 0x217   :  { %569 = vperm.xlu1 %721, %v519_v14  }
 0x21a   :  { %v512_v15 = vpop.permute.xlu1 %511 }
 0x21b   :  { %v520_v16 = vsub.f32 %v947_v39, %v512_v15 }
 0x21d   :  { %574 = vperm.xlu1 %721, %v520_v16   ;;  %v524_v18 = vpop.permute.xlu0 %523 }
 0x21e   :  { %v541_v22 = vmul.f32 %v524_v18, %v968_v48  ;;  %v542_v32 = vmul.f32 %v524_v18, %v980_v53  ;;  %v543_v23 = vmul.f32 %v524_v18, %v970_v49  ;;  %v544_v38 = vmul.f32 %v524_v18, %v982_v54 }
 0x221   :  { %v1124_v24 = vpop.permute.xlu0 %538 }
 0x222   :  { %v1129_v48 = vmul.f32 %v1124_v24, %v1063_v28  ;;  %v554_v12 = vmul.f32 %v1124_v24, %v1083_v41  ;;  %v555_v15 = vmul.f32 %v1124_v24, %v1065_v29 }
 0x227   :  { %v529_v17 = vpop.permute.xlu1 %528 }
 0x228   :  { %v545_v39 = vmul.f32 %v529_v17, %v994_v59  ;;  %v546_v54 = vmul.f32 %v529_v17, %v1012_v2  ;;  %v547_v35 = vmul.f32 %v529_v17, %v996_v60  ;;  %v548_v36 = vmul.f32 %v529_v17, %v1014_v3 }
 0x22b   :  { %v534_v21 = vpop.permute.xlu1 %533 }
 0x22c   :  { %v549_v34 = vmul.f32 %v534_v21, %v1027_v9  ;;  %v550_v37 = vmul.f32 %v534_v21, %v1046_v19  ;;  %v551_v47 = vmul.f32 %v534_v21, %v1029_v10  ;;  %v552_v55 = vmul.f32 %v534_v21, %v1048_v20 }
 0x288   :  { %v560_v25 = vpop.permute.xlu1 %559 }
 0x289   :  { %v577_v33 = vadd.f32 %v560_v25, %v541_v22  ;;  %v578_v26 = vadd.f32 %v560_v25, %v542_v32  ;;  %v579_v27 = vadd.f32 %v560_v25, %v543_v23  ;;  %v580_v30 = vadd.f32 %v560_v25, %v544_v38 }
 0x28a   :  { %v556_v22 = vmul.f32 %v1124_v24, %v1085_v42 }
 0x28b   :  { %vm593_vm1 = vcmp.ge.f32.partialorder %v577_v33, 0.0  ;;  %vm594_vm2 = vcmp.ge.f32.partialorder %v578_v26, 0.0  ;;  %v609_v53 = vmul.f32 0.2, %v577_v33  ;;  %v610_v31 = vmul.f32 0.2, %v578_v26 }
 0x28c   :  { %v611_v49 = vmul.f32 0.2, %v579_v27  ;;  %vm595_vm3 = vcmp.ge.f32.partialorder %v579_v27, 0.0  ;;  %v612_v40 = vmul.f32 0.2, %v580_v30  ;;  %vm596_vm4 = vcmp.ge.f32.partialorder %v580_v30, 0.0 }
 0x28d   :  { %v625_v59 = vsel %vm593_vm1, %v577_v33, %v609_v53  ;;  %v626_v43 = vsel %vm594_vm2, %v578_v26, %v610_v31 }
 0x28e   :  { %v565_v44 = vpop.permute.xlu0 %564  ;;  %v641_v28 = vadd.f32 %v626_v43, %v625_v59  ;;  %v627_v2 = vsel %vm595_vm3, %v579_v27, %v611_v49  ;;  %v628_v3 = vsel %vm596_vm4, %v580_v30, %v612_v40 }
 0x28f   :  { %v581_v45 = vadd.f32 %v565_v44, %v545_v39  ;;  %v582_v46 = vadd.f32 %v565_v44, %v546_v54  ;;  %v583_v50 = vadd.f32 %v565_v44, %v547_v35  ;;  %v584_v9 = vadd.f32 %v565_v44, %v548_v36 }
 0x290   :  { %v645_v51 = vadd.f32 %v641_v28, %v627_v2 }
 0x291   :  { %vm597_vm5 = vcmp.ge.f32.partialorder %v581_v45, 0.0  ;;  %vm598_vm6 = vcmp.ge.f32.partialorder %v582_v46, 0.0  ;;  %v613_v60 = vmul.f32 0.2, %v581_v45  ;;  %vm599_vm7 = vcmp.ge.f32.partialorder %v583_v50, 0.0 }
 0x292   :  { %v614_v19 = vmul.f32 0.2, %v582_v46  ;;  %v615_v52 = vmul.f32 0.2, %v583_v50  ;;  %v649_v56 = vadd.f32 %v645_v51, %v628_v3  ;;  %vm600_vm8 = vcmp.ge.f32.partialorder %v584_v9, 0.0  ;;  %v570_v58 = vpop.permute.xlu1 %569 }
 0x293   :  { %v629_v57 = vsel %vm597_vm5, %v581_v45, %v613_v60  ;;  %v616_v61 = vmul.f32 0.2, %v584_v9  ;;  %v585_v10 = vadd.f32 %v570_v58, %v549_v34  ;;  %v586_v63 = vadd.f32 %v570_v58, %v550_v37 }
 0x294   :  { %v630_v62 = vsel %vm598_vm6, %v582_v46, %v614_v19  ;;  %v653_v0 = vmul.f32 0.25, %v649_v56  ;;  %v631_v1 = vsel %vm599_vm7, %v583_v50, %v615_v52  ;;  %v587_v5 = vadd.f32 %v570_v58, %v551_v47 }
 0x295   :  { %v642_v4 = vadd.f32 %v630_v62, %v629_v57  ;;  %v588_v6 = vadd.f32 %v570_v58, %v552_v55  ;;  %vm601_vm9 = vcmp.ge.f32.partialorder %v585_v10, 0.0  ;;  %vm602_vm10 = vcmp.ge.f32.partialorder %v586_v63, 0.0 }
 0x296   :  { %v617_v7 = vmul.f32 0.2, %v585_v10  ;;  %657 = vst [vmem:[%s1162_s4] sm:$0xff] %v653_v0  ;;  %v618_v8 = vmul.f32 0.2, %v586_v63  ;;  %v619_v11 = vmul.f32 0.2, %v587_v5  ;;  %v632_v13 = vsel %vm600_vm8, %v584_v9, %v616_v61 }
 0x297   :  { %v646_v20 = vadd.f32 %v642_v4, %v631_v1  ;;  %vm603_vm11 = vcmp.ge.f32.partialorder %v587_v5, 0.0  ;;  %v620_v17 = vmul.f32 0.2, %v588_v6  ;;  %vm604_vm12 = vcmp.ge.f32.partialorder %v588_v6, 0.0 }
 0x298   :  { %v633_v14 = vsel %vm601_vm9, %v585_v10, %v617_v7  ;;  %v634_v18 = vsel %vm602_vm10, %v586_v63, %v618_v8  ;;  %v575_v21 = vpop.permute.xlu1 %574  ;;  %v635_v25 = vsel %vm603_vm11, %v587_v5, %v619_v11 }
 0x299   :  { %v650_v16 = vadd.f32 %v646_v20, %v632_v13  ;;  %v643_v32 = vadd.f32 %v634_v18, %v633_v14  ;;  %v589_v23 = vadd.f32 %v575_v21, %v1129_v48  ;;  %v590_v38 = vadd.f32 %v575_v21, %v554_v12 }
 0x29a   :  { %v591_v33 = vadd.f32 %v575_v21, %v555_v15  ;;  %v592_v26 = vadd.f32 %v575_v21, %v556_v22  ;;  %v636_v30 = vsel %vm604_vm12, %v588_v6, %v620_v17 }
 0x29b   :  { %v654_v41 = vmul.f32 0.25, %v650_v16  ;;  %v647_v27 = vadd.f32 %v643_v32, %v635_v25  ;;  %vm605_vm13 = vcmp.ge.f32.partialorder %v589_v23, 0.0  ;;  %vm606_vm14 = vcmp.ge.f32.partialorder %v590_v38, 0.0 }
 0x29c   :  { %v621_v29 = vmul.f32 0.2, %v589_v23  ;;  %v622_v39 = vmul.f32 0.2, %v590_v38  ;;  %v623_v42 = vmul.f32 0.2, %v591_v33 }
 0x29d   :  { %658 = vst [vmem:[%s1162_s4 + $0x8] sm:$0xff] %v654_v41  ;;  %v651_v24 = vadd.f32 %v647_v27, %v636_v30  ;;  %vm607_vm15 = vcmp.ge.f32.partialorder %v591_v33, 0.0  ;;  %v624_v48 = vmul.f32 0.2, %v592_v26  ;;  %vm608_vm0 = vcmp.ge.f32.partialorder %v592_v26, 0.0 }
 0x29e   :  { %v637_v53 = vsel %vm605_vm13, %v589_v23, %v621_v29  ;;  %v638_v31 = vsel %vm606_vm14, %v590_v38, %v622_v39  ;;  %v639_v34 = vsel %vm607_vm15, %v591_v33, %v623_v42 }
 0x29f   :  { %v655_v49 = vmul.f32 0.25, %v651_v24  ;;  %v644_v54 = vadd.f32 %v638_v31, %v637_v53  ;;  %v640_v36 = vsel %vm608_vm0, %v592_v26, %v624_v48 }
 0x2a1   :  { %659 = vst [vmem:[%s1162_s4 + $0x10] sm:$0xff] %v655_v49  ;;  %v648_v35 = vadd.f32 %v644_v54, %v639_v34 }
 0x2a3   :  { %v652_v37 = vadd.f32 %v648_v35, %v640_v36 }
 0x2a5   :  { %v656_v40 = vmul.f32 0.25, %v652_v37 }
 0x2a7   :  { %660 = vst [vmem:[%s1162_s4 + $0x18] sm:$0xff] %v656_v40 }

// kernel: encoder_r_forward.6
= control target key start
LH: loop header
LB: loop body
LE: loop exit
PB: predicated region body
PF: predicated region fallthrough
CT: control target
= control target key end

     0   :  { %v1008_v1 = vmov 0   ;;  %vm285_vm0 = vcmask 261120   ;;  %s1012_s25 = smov 96   ;;  %s1013_s26 = smov 64   ;;  %s1388_s0 = inlined_call_operand.vmem [shape: bf16[288,128], index: 0, kind: input, shape index: {}]   ;;  %s1389_s1 = inlined_call_operand.vmem [shape: bf16[64,288], index: 1, kind: input, shape index: {}]   ;;  %s1390_s2 = inlined_call_operand.vmem [shape: f32[64,3], index: 2, kind: input, shape index: {}]   ;;  %s1391_s3 = inlined_call_operand.vmem [shape: f32[64,128], index: 3, kind: output, shape index: {0}]   ;;  %s1392_s4 = inlined_call_operand.vmem [shape: f32[64,32], index: 4, kind: output, shape index: {1}]  }
   0x1   :  { %v958_v0 = vld [vmem:[%s1388_s0 + $0x78] sm:$0xff]   ;;  %952 = vset.pattern.permute.xlu0 %v1008_v1  ;;  %953 = vset.pattern.permute.xlu1 %v1008_v1  ;;  %v960_v3 = vld [vmem:[%s1388_s0 + $0x70] sm:$0xff]   ;;  %v962_v5 = vld [vmem:[%s1388_s0 + $0x68] sm:$0xff]   ;;  %s1014_s27 = smov 32  }
   0x2   :  { %v959_v2 = vld [vmem:[%s1388_s0 + $0x38] sm:$0xff]   ;;  %871 = vmatprep.subr.bf16.mxu0 %v958_v0  ;;  %929 = vmatprep.subr.bf16.mxu1 %v958_v0  ;;  %v961_v4 = vld [vmem:[%s1388_s0 + $0x30] sm:$0xff]   ;;  %v963_v6 = vld [vmem:[%s1388_s0 + $0x28] sm:$0xff]  }
   0x3   :  { %872 = vmatpush3.bf16.msra.mxu0 %v959_v2  ;;  %937 = vmatpush3.bf16.msra.mxu1 %v959_v2  ;;  %v964_v7 = vld [vmem:[%s1388_s0 + $0x60] sm:$0xff]   ;;  %v966_v9 = vld [vmem:[%s1388_s0 + $0x58] sm:$0xff]   ;;  %v968_v11 = vld [vmem:[%s1388_s0 + $0x50] sm:$0xff]  }
   0x4   :  { %873 = vmatprep.subr.bf16.mxu0 %v960_v3  ;;  %930 = vmatprep.subr.bf16.mxu1 %v960_v3  ;;  %v965_v8 = vld [vmem:[%s1388_s0 + $0x20] sm:$0xff]   ;;  %v967_v10 = vld [vmem:[%s1388_s0 + $0x18] sm:$0xff]   ;;  %v969_v14 = vld [vmem:[%s1388_s0 + $0x10] sm:$0xff]  }
   0x5   :  { %v976_v12 = vld [vmem:[%s1389_s1 + $0x4] ss:$12 sps:$4 sm:$0xff]   ;;  %v979_v13 = vld [vmem:[%s1389_s1 + $0x4c] ss:$12 sps:$4 sm:$0xff]   ;;  %v977_v23 = vld [vmem:[%s1389_s1 + $0x48] ss:$12 sps:$4 sm:$0xff]  }
   0x6   :  { %v970_v15 = vld [vmem:[%s1388_s0 + $0x48] sm:$0xff]   ;;  %330 = vmatprep.mubr.bf16.mxu0 %v976_v12  ;;  %354 = vmatprep.mubr.bf16.mxu1 %v979_v13  ;;  %v972_v17 = vld [vmem:[%s1388_s0 + $0x40] sm:$0xff]   ;;  %v1102_v20 = vld [vmem:[%s1390_s2 + $0x10] sm:$0xff] }
   0x7   :  { %874 = vmatpush3.bf16.msra.mxu0 %v961_v4  ;;  %938 = vmatpush3.bf16.msra.mxu1 %v961_v4  ;;  %v971_v16 = vld [vmem:[%s1388_s0 + $0x8] sm:$0xff]   ;;  %v973_v18 = vld [vmem:[%s1388_s0] sm:$0xff]   ;;  %v1123_v25 = vld [vmem:[%s1390_s2 + $0x18] sm:$0xff] }
   0x8   :  { %875 = vmatprep.subr.bf16.mxu0 %v962_v5  ;;  %931 = vmatprep.subr.bf16.mxu1 %v962_v5  ;;  %v1097_v19 = vld [vmem:[%s1390_s2] sm:$0xff]  ;;  %v980_v21 = vld [vmem:[%s1388_s0 + $0x88] sm:$0xff]   ;;  %v1158_v33 = vld [vmem:[%s1390_s2 + $0x30] sm:$0xff] }
   0x9   :  { %v974_v22 = vld [vmem:[%s1389_s1] ss:$12 sps:$4 sm:$0xff]   ;;  %79 = vperm.xlu0 %952, %v1097_v19   ;;  %89 = vperm.xlu1 %953, %v1102_v20   ;;  %v982_v26 = vld [vmem:[%s1389_s1 + $0x1c] ss:$12 sps:$4 sm:$0xff]   ;;  %v985_v31 = vld [vmem:[%s1389_s1 + $0x18] ss:$12 sps:$4 sm:$0xff]  }
   0xa   :  { %v1118_v24 = vld [vmem:[%s1390_s2 + $0x8] sm:$0xff]  ;;  %v981_v27 = vld [vmem:[%s1388_s0 + $0x80] sm:$0xff]   ;;  %v1163_v34 = vld [vmem:[%s1390_s2 + $0x38] sm:$0xff] }
   0xb   :  { %876 = vmatpush3.bf16.msra.mxu0 %v963_v6  ;;  %939 = vmatpush3.bf16.msra.mxu1 %v963_v6  ;;  %v984_v28 = vld [vmem:[%s1389_s1 + $0x8] ss:$12 sps:$4 sm:$0xff]   ;;  %v1139_v29 = vld [vmem:[%s1390_s2 + $0x20] sm:$0xff]  ;;  %v990_v37 = vld [vmem:[%s1389_s1 + $0x30] ss:$12 sps:$4 sm:$0xff]  }
   0xc   :  { %877 = vmatprep.subr.bf16.mxu0 %v964_v7  ;;  %932 = vmatprep.subr.bf16.mxu1 %v964_v7  ;;  %v1144_v30 = vld [vmem:[%s1390_s2 + $0x28] sm:$0xff]  ;;  %v987_v35 = vld [vmem:[%s1389_s1 + $0x34] ss:$12 sps:$4 sm:$0xff]   ;;  %v989_v36 = vld [vmem:[%s1389_s1 + $0x38] ss:$12 sps:$4 sm:$0xff]  }
   0xd   :  { %84 = vperm.xlu0 %952, %v1118_v24   ;;  %94 = vperm.xlu1 %953, %v1123_v25   ;;  %v986_v32 = vld [vmem:[%s1389_s1 + $0x20] ss:$12 sps:$4 sm:$0xff]   ;;  %v991_v38 = vld [vmem:[%s1389_s1 + $0x50] ss:$12 sps:$4 sm:$0xff]  }
   0xf   :  { %878 = vmatpush3.bf16.msra.mxu0 %v965_v8  ;;  %940 = vmatpush3.bf16.msra.mxu1 %v965_v8 }
  0x10   :  { %879 = vmatprep.subr.bf16.mxu0 %v966_v9  ;;  %933 = vmatprep.subr.bf16.mxu1 %v966_v9 }
  0x11   :  { %99 = vperm.xlu0 %952, %v1139_v29   ;;  %104 = vperm.xlu1 %953, %v1144_v30  }
  0x13   :  { %880 = vmatpush3.bf16.msra.mxu0 %v967_v10  ;;  %941 = vmatpush3.bf16.msra.mxu1 %v967_v10 }
  0x14   :  { %881 = vmatprep.subr.bf16.mxu0 %v968_v11  ;;  %934 = vmatprep.subr.bf16.mxu1 %v968_v11 }
  0x15   :  { %109 = vperm.xlu0 %952, %v1158_v33   ;;  %114 = vperm.xlu1 %953, %v1163_v34  }
  0x17   :  { %882 = vmatpush3.bf16.msra.mxu0 %v969_v14  ;;  %942 = vmatpush3.bf16.msra.mxu1 %v969_v14 }
  0x18   :  { %883 = vmatprep.subr.bf16.mxu0 %v970_v15  ;;  %935 = vmatprep.subr.bf16.mxu1 %v970_v15 }
  0x1b   :  { %884 = vmatpush3.bf16.msra.mxu0 %v971_v16  ;;  %943 = vmatpush3.bf16.msra.mxu1 %v971_v16 }
  0x1c   :  { %885 = vmatprep.subr.bf16.mxu0 %v972_v17  ;;  %936 = vmatprep.subr.bf16.mxu1 %v972_v17 }
  0x1f   :  { %886 = vmatpush3.bf16.msra.mxu0 %v973_v18  ;;  %944 = vmatpush3.bf16.msra.mxu1 %v973_v18 }
  0x20   :  { %917 = vmatprep.subr.bf16.mxu1 %v980_v21 }
  0x22   :  { %331 = vmatmul.mubr.bf16.vlgmr.msra.gmra.mxu0 %v974_v22  ;;  %355 = vmatmul.mubr.bf16.vlgmr.msra.gmra.mxu1 %v977_v23 }
  0x23   :  { %918 = vmatpush3.bf16.msra.mxu1 %v980_v21  ;;  %338 = vmatprep.mubr.bf16.mxu0 %v982_v26 }
  0x24   :  { %919 = vmatprep.subr.bf16.mxu1 %v981_v27  ;;  %921 = vmatprep.mubr.msk.bf16.mxu1 %vm285_vm0, %v984_v28 }
  0x27   :  { %920 = vmatpush3.bf16.msra.mxu1 %v981_v27 }
  0x2a   :  { %339 = vmatmul.mubr.bf16.gmra.mxu0 %v985_v31  ;;  %922 = vmatmul.mubr.msk.bf16.vlgmr.msra.gmra.mxu1 %vm285_vm0, %v986_v32 }
  0x2b   :  { %346 = vmatprep.mubr.bf16.mxu0 %v987_v35  ;;  %925 = vmatprep.mubr.msk.bf16.mxu1 %vm285_vm0, %v989_v36 }
  0x32   :  { %347 = vmatmul.mubr.bf16.gmra.mxu0 %v990_v37  ;;  %926 = vmatmul.mubr.msk.bf16.gmra.mxu1 %vm285_vm0, %v991_v38 }
  0x84   :  { %v80_v39 = vpop.permute.xlu0 %79  ;;  %v90_v40 = vpop.permute.xlu1 %89 }
  0x88   :  { %v85_v41 = vpop.permute.xlu0 %84  ;;  %v95_v46 = vpop.permute.xlu1 %94 }
  0x8c   :  { %v100_v49 = vpop.permute.xlu0 %99  ;;  %v105_v55 = vpop.permute.xlu1 %104 }
  0x90   :  { %v110_v61 = vpop.permute.xlu0 %109  ;;  %v115_v9 = vpop.permute.xlu1 %114 }
  0xe2   :  { %v887_v42 = vpop.f32.mrf.mxu0  ;;  %v905_v43 = vpop.f32.mrf.mxu1 }
  0xe4   :  { %v888_v44 = vpop.f32.mrf.mxu0  ;;  %v906_v45 = vpop.f32.mrf.mxu1 }
  0xe5   :  { %v889_v50 = vadd.f32 %v888_v44, %v887_v42  ;;  %v907_v58 = vadd.f32 %v906_v45, %v905_v43 }
  0xe6   :  { %v890_v47 = vpop.f32.mrf.mxu0  ;;  %v908_v48 = vpop.f32.mrf.mxu1 }
  0xe7   :  { %v333_v57 = vadd.f32 %v889_v50, %v80_v39  ;;  %v357_v5 = vadd.f32 %v907_v58, %v110_v61 }
  0xe8   :  { %v891_v51 = vpop.f32.mrf.mxu0  ;;  %v909_v52 = vpop.f32.mrf.mxu1 }
  0xe9   :  { %v892_v56 = vadd.f32 %v891_v51, %v890_v47  ;;  %v910_v8 = vadd.f32 %v909_v52, %v908_v48  ;;  %v1009_v47 = vmov 1  }
  0xea   :  { %v893_v53 = vpop.f32.mrf.mxu0  ;;  %v923_v54 = vpop.f32.mrf.mxu1  ;;  %954 = vset.pattern.permute.xlu0 %v1009_v47  ;;  %955 = vset.pattern.permute.xlu1 %v1009_v47 }
  0xeb   :  { %v336_v3 = vadd.f32 %v892_v56, %v85_v41  ;;  %v360_v21 = vadd.f32 %v910_v8, %v115_v9 }
  0xec   :  { %v894_v59 = vpop.f32.mrf.mxu0  ;;  %v397_v60 = vpop.f32.mrf.mxu1 }
  0xed   :  { %v895_v62 = vadd.f32 %v894_v59, %v893_v53  ;;  %v1182_v63 = vadd.f32 %v397_v60, %v333_v57 }
  0xee   :  { %v896_v0 = vpop.f32.mrf.mxu0  ;;  %v924_v1 = vpop.f32.mrf.mxu1 }
  0xef   :  { %v341_v2 = vadd.f32 %v895_v62, %v90_v40  ;;  %428 = vst [vmem:[%s1391_s3] sm:$0xff] %v1182_v63  ;;  %436 = vadd.xlane.f32.xlu0 %v1182_v63  ;;  %v461_v4 = vmul.f32 %v1182_v63, %v1182_v63 }
  0xf0   :  { %v897_v6 = vpop.f32.mrf.mxu0  ;;  %v400_v7 = vpop.f32.mrf.mxu1 }
  0xf1   :  { %v1191_v10 = vadd.f32 %v923_v54, %v341_v2  ;;  %v898_v11 = vadd.f32 %v897_v6, %v896_v0  ;;  %v1193_v12 = vadd.f32 %v400_v7, %v336_v3  ;;  %469 = vadd.xlane.f32.xlu1 %v461_v4 }
  0xf2   :  { %v899_v13 = vpop.f32.mrf.mxu0  ;;  %v927_v14 = vpop.f32.mrf.mxu1 }
  0xf3   :  { %430 = vst [vmem:[%s1391_s3 + $0x10] sm:$0xff] %v1191_v10  ;;  %v344_v15 = vadd.f32 %v898_v11, %v95_v46  ;;  %429 = vst [vmem:[%s1391_s3 + $0x8] sm:$0xff] %v1193_v12  ;;  %v1203_v16 = vadd.f32 %v927_v14, %v357_v5  ;;  %440 = vadd.xlane.f32.xlu0 %v1191_v10  ;;  %v462_v26 = vmul.f32 %v1193_v12, %v1193_v12 }
  0xf4   :  { %v900_v17 = vpop.f32.mrf.mxu0  ;;  %v413_v18 = vpop.f32.mrf.mxu1  ;;  %v463_v39 = vmul.f32 %v1191_v10, %v1191_v10 }
  0xf5   :  { %v1206_v22 = vadd.f32 %v924_v1, %v344_v15  ;;  %434 = vst [vmem:[%s1391_s3 + $0x30] sm:$0xff] %v1203_v16  ;;  %v901_v23 = vadd.f32 %v900_v17, %v899_v13  ;;  %438 = vadd.xlane.f32.xlu1 %v1193_v12  ;;  %v467_v44 = vmul.f32 %v1203_v16, %v1203_v16 }
  0xf6   :  { %v902_v27 = vpop.f32.mrf.mxu0  ;;  %v928_v28 = vpop.f32.mrf.mxu1 }
  0xf7   :  { %431 = vst [vmem:[%s1391_s3 + $0x18] sm:$0xff] %v1206_v22  ;;  %v349_v31 = vadd.f32 %v901_v23, %v100_v49  ;;  %v1219_v32 = vadd.f32 %v928_v28, %v360_v21  ;;  %471 = vadd.xlane.f32.xlu0 %v462_v26  ;;  %v464_v42 = vmul.f32 %v1206_v22, %v1206_v22 }
  0xf8   :  { %v903_v35 = vpop.f32.mrf.mxu0  ;;  %v416_v40 = vpop.f32.mrf.mxu1 }
  0xf9   :  { %v1221_v36 = vadd.f32 %v413_v18, %v349_v31  ;;  %435 = vst [vmem:[%s1391_s3 + $0x38] sm:$0xff] %v1219_v32  ;;  %v904_v37 = vadd.f32 %v903_v35, %v902_v27  ;;  %448 = vadd.xlane.f32.xlu1 %v1203_v16  ;;  %v468_v46 = vmul.f32 %v1219_v32, %v1219_v32 }
  0xfb   :  { %432 = vst [vmem:[%s1391_s3 + $0x20] sm:$0xff] %v1221_v36  ;;  %v352_v38 = vadd.f32 %v904_v37, %v105_v55  ;;  %442 = vadd.xlane.f32.xlu0 %v1206_v22  ;;  %v465_v43 = vmul.f32 %v1221_v36, %v1221_v36 }
  0xfd   :  { %v1235_v41 = vadd.f32 %v416_v40, %v352_v38  ;;  %473 = vadd.xlane.f32.xlu1 %v463_v39 }
  0xff   :  { %433 = vst [vmem:[%s1391_s3 + $0x28] sm:$0xff] %v1235_v41  ;;  %450 = vadd.xlane.f32.xlu0 %v1219_v32  ;;  %v466_v45 = vmul.f32 %v1235_v41, %v1235_v41  ;;  %s1010_s3 = smov 1  }
 0x101   :  { %444 = vadd.xlane.f32.xlu1 %v1221_v36 }
 0x103   :  { %475 = vadd.xlane.f32.xlu0 %v464_v42 }
 0x105   :  { %477 = vadd.xlane.f32.xlu1 %v465_v43 }
 0x107   :  { %446 = vadd.xlane.f32.xlu0 %v1235_v41 }
 0x109   :  { %481 = vadd.xlane.f32.xlu1 %v467_v44 }
 0x10b   :  { %479 = vadd.xlane.f32.xlu0 %v466_v45 }
 0x10f   :  { %483 = vadd.xlane.f32.xlu0 %v468_v46 }
 0x178   :  { %v437_v48 = vpop.xlane.xlu0 %436 }
 0x179   :  { %v453_v49 = vmul.f32 0.0078125, %v437_v48 }
 0x17a   :  { %v470_v50 = vpop.xlane.xlu1 %469 }
 0x17b   :  { %v493_v51 = vmul.f32 %v453_v49, %v453_v49  ;;  %v485_v52 = vmul.f32 0.0078125, %v470_v50 }
 0x17c   :  { %v441_v53 = vpop.xlane.xlu0 %440 }
 0x17d   :  { %v501_v54 = vsub.f32 %v485_v52, %v493_v51  ;;  %v1258_v0 = vmul.f32 0.0078125, %v441_v53 }
 0x17e   :  { %v439_v55 = vpop.xlane.xlu1 %438 }
 0x17f   :  { %v509_v56 = vmax.f32 %v501_v54, 0.0  ;;  %v1254_v57 = vmul.f32 0.0078125, %v439_v55  ;;  %v495_v5 = vmul.f32 %v1258_v0, %v1258_v0 }
 0x180   :  { %v472_v58 = vpop.xlane.xlu0 %471 }
 0x181   :  { %v517_v59 = vadd.f32 1e-05, %v509_v56  ;;  %v494_v60 = vmul.f32 %v1254_v57, %v1254_v57  ;;  %v486_v61 = vmul.f32 0.0078125, %v472_v58 }
 0x182   :  { %v449_v62 = vpop.xlane.xlu1 %448 }
 0x183   :  { %992 = vrsqrt.f32 %v517_v59  ;;  %v502_v1 = vsub.f32 %v486_v61, %v494_v60  ;;  %v459_v26 = vmul.f32 0.0078125, %v449_v62 }
 0x184   :  { %v443_v2 = vpop.xlane.xlu0 %442 }
 0x185   :  { %v510_v3 = vmax.f32 %v502_v1, 0.0  ;;  %v456_v9 = vmul.f32 0.0078125, %v443_v2  ;;  %v499_v45 = vmul.f32 %v459_v26, %v459_v26 }
 0x186   :  { %v474_v4 = vpop.xlane.xlu1 %473 }
 0x187   :  { %v518_v6 = vadd.f32 1e-05, %v510_v3  ;;  %v487_v7 = vmul.f32 0.0078125, %v474_v4  ;;  %v496_v18 = vmul.f32 %v456_v9, %v456_v9 }
 0x188   :  { %v451_v8 = vpop.xlane.xlu0 %450 }
 0x189   :  { %994 = vrsqrt.f32 %v518_v6  ;;  %v503_v11 = vsub.f32 %v487_v7, %v495_v5  ;;  %v460_v50 = vmul.f32 0.0078125, %v451_v8 }
 0x18a   :  { %v445_v13 = vpop.xlane.xlu1 %444 }
 0x18b   :  { %v511_v14 = vmax.f32 %v503_v11, 0.0  ;;  %v457_v15 = vmul.f32 0.0078125, %v445_v13  ;;  %v500_v62 = vmul.f32 %v460_v50, %v460_v50 }
 0x18c   :  { %v476_v17 = vpop.xlane.xlu0 %475 }
 0x18d   :  { %v519_v21 = vadd.f32 1e-05, %v511_v14  ;;  %v488_v23 = vmul.f32 0.0078125, %v476_v17  ;;  %v497_v28 = vmul.f32 %v457_v15, %v457_v15 }
 0x18e   :  { %v478_v27 = vpop.xlane.xlu1 %477 }
 0x18f   :  { %996 = vrsqrt.f32 %v519_v21  ;;  %v504_v31 = vsub.f32 %v488_v23, %v496_v18  ;;  %v489_v35 = vmul.f32 0.0078125, %v478_v27 }
 0x190   :  { %v993_v37 = vpop.eup %992  ;;  %v447_v38 = vpop.xlane.xlu0 %446 }
 0x191   :  { %v512_v39 = vmax.f32 %v504_v31, 0.0  ;;  %v505_v40 = vsub.f32 %v489_v35, %v497_v28  ;;  %v458_v42 = vmul.f32 0.0078125, %v447_v38  ;;  %v533_v43 = vmul.f32 %v993_v37, %v1097_v19 }
 0x192   :  { %v482_v44 = vpop.xlane.xlu1 %481 }
 0x193   :  { %v520_v46 = vadd.f32 1e-05, %v512_v39  ;;  %v513_v47 = vmax.f32 %v505_v40, 0.0  ;;  %v491_v48 = vmul.f32 0.0078125, %v482_v44  ;;  %v498_v51 = vmul.f32 %v458_v42, %v458_v42 }
 0x194   :  { %v480_v52 = vpop.xlane.xlu0 %479  ;;  %v541_v53 = vmul.f32 %v533_v43, %v453_v49 }
 0x195   :  { %998 = vrsqrt.f32 %v520_v46  ;;  %v521_v54 = vadd.f32 1e-05, %v513_v47  ;;  %v507_v55 = vsub.f32 %v491_v48, %v499_v45  ;;  %v490_v56 = vmul.f32 0.0078125, %v480_v52 }
 0x196   :  { %v995_v58 = vpop.eup %994  ;;  %557 = vrot.lane.b32.xlu1 %v541_v53, %s1010_s3 }
 0x197   :  { %1000 = vrsqrt.f32 %v521_v54  ;;  %v515_v59 = vmax.f32 %v507_v55, 0.0  ;;  %v506_v60 = vsub.f32 %v490_v56, %v498_v51  ;;  %v534_v61 = vmul.f32 %v995_v58, %v1118_v24 }
 0x198   :  { %v484_v1 = vpop.xlane.xlu0 %483 }
 0x199   :  { %v523_v2 = vadd.f32 1e-05, %v515_v59  ;;  %v514_v3 = vmax.f32 %v506_v60, 0.0  ;;  %v492_v4 = vmul.f32 0.0078125, %v484_v1  ;;  %v542_v49 = vmul.f32 %v534_v61, %v1254_v57 }
 0x19b   :  { %1002 = vrsqrt.f32 %v523_v2  ;;  %v522_v5 = vadd.f32 1e-05, %v514_v3  ;;  %v508_v6 = vsub.f32 %v492_v4, %v500_v62  ;;  %559 = vrot.lane.b32.xlu0 %v542_v49, %s1010_s3 }
 0x19c   :  { %v997_v7 = vpop.eup %996 }
 0x19d   :  { %1004 = vrsqrt.f32 %v522_v5  ;;  %v516_v8 = vmax.f32 %v508_v6, 0.0  ;;  %v535_v11 = vmul.f32 %v997_v7, %v1102_v20 }
 0x19f   :  { %v524_v13 = vadd.f32 1e-05, %v516_v8  ;;  %v543_v14 = vmul.f32 %v535_v11, %v1258_v0 }
 0x1a1   :  { %1006 = vrsqrt.f32 %v524_v13  ;;  %561 = vrot.lane.b32.xlu1 %v543_v14, %s1010_s3 }
 0x1a2   :  { %v999_v17 = vpop.eup %998 }
 0x1a3   :  { %v536_v18 = vmul.f32 %v999_v17, %v1123_v25 }
 0x1a4   :  { %v1001_v57 = vpop.eup %1000 }
 0x1a5   :  { %v544_v21 = vmul.f32 %v536_v18, %v456_v9  ;;  %v537_v23 = vmul.f32 %v1001_v57, %v1139_v29 }
 0x1a7   :  { %563 = vrot.lane.b32.xlu1 %v544_v21, %s1010_s3  ;;  %v545_v27 = vmul.f32 %v537_v23, %v457_v15  ;;  %v1011_v15 = vmov 2  }
 0x1a8   :  { %v1003_v28 = vpop.eup %1002 }
 0x1a9   :  { %565 = vrot.lane.b32.xlu0 %v545_v27, %s1010_s3  ;;  %v539_v31 = vmul.f32 %v1003_v28, %v1158_v33 }
 0x1aa   :  { %v1005_v35 = vpop.eup %1004 }
 0x1ab   :  { %v547_v0 = vmul.f32 %v539_v31, %v459_v26  ;;  %v538_v37 = vmul.f32 %v1005_v35, %v1144_v30 }
 0x1ad   :  { %569 = vrot.lane.b32.xlu0 %v547_v0, %s1010_s3  ;;  %v546_v38 = vmul.f32 %v538_v37, %v458_v42 }
 0x1ae   :  { %v1007_v39 = vpop.eup %1006 }
 0x1af   :  { %567 = vrot.lane.b32.xlu1 %v546_v38, %s1010_s3  ;;  %v540_v9 = vmul.f32 %v1007_v39, %v1163_v34 }
 0x1b1   :  { %591 = vperm.xlu0 %954, %v533_v43   ;;  %v548_v40 = vmul.f32 %v540_v9, %v460_v50 }
 0x1b3   :  { %571 = vrot.lane.b32.xlu1 %v548_v40, %s1010_s3 }
 0x1b5   :  { %606 = vperm.xlu0 %954, %v536_v18  }
 0x1b7   :  { %596 = vperm.xlu1 %955, %v534_v61  }
 0x1b9   :  { %616 = vperm.xlu0 %954, %v538_v37  }
 0x1bb   :  { %601 = vperm.xlu1 %955, %v535_v11  }
 0x1bd   :  { %626 = vperm.xlu0 %954, %v540_v9  }
 0x1bf   :  { %611 = vperm.xlu1 %955, %v537_v23  }
 0x1c1   :  { %957 = vset.pattern.permute.xlu0 %v1011_v15 }
 0x1c3   :  { %621 = vperm.xlu1 %955, %v539_v31  }
 0x1c7   :  { %956 = vset.pattern.permute.xlu1 %v1011_v15 }
 0x208   :  { %v558_v26 = vpop.permute.xlu1 %557 }
 0x209   :  { %v581_v42 = vsub.f32 %v1097_v19, %v558_v26 }
 0x20b   :  { %639 = vperm.xlu1 %956, %v581_v42  }
 0x20d   :  { %v560_v44 = vpop.permute.xlu0 %559 }
 0x20e   :  { %v582_v43 = vsub.f32 %v1118_v24, %v560_v44 }
 0x210   :  { %644 = vperm.xlu0 %957, %v582_v43  }
 0x213   :  { %v562_v45 = vpop.permute.xlu1 %561 }
 0x214   :  { %v583_v46 = vsub.f32 %v1102_v20, %v562_v45 }
 0x216   :  { %649 = vperm.xlu1 %956, %v583_v46  }
 0x219   :  { %v564_v47 = vpop.permute.xlu1 %563 }
 0x21a   :  { %v584_v48 = vsub.f32 %v1123_v25, %v564_v47 }
 0x21b   :  { %v566_v50 = vpop.permute.xlu0 %565 }
 0x21c   :  { %v585_v51 = vsub.f32 %v1139_v29, %v566_v50  ;;  %654 = vperm.xlu1 %956, %v584_v48  }
 0x21e   :  { %659 = vperm.xlu0 %957, %v585_v51  }
 0x21f   :  { %v570_v52 = vpop.permute.xlu0 %569 }
 0x220   :  { %v587_v19 = vsub.f32 %v1158_v33, %v570_v52 }
 0x221   :  { %v568_v53 = vpop.permute.xlu1 %567 }
 0x222   :  { %v586_v54 = vsub.f32 %v1144_v30, %v568_v53  ;;  %669 = vperm.xlu0 %957, %v587_v19  }
 0x224   :  { %664 = vperm.xlu1 %956, %v586_v54  }
 0x225   :  { %v572_v24 = vpop.permute.xlu1 %571 }
 0x226   :  { %v588_v20 = vsub.f32 %v1163_v34, %v572_v24 }
 0x228   :  { %674 = vperm.xlu1 %956, %v588_v20  }
 0x22c   :  { %v592_v56 = vpop.permute.xlu0 %591 }
 0x22d   :  { %v629_v61 = vmul.f32 %v592_v56, %v1182_v63 }
 0x230   :  { %v607_v58 = vpop.permute.xlu0 %606 }
 0x232   :  { %v597_v55 = vpop.permute.xlu1 %596 }
 0x233   :  { %v630_v2 = vmul.f32 %v597_v55, %v1193_v12 }
 0x234   :  { %v617_v29 = vpop.permute.xlu0 %616 }
 0x235   :  { %v634_v38 = vmul.f32 %v617_v29, %v1235_v41 }
 0x236   :  { %v602_v25 = vpop.permute.xlu1 %601 }
 0x237   :  { %v631_v5 = vmul.f32 %v602_v25, %v1191_v10  ;;  %v632_v10 = vmul.f32 %v607_v58, %v1206_v22 }
 0x238   :  { %v627_v33 = vpop.permute.xlu0 %626 }
 0x23a   :  { %v612_v59 = vpop.permute.xlu1 %611 }
 0x23b   :  { %v633_v28 = vmul.f32 %v612_v59, %v1221_v36 }
 0x23e   :  { %v622_v60 = vpop.permute.xlu1 %621 }
 0x23f   :  { %v635_v18 = vmul.f32 %v622_v60, %v1203_v16  ;;  %v636_v16 = vmul.f32 %v627_v33, %v1219_v32 }
 0x286   :  { %v640_v62 = vpop.permute.xlu1 %639 }
 0x287   :  { %v677_v1 = vadd.f32 %v640_v62, %v629_v61 }
 0x289   :  { %vm685_vm1 = vcmp.ge.f32.partialorder %v677_v1, 0.0  ;;  %v693_v30 = vmul.f32 0.2, %v677_v1 }
 0x28b   :  { %v645_v3 = vpop.permute.xlu0 %644  ;;  %v1290_v4 = vsel %vm685_vm1, %v677_v1, %v693_v30 }
 0x28c   :  { %v678_v34 = vadd.f32 %v645_v3, %v630_v2  ;;  %717 = vrot.lane.b32.xlu0 %v1290_v4, %s1012_s25 }
 0x28e   :  { %vm686_vm2 = vcmp.ge.f32.partialorder %v678_v34, 0.0  ;;  %v694_v49 = vmul.f32 0.2, %v678_v34 }
 0x290   :  { %749 = vrot.lane.b32.xlu0 %v1290_v4, %s1013_s26  ;;  %v1297_v63 = vsel %vm686_vm2, %v678_v34, %v694_v49 }
 0x291   :  { %719 = vrot.lane.b32.xlu1 %v1297_v63, %s1012_s25  ;;  %v650_v12 = vpop.permute.xlu1 %649 }
 0x292   :  { %v679_v6 = vadd.f32 %v650_v12, %v631_v5 }
 0x294   :  { %vm687_vm3 = vcmp.ge.f32.partialorder %v679_v6, 0.0  ;;  %v695_v7 = vmul.f32 0.2, %v679_v6  ;;  %781 = vrot.lane.b32.xlu0 %v1290_v4, %s1014_s27 }
 0x295   :  { %751 = vrot.lane.b32.xlu1 %v1297_v63, %s1013_s26 }
 0x296   :  { %v1306_v8 = vsel %vm687_vm3, %v679_v6, %v695_v7 }
 0x297   :  { %v655_v11 = vpop.permute.xlu1 %654 }
 0x298   :  { %721 = vrot.lane.b32.xlu0 %v1306_v8, %s1012_s25  ;;  %v680_v13 = vadd.f32 %v655_v11, %v632_v10 }
 0x299   :  { %v660_v14 = vpop.permute.xlu0 %659  ;;  %783 = vrot.lane.b32.xlu1 %v1297_v63, %s1014_s27 }
 0x29a   :  { %vm688_vm4 = vcmp.ge.f32.partialorder %v680_v13, 0.0  ;;  %v696_v17 = vmul.f32 0.2, %v680_v13  ;;  %v681_v35 = vadd.f32 %v660_v14, %v633_v28 }
 0x29c   :  { %753 = vrot.lane.b32.xlu0 %v1306_v8, %s1013_s26  ;;  %v1315_v57 = vsel %vm688_vm4, %v680_v13, %v696_v17  ;;  %v697_v39 = vmul.f32 0.2, %v681_v35  ;;  %vm689_vm7 = vcmp.ge.f32.partialorder %v681_v35, 0.0 }
 0x29d   :  { %v670_v22 = vpop.permute.xlu0 %669  ;;  %723 = vrot.lane.b32.xlu1 %v1315_v57, %s1012_s25 }
 0x29e   :  { %v683_v21 = vadd.f32 %v670_v22, %v635_v18  ;;  %v705_v40 = vsel %vm689_vm7, %v681_v35, %v697_v39 }
 0x29f   :  { %v665_v23 = vpop.permute.xlu1 %664 }
 0x2a0   :  { %vm691_vm5 = vcmp.ge.f32.partialorder %v683_v21, 0.0  ;;  %v699_v27 = vmul.f32 0.2, %v683_v21  ;;  %785 = vrot.lane.b32.xlu0 %v1306_v8, %s1014_s27  ;;  %v682_v9 = vadd.f32 %v665_v23, %v634_v38 }
 0x2a1   :  { %755 = vrot.lane.b32.xlu1 %v1315_v57, %s1013_s26 }
 0x2a2   :  { %v1325_v31 = vsel %vm691_vm5, %v683_v21, %v699_v27  ;;  %v698_v15 = vmul.f32 0.2, %v682_v9  ;;  %vm690_vm8 = vcmp.ge.f32.partialorder %v682_v9, 0.0 }
 0x2a3   :  { %v675_v0 = vpop.permute.xlu1 %674 }
 0x2a4   :  { %729 = vrot.lane.b32.xlu0 %v1325_v31, %s1012_s25  ;;  %v684_v37 = vadd.f32 %v675_v0, %v636_v16  ;;  %v706_v41 = vsel %vm690_vm8, %v682_v9, %v698_v15 }
 0x2a5   :  { %787 = vrot.lane.b32.xlu1 %v1315_v57, %s1014_s27 }
 0x2a6   :  { %vm692_vm6 = vcmp.ge.f32.partialorder %v684_v37, 0.0  ;;  %v700_v36 = vmul.f32 0.2, %v684_v37 }
 0x2a8   :  { %761 = vrot.lane.b32.xlu0 %v1325_v31, %s1013_s26  ;;  %v1334_v32 = vsel %vm692_vm6, %v684_v37, %v700_v36 }
 0x2a9   :  { %731 = vrot.lane.b32.xlu1 %v1334_v32, %s1012_s25 }
 0x2ac   :  { %725 = vrot.lane.b32.xlu0 %v705_v40, %s1012_s25 }
 0x2ad   :  { %763 = vrot.lane.b32.xlu1 %v1334_v32, %s1013_s26 }
 0x2b0   :  { %757 = vrot.lane.b32.xlu0 %v705_v40, %s1013_s26 }
 0x2b1   :  { %727 = vrot.lane.b32.xlu1 %v706_v41, %s1012_s25 }
 0x2b4   :  { %789 = vrot.lane.b32.xlu0 %v705_v40, %s1014_s27 }
 0x2b5   :  { %759 = vrot.lane.b32.xlu1 %v706_v41, %s1013_s26 }
 0x2b8   :  { %793 = vrot.lane.b32.xlu0 %v1325_v31, %s1014_s27 }
 0x2b9   :  { %791 = vrot.lane.b32.xlu1 %v706_v41, %s1014_s27 }
 0x2bd   :  { %795 = vrot.lane.b32.xlu1 %v1334_v32, %s1014_s27 }
 0x2fe   :  { %v718_v26 = vpop.permute.xlu0 %717 }
 0x2ff   :  { %v741_v44 = vadd.f32 %v718_v26, %v1290_v4 }
 0x302   :  { %v750_v42 = vpop.permute.xlu0 %749 }
 0x303   :  { %v720_v43 = vpop.permute.xlu1 %719  ;;  %v773_v45 = vadd.f32 %v750_v42, %v741_v44 }
 0x304   :  { %v742_v50 = vadd.f32 %v720_v43, %v1297_v63 }
 0x306   :  { %v782_v46 = vpop.permute.xlu0 %781 }
 0x307   :  { %v805_v47 = vadd.f32 %v782_v46, %v773_v45  ;;  %v752_v48 = vpop.permute.xlu1 %751 }
 0x308   :  { %v774_v52 = vadd.f32 %v752_v48, %v742_v50 }
 0x309   :  { %v813_v51 = vmul.f32 0.25, %v805_v47 }
 0x30a   :  { %v722_v19 = vpop.permute.xlu0 %721 }
 0x30b   :  { %821 = vst.msk [vmem:[%s1392_s4] sm:$0xff] %vm285_vm0, %v813_v51  ;;  %v784_v53 = vpop.permute.xlu1 %783  ;;  %v743_v55 = vadd.f32 %v722_v19, %v1306_v8 }
 0x30c   :  { %v806_v54 = vadd.f32 %v784_v53, %v774_v52 }
 0x30e   :  { %v814_v24 = vmul.f32 0.25, %v806_v54  ;;  %v754_v20 = vpop.permute.xlu0 %753 }
 0x30f   :  { %v724_v56 = vpop.permute.xlu1 %723  ;;  %v775_v25 = vadd.f32 %v754_v20, %v743_v55 }
 0x310   :  { %822 = vst.msk [vmem:[%s1392_s4 + $0x8] sm:$0xff] %vm285_vm0, %v814_v24  ;;  %v744_v60 = vadd.f32 %v724_v56, %v1315_v57 }
 0x312   :  { %v786_v58 = vpop.permute.xlu0 %785 }
 0x313   :  { %v807_v59 = vadd.f32 %v786_v58, %v775_v25  ;;  %v756_v29 = vpop.permute.xlu1 %755 }
 0x314   :  { %v776_v62 = vadd.f32 %v756_v29, %v744_v60 }
 0x315   :  { %v815_v61 = vmul.f32 0.25, %v807_v59 }
 0x316   :  { %v730_v33 = vpop.permute.xlu0 %729 }
 0x317   :  { %823 = vst.msk [vmem:[%s1392_s4 + $0x10] sm:$0xff] %vm285_vm0, %v815_v61  ;;  %v788_v1 = vpop.permute.xlu1 %787  ;;  %v747_v10 = vadd.f32 %v730_v33, %v1325_v31 }
 0x318   :  { %v808_v30 = vadd.f32 %v788_v1, %v776_v62 }
 0x31a   :  { %v816_v2 = vmul.f32 0.25, %v808_v30  ;;  %v762_v3 = vpop.permute.xlu0 %761 }
 0x31b   :  { %v732_v4 = vpop.permute.xlu1 %731  ;;  %v779_v14 = vadd.f32 %v762_v3, %v747_v10 }
 0x31c   :  { %824 = vst.msk [vmem:[%s1392_s4 + $0x18] sm:$0xff] %vm285_vm0, %v816_v2  ;;  %v748_v23 = vadd.f32 %v732_v4, %v1334_v32 }
 0x31e   :  { %v726_v34 = vpop.permute.xlu0 %725 }
 0x31f   :  { %v764_v49 = vpop.permute.xlu1 %763  ;;  %v745_v63 = vadd.f32 %v726_v34, %v705_v40 }
 0x320   :  { %v780_v16 = vadd.f32 %v764_v49, %v748_v23 }
 0x322   :  { %v758_v5 = vpop.permute.xlu0 %757 }
 0x323   :  { %v728_v12 = vpop.permute.xlu1 %727  ;;  %v777_v6 = vadd.f32 %v758_v5, %v745_v63 }
 0x324   :  { %v746_v13 = vadd.f32 %v728_v12, %v706_v41 }
 0x326   :  { %v790_v7 = vpop.permute.xlu0 %789 }
 0x327   :  { %v809_v8 = vadd.f32 %v790_v7, %v777_v6  ;;  %v760_v11 = vpop.permute.xlu1 %759 }
 0x328   :  { %v778_v18 = vadd.f32 %v760_v11, %v746_v13 }
 0x329   :  { %v817_v17 = vmul.f32 0.25, %v809_v8 }
 0x32a   :  { %v794_v57 = vpop.permute.xlu0 %793 }
 0x32b   :  { %825 = vst.msk [vmem:[%s1392_s4 + $0x20] sm:$0xff] %vm285_vm0, %v817_v17  ;;  %v811_v22 = vadd.f32 %v794_v57, %v779_v14  ;;  %v792_v21 = vpop.permute.xlu1 %791 }
 0x32c   :  { %v810_v27 = vadd.f32 %v792_v21, %v778_v18 }
 0x32d   :  { %v819_v28 = vmul.f32 0.25, %v811_v22 }
 0x32e   :  { %v818_v31 = vmul.f32 0.25, %v810_v27 }
 0x32f   :  { %827 = vst.msk [vmem:[%s1392_s4 + $0x30] sm:$0xff] %vm285_vm0, %v819_v28  ;;  %v796_v35 = vpop.permute.xlu1 %795 }
 0x330   :  { %826 = vst.msk [vmem:[%s1392_s4 + $0x28] sm:$0xff] %vm285_vm0, %v818_v31  ;;  %v812_v0 = vadd.f32 %v796_v35, %v780_v16 }
 0x332   :  { %v820_v37 = vmul.f32 0.25, %v812_v0 }
 0x334   :  { %828 = vst.msk [vmem:[%s1392_s4 + $0x38] sm:$0xff] %vm285_vm0, %v820_v37 }

// kernel: encoder_r_forward.7
= control target key start
LH: loop header
LB: loop body
LE: loop exit
PB: predicated region body
PF: predicated region fallthrough
CT: control target
= control target key end

     0   :  { %v1377_v1 = vmov 0   ;;  %vm477_vm0 = vcmask 523264   ;;  %vm685_vm1 = vcmask 261120   ;;  %s1381_s25 = smov 120   ;;  %s1382_s26 = smov 112   ;;  %vm1095_vm10 = vcmask 64512   ;;  %s1857_s0 = inlined_call_operand.vmem [shape: bf16[576,32], index: 0, kind: input, shape index: {}]   ;;  %s1858_s1 = inlined_call_operand.vmem [shape: bf16[64,576], index: 1, kind: input, shape index: {}]   ;;  %s1859_s2 = inlined_call_operand.vmem [shape: f32[64,3], index: 2, kind: input, shape index: {}]   ;;  %s1860_s3 = inlined_call_operand.vmem [shape: f32[64,32], index: 3, kind: output, shape index: {0}]   ;;  %s1861_s4 = inlined_call_operand.vmem [shape: f32[64,8], index: 4, kind: output, shape index: {1}]  }
   0x1   :  { %v1297_v0 = vld [vmem:[%s1857_s0 + $0x78] sm:$0xff]   ;;  %1291 = vset.pattern.permute.xlu0 %v1377_v1  ;;  %1292 = vset.pattern.permute.xlu1 %v1377_v1  ;;  %v1301_v5 = vld [vmem:[%s1857_s0 + $0x70] sm:$0xff]   ;;  %v1305_v9 = vld [vmem:[%s1857_s0 + $0x68] sm:$0xff]   ;;  %s1383_s27 = smov 104  }
   0x2   :  { %v1298_v2 = vld [vmem:[%s1857_s0 + $0xf8] sm:$0xff]   ;;  %1172 = vmatprep.subr.bf16.mxu0 %v1297_v0  ;;  %v1302_v6 = vld [vmem:[%s1857_s0 + $0xf0] sm:$0xff]   ;;  %v1306_v10 = vld [vmem:[%s1857_s0 + $0xe8] sm:$0xff]  }
   0x3   :  { %v1299_v3 = vld [vmem:[%s1857_s0 + $0x38] sm:$0xff]   ;;  %1212 = vmatprep.subr.bf16.mxu1 %v1298_v2  ;;  %v1303_v7 = vld [vmem:[%s1857_s0 + $0x30] sm:$0xff]   ;;  %v1307_v11 = vld [vmem:[%s1857_s0 + $0x28] sm:$0xff]  }
   0x4   :  { %v1300_v4 = vld [vmem:[%s1857_s0 + $0xb8] sm:$0xff]   ;;  %1173 = vmatpush3.bf16.msra.mxu0 %v1299_v3  ;;  %v1304_v8 = vld [vmem:[%s1857_s0 + $0xb0] sm:$0xff]   ;;  %v1308_v12 = vld [vmem:[%s1857_s0 + $0xa8] sm:$0xff]  }
   0x5   :  { %1213 = vmatpush3.bf16.msra.mxu1 %v1300_v4  ;;  %1174 = vmatprep.subr.bf16.mxu0 %v1301_v5  ;;  %v1309_v13 = vld [vmem:[%s1857_s0 + $0x60] sm:$0xff]   ;;  %v1313_v17 = vld [vmem:[%s1857_s0 + $0x58] sm:$0xff]   ;;  %v1317_v21 = vld [vmem:[%s1857_s0 + $0x50] sm:$0xff]  }
   0x6   :  { %1214 = vmatprep.subr.bf16.mxu1 %v1302_v6  ;;  %v1310_v14 = vld [vmem:[%s1857_s0 + $0xe0] sm:$0xff]   ;;  %v1314_v18 = vld [vmem:[%s1857_s0 + $0xd8] sm:$0xff]   ;;  %v1318_v22 = vld [vmem:[%s1857_s0 + $0xd0] sm:$0xff]  }
   0x7   :  { %v1311_v15 = vld [vmem:[%s1857_s0 + $0x20] sm:$0xff]   ;;  %v1315_v19 = vld [vmem:[%s1857_s0 + $0x18] sm:$0xff]   ;;  %v1319_v23 = vld [vmem:[%s1857_s0 + $0x10] sm:$0xff]  }
   0x8   :  { %1175 = vmatpush3.bf16.msra.mxu0 %v1303_v7  ;;  %v1312_v16 = vld [vmem:[%s1857_s0 + $0xa0] sm:$0xff]   ;;  %v1316_v20 = vld [vmem:[%s1857_s0 + $0x98] sm:$0xff]   ;;  %v1320_v24 = vld [vmem:[%s1857_s0 + $0x90] sm:$0xff]  }
   0x9   :  { %1215 = vmatpush3.bf16.msra.mxu1 %v1304_v8  ;;  %1176 = vmatprep.subr.bf16.mxu0 %v1305_v9  ;;  %v1321_v25 = vld [vmem:[%s1857_s0 + $0x48] sm:$0xff]   ;;  %v1325_v29 = vld [vmem:[%s1857_s0 + $0x40] sm:$0xff]   ;;  %v1335_v37 = vld [vmem:[%s1857_s0 + $0x118] sm:$0xff]  }
   0xa   :  { %1216 = vmatprep.subr.bf16.mxu1 %v1306_v10  ;;  %v1322_v26 = vld [vmem:[%s1857_s0 + $0xc8] sm:$0xff]   ;;  %v1326_v30 = vld [vmem:[%s1857_s0 + $0xc0] sm:$0xff]   ;;  %v1342_v40 = vld [vmem:[%s1857_s0 + $0x110] sm:$0xff]  }
   0xb   :  { %v1323_v27 = vld [vmem:[%s1857_s0 + $0x8] sm:$0xff]   ;;  %v1327_v31 = vld [vmem:[%s1857_s0] sm:$0xff]   ;;  %v1345_v44 = vld [vmem:[%s1858_s1 + $0x5c] ss:$20 sps:$4 sm:$0xff]  }
   0xc   :  { %1177 = vmatpush3.bf16.msra.mxu0 %v1307_v11  ;;  %v1324_v28 = vld [vmem:[%s1857_s0 + $0x88] sm:$0xff]   ;;  %v1328_v32 = vld [vmem:[%s1857_s0 + $0x80] sm:$0xff]   ;;  %v1350_v49 = vld [vmem:[%s1858_s1 + $0x7c] ss:$20 sps:$4 sm:$0xff]  }
   0xd   :  { %1217 = vmatpush3.bf16.msra.mxu1 %v1308_v12  ;;  %1178 = vmatprep.subr.bf16.mxu0 %v1309_v13  ;;  %v1329_v33 = vld [vmem:[%s1858_s1] ss:$20 sps:$4 sm:$0xff]   ;;  %v1331_v34 = vld [vmem:[%s1858_s1 + $0x4] ss:$20 sps:$4 sm:$0xff]   ;;  %v1332_v35 = vld [vmem:[%s1858_s1 + $0x8] ss:$20 sps:$4 sm:$0xff]  }
   0xe   :  { %1218 = vmatprep.subr.bf16.mxu1 %v1310_v14  ;;  %v1334_v36 = vld [vmem:[%s1858_s1 + $0xc] ss:$20 sps:$4 sm:$0xff]   ;;  %522 = vmatprep.mubr.bf16.mxu0 %v1331_v34  ;;  %v1338_v39 = vld [vmem:[%s1858_s1 + $0x34] ss:$20 sps:$4 sm:$0xff]   ;;  %v1341_v42 = vld [vmem:[%s1858_s1 + $0x30] ss:$20 sps:$4 sm:$0xff]  }
   0xf   :  { %587 = vmatprep.mubr.bf16.mxu1 %v1334_v36  ;;  %v1336_v38 = vld [vmem:[%s1858_s1 + $0x2c] ss:$20 sps:$4 sm:$0xff]   ;;  %v1340_v41 = vld [vmem:[%s1858_s1 + $0x28] ss:$20 sps:$4 sm:$0xff]   ;;  %v1347_v47 = vld [vmem:[%s1858_s1 + $0x50] ss:$20 sps:$4 sm:$0xff]  }
  0x10   :  { %1179 = vmatpush3.bf16.msra.mxu0 %v1311_v15  ;;  %v1343_v43 = vld [vmem:[%s1858_s1 + $0x54] ss:$20 sps:$4 sm:$0xff]   ;;  %v1356_v46 = vld [vmem:[%s1857_s0 + $0x100] sm:$0xff]   ;;  %v1348_v48 = vld [vmem:[%s1858_s1 + $0x58] ss:$20 sps:$4 sm:$0xff]  }
  0x11   :  { %1219 = vmatpush3.bf16.msra.mxu1 %v1312_v16  ;;  %1180 = vmatprep.subr.bf16.mxu0 %v1313_v17  ;;  %v1349_v45 = vld [vmem:[%s1857_s0 + $0x108] sm:$0xff]   ;;  %v1352_v50 = vld [vmem:[%s1858_s1 + $0x84] ss:$20 sps:$4 sm:$0xff]   ;;  %v1568_v52 = vld [vmem:[%s1859_s2 + $0x10] sm:$0xff] }
  0x12   :  { %1220 = vmatprep.subr.bf16.mxu1 %v1314_v18  ;;  %v1562_v51 = vld [vmem:[%s1859_s2] sm:$0xff]  ;;  %v1573_v53 = vld [vmem:[%s1859_s2 + $0x8] sm:$0xff]  ;;  %133 = vperm.xlu1 %1292, %v1568_v52   ;;  %v1580_v54 = vld [vmem:[%s1859_s2 + $0x18] sm:$0xff] }
  0x13   :  { %123 = vperm.xlu0 %1291, %v1562_v51   ;;  %v1354_v55 = vld [vmem:[%s1858_s1 + $0x78] ss:$20 sps:$4 sm:$0xff]   ;;  %v1588_v56 = vld [vmem:[%s1859_s2 + $0x20] sm:$0xff]  ;;  %v1609_v61 = vld [vmem:[%s1859_s2 + $0x30] sm:$0xff] }
  0x14   :  { %1181 = vmatpush3.bf16.msra.mxu0 %v1315_v19  ;;  %v1355_v57 = vld [vmem:[%s1858_s1 + $0x80] ss:$20 sps:$4 sm:$0xff]   ;;  %v1357_v58 = vld [vmem:[%s1858_s1 + $0x10] ss:$20 sps:$4 sm:$0xff]   ;;  %v1604_v60 = vld [vmem:[%s1859_s2 + $0x28] sm:$0xff] }
  0x15   :  { %1221 = vmatpush3.bf16.msra.mxu1 %v1316_v20  ;;  %1182 = vmatprep.subr.bf16.mxu0 %v1317_v21  ;;  %v1358_v59 = vld [vmem:[%s1858_s1 + $0x60] ss:$20 sps:$4 sm:$0xff]   ;;  %v1618_v62 = vld [vmem:[%s1859_s2 + $0x38] sm:$0xff] }
  0x16   :  { %1222 = vmatprep.subr.bf16.mxu1 %v1318_v22  ;;  %138 = vperm.xlu1 %1292, %v1580_v54   ;;  %v1359_v63 = vld [vmem:[%s1858_s1 + $0x38] ss:$20 sps:$4 sm:$0xff]   ;;  %v1360_v0 = vld [vmem:[%s1858_s1 + $0x88] ss:$20 sps:$4 sm:$0xff]  }
  0x17   :  { %128 = vperm.xlu0 %1291, %v1573_v53  }
  0x18   :  { %1183 = vmatpush3.bf16.msra.mxu0 %v1319_v23 }
  0x19   :  { %1223 = vmatpush3.bf16.msra.mxu1 %v1320_v24  ;;  %1184 = vmatprep.subr.bf16.mxu0 %v1321_v25 }
  0x1a   :  { %1224 = vmatprep.subr.bf16.mxu1 %v1322_v26  ;;  %148 = vperm.xlu1 %1292, %v1604_v60  }
  0x1b   :  { %143 = vperm.xlu0 %1291, %v1588_v56  }
  0x1c   :  { %1185 = vmatpush3.bf16.msra.mxu0 %v1323_v27 }
  0x1d   :  { %1225 = vmatpush3.bf16.msra.mxu1 %v1324_v28  ;;  %1186 = vmatprep.subr.bf16.mxu0 %v1325_v29 }
  0x1e   :  { %1226 = vmatprep.subr.bf16.mxu1 %v1326_v30  ;;  %158 = vperm.xlu1 %1292, %v1618_v62  }
  0x1f   :  { %153 = vperm.xlu0 %1291, %v1609_v61  }
  0x20   :  { %1187 = vmatpush3.bf16.msra.mxu0 %v1327_v31 }
  0x21   :  { %1227 = vmatpush3.bf16.msra.mxu1 %v1328_v32  ;;  %1260 = vmatprep.subr.bf16.mxu0 %v1335_v37 }
  0x22   :  { %1276 = vmatprep.subr.bf16.mxu1 %v1335_v37 }
  0x23   :  { %523 = vmatmul.mubr.bf16.vlgmr.msra.gmra.mxu0 %v1329_v33 }
  0x24   :  { %588 = vmatmul.mubr.bf16.vlgmr.msra.gmra.mxu1 %v1332_v35  ;;  %1261 = vmatpush3.bf16.msra.mxu0 %v1335_v37 }
  0x25   :  { %530 = vmatprep.mubr.bf16.mxu0 %v1336_v38  ;;  %595 = vmatprep.mubr.bf16.mxu1 %v1338_v39 }
  0x26   :  { %1280 = vmatpush3.bf16.msra.mxu1 %v1335_v37  ;;  %1262 = vmatprep.subr.bf16.mxu0 %v1342_v40 }
  0x27   :  { %1277 = vmatprep.subr.bf16.mxu1 %v1342_v40 }
  0x28   :  { %1263 = vmatpush3.bf16.msra.mxu0 %v1342_v40 }
  0x29   :  { %1264 = vmatprep.subr.bf16.mxu0 %v1349_v45 }
  0x2a   :  { %1281 = vmatpush3.bf16.msra.mxu1 %v1342_v40 }
  0x2b   :  { %531 = vmatmul.mubr.bf16.gmra.mxu0 %v1340_v41  ;;  %1278 = vmatprep.subr.bf16.mxu1 %v1349_v45 }
  0x2c   :  { %596 = vmatmul.mubr.bf16.gmra.mxu1 %v1341_v42  ;;  %538 = vmatprep.mubr.bf16.mxu0 %v1343_v43 }
  0x2d   :  { %603 = vmatprep.mubr.bf16.mxu1 %v1345_v44  ;;  %1265 = vmatpush3.bf16.msra.mxu0 %v1349_v45 }
  0x2e   :  { %1282 = vmatpush3.bf16.msra.mxu1 %v1349_v45  ;;  %1266 = vmatprep.subr.bf16.mxu0 %v1356_v46 }
  0x2f   :  { %1279 = vmatprep.subr.bf16.mxu1 %v1356_v46 }
  0x31   :  { %1267 = vmatpush3.bf16.msra.mxu0 %v1356_v46 }
  0x32   :  { %1283 = vmatpush3.bf16.msra.mxu1 %v1356_v46 }
  0x33   :  { %539 = vmatmul.mubr.bf16.gmra.mxu0 %v1347_v47 }
  0x34   :  { %604 = vmatmul.mubr.bf16.gmra.mxu1 %v1348_v48  ;;  %546 = vmatprep.mubr.bf16.mxu0 %v1350_v49 }
  0x35   :  { %611 = vmatprep.mubr.bf16.mxu1 %v1352_v50 }
  0x3b   :  { %547 = vmatmul.mubr.bf16.gmra.mxu0 %v1354_v55 }
  0x3c   :  { %612 = vmatmul.mubr.bf16.gmra.mxu1 %v1355_v57  ;;  %1268 = vmatprep.mubr.msk.bf16.mxu0 %vm477_vm0, %v1357_v58 }
  0x3d   :  { %1272 = vmatprep.mubr.msk.bf16.mxu1 %vm477_vm0, %v1358_v59 }
  0x43   :  { %1269 = vmatmul.mubr.msk.bf16.vlgmr.msra.gmra.mxu0 %vm477_vm0, %v1359_v63 }
  0x44   :  { %1273 = vmatmul.mubr.msk.bf16.vlgmr.msra.gmra.mxu1 %vm477_vm0, %v1360_v0 }
  0x8d   :  { %v134_v17 = vpop.permute.xlu1 %133 }
  0x8e   :  { %v124_v13 = vpop.permute.xlu0 %123 }
  0x91   :  { %v139_v25 = vpop.permute.xlu1 %138 }
  0x92   :  { %v129_v21 = vpop.permute.xlu0 %128 }
  0x95   :  { %v149_v35 = vpop.permute.xlu1 %148 }
  0x96   :  { %v144_v27 = vpop.permute.xlu0 %143 }
  0x9a   :  { %v154_v45 = vpop.permute.xlu0 %153 }
  0xe3   :  { %v1188_v1 = vpop.f32.mrf.mxu0 }
  0xe4   :  { %v1228_v2 = vpop.f32.mrf.mxu1 }
  0xe5   :  { %v1189_v3 = vpop.f32.mrf.mxu0 }
  0xe6   :  { %v1229_v4 = vpop.f32.mrf.mxu1  ;;  %v1190_v31 = vadd.f32 %v1189_v3, %v1188_v1 }
  0xe7   :  { %v1191_v5 = vpop.f32.mrf.mxu0  ;;  %v1230_v42 = vadd.f32 %v1229_v4, %v1228_v2 }
  0xe8   :  { %v1629_v6 = vpop.f32.mrf.mxu1  ;;  %v525_v43 = vadd.f32 %v1190_v31, %v124_v13 }
  0xe9   :  { %v1192_v7 = vpop.f32.mrf.mxu0 }
  0xea   :  { %v1232_v8 = vpop.f32.mrf.mxu1  ;;  %v1193_v44 = vadd.f32 %v1192_v7, %v1191_v5  ;;  %v590_v2 = vadd.f32 %v1230_v42, %v525_v43 }
  0xeb   :  { %v1194_v9 = vpop.f32.mrf.mxu0 }
  0xec   :  { %v1234_v10 = vpop.f32.mrf.mxu1 }
  0xed   :  { %v1195_v11 = vpop.f32.mrf.mxu0 }
  0xee   :  { %v1235_v12 = vpop.f32.mrf.mxu1  ;;  %v1196_v29 = vadd.f32 %v1195_v11, %v1194_v9  ;;  %v528_v9 = vadd.f32 %v1193_v44, %v129_v21 }
  0xef   :  { %v1197_v14 = vpop.f32.mrf.mxu0  ;;  %v1236_v37 = vadd.f32 %v1235_v12, %v1234_v10  ;;  %v159_v10 = vpop.permute.xlu1 %158 }
  0xf0   :  { %v1237_v15 = vpop.f32.mrf.mxu1  ;;  %v533_v38 = vadd.f32 %v1196_v29, %v134_v17 }
  0xf1   :  { %v1198_v16 = vpop.f32.mrf.mxu0 }
  0xf2   :  { %v1238_v18 = vpop.f32.mrf.mxu1  ;;  %v1199_v39 = vadd.f32 %v1198_v16, %v1197_v14  ;;  %v598_v1 = vadd.f32 %v1236_v37, %v533_v38  ;;  %v1233_v14 = vadd.f32 %v1232_v8, %v1629_v6 }
  0xf3   :  { %v1200_v19 = vpop.f32.mrf.mxu0  ;;  %v1239_v4 = vadd.f32 %v1238_v18, %v1237_v15 }
  0xf4   :  { %v1240_v20 = vpop.f32.mrf.mxu1  ;;  %v536_v59 = vadd.f32 %v1199_v39, %v139_v25 }
  0xf5   :  { %v1201_v22 = vpop.f32.mrf.mxu0 }
  0xf6   :  { %v1241_v23 = vpop.f32.mrf.mxu1  ;;  %v1202_v34 = vadd.f32 %v1201_v22, %v1200_v19  ;;  %v601_v18 = vadd.f32 %v1239_v4, %v536_v59 }
  0xf7   :  { %v1203_v24 = vpop.f32.mrf.mxu0  ;;  %v1242_v50 = vadd.f32 %v1241_v23, %v1240_v20 }
  0xf8   :  { %v1243_v26 = vpop.f32.mrf.mxu1  ;;  %v541_v55 = vadd.f32 %v1202_v34, %v144_v27 }
  0xf9   :  { %v1204_v28 = vpop.f32.mrf.mxu0 }
  0xfa   :  { %v1244_v30 = vpop.f32.mrf.mxu1  ;;  %v1205_v57 = vadd.f32 %v1204_v28, %v1203_v24  ;;  %v606_v20 = vadd.f32 %v1242_v50, %v541_v55  ;;  %v593_v28 = vadd.f32 %v1233_v14, %v528_v9 }
  0xfb   :  { %v1206_v32 = vpop.f32.mrf.mxu0  ;;  %v1245_v6 = vadd.f32 %v1244_v30, %v1243_v26 }
  0xfc   :  { %v1246_v33 = vpop.f32.mrf.mxu1  ;;  %v544_v16 = vadd.f32 %v1205_v57, %v149_v35 }
  0xfd   :  { %v1207_v36 = vpop.f32.mrf.mxu0 }
  0xfe   :  { %v1208_v40 = vadd.f32 %v1207_v36, %v1206_v32  ;;  %v1247_v41 = vpop.f32.mrf.mxu1  ;;  %v609_v31 = vadd.f32 %v1245_v6, %v544_v16 }
  0xff   :  { %v1248_v46 = vadd.f32 %v1247_v41, %v1246_v33  ;;  %v1209_v47 = vpop.f32.mrf.mxu0 }
 0x100   :  { %v549_v48 = vadd.f32 %v1208_v40, %v154_v45  ;;  %v1249_v49 = vpop.f32.mrf.mxu1 }
 0x101   :  { %v1210_v58 = vpop.f32.mrf.mxu0 }
 0x102   :  { %v1211_v63 = vadd.f32 %v1210_v58, %v1209_v47  ;;  %v1250_v0 = vpop.f32.mrf.mxu1  ;;  %v614_v3 = vadd.f32 %v1248_v46, %v549_v48 }
 0x103   :  { %v1270_v11 = vpop.f32.mrf.mxu0  ;;  %v1251_v7 = vadd.f32 %v1250_v0, %v1249_v49 }
 0x104   :  { %v552_v5 = vadd.f32 %v1211_v63, %v159_v10  ;;  %v1631_v12 = vadd.f32 %v1270_v11, %v598_v1  ;;  %v1274_v13 = vpop.f32.mrf.mxu1  ;;  %v1378_v1 = vmov 1  }
 0x105   :  { %v1634_v17 = vadd.f32 %v1274_v13, %v614_v3  ;;  %v654_v19 = vpop.f32.mrf.mxu0  ;;  %1293 = vset.pattern.permute.xlu0 %v1378_v1  ;;  %1294 = vset.pattern.permute.xlu1 %v1378_v1 }
 0x106   :  { %688 = vst.msk [vmem:[%s1860_s3 + $0x10] sm:$0xff] %vm685_vm1, %v1631_v12  ;;  %v1641_v21 = vadd.f32 %v654_v19, %v590_v2  ;;  %v670_v15 = vpop.f32.mrf.mxu1  ;;  %v617_v22 = vadd.f32 %v1251_v7, %v552_v5  ;;  %v700_v23 = vsel %vm685_vm1, %v1631_v12, 0.0  ;;  %v729_v37 = vmul.f32 %v1631_v12, %v1631_v12 }
 0x107   :  { %692 = vst.msk [vmem:[%s1860_s3 + $0x30] sm:$0xff] %vm685_vm1, %v1634_v17  ;;  %v1650_v8 = vadd.f32 %v670_v15, %v606_v20  ;;  %v1271_v24 = vpop.f32.mrf.mxu0  ;;  %v712_v25 = vsel %vm685_vm1, %v1634_v17, 0.0  ;;  %701 = vadd.xlane.f32.xlu0 %v700_v23  ;;  %v733_v50 = vmul.f32 %v1634_v17, %v1634_v17 }
 0x108   :  { %686 = vst.msk [vmem:[%s1860_s3] sm:$0xff] %vm685_vm1, %v1641_v21  ;;  %v1659_v26 = vadd.f32 %v1271_v24, %v601_v18  ;;  %v1275_v27 = vpop.f32.mrf.mxu1  ;;  %713 = vadd.xlane.f32.xlu1 %v712_v25  ;;  %v694_v34 = vsel %vm685_vm1, %v1641_v21, 0.0  ;;  %v741_v39 = vsel %vm685_vm1, %v729_v37, 0.0  ;;  %v727_v40 = vmul.f32 %v1641_v21, %v1641_v21 }
 0x109   :  { %690 = vst.msk [vmem:[%s1860_s3 + $0x20] sm:$0xff] %vm685_vm1, %v1650_v8  ;;  %v1666_v29 = vadd.f32 %v1275_v27, %v617_v22  ;;  %v657_v30 = vpop.f32.mrf.mxu0  ;;  %v706_v36 = vsel %vm685_vm1, %v1650_v8, 0.0  ;;  %v731_v43 = vmul.f32 %v1650_v8, %v1650_v8  ;;  %v753_v58 = vsel %vm685_vm1, %v733_v50, 0.0 }
 0x10a   :  { %689 = vst.msk [vmem:[%s1860_s3 + $0x18] sm:$0xff] %vm685_vm1, %v1659_v26  ;;  %v1673_v32 = vadd.f32 %v657_v30, %v593_v28  ;;  %v673_v33 = vpop.f32.mrf.mxu1  ;;  %v703_v38 = vsel %vm685_vm1, %v1659_v26, 0.0  ;;  %v735_v42 = vsel %vm685_vm1, %v727_v40, 0.0  ;;  %v730_v45 = vmul.f32 %v1659_v26, %v1659_v26 }
 0x10b   :  { %693 = vst.msk [vmem:[%s1860_s3 + $0x38] sm:$0xff] %vm685_vm1, %v1666_v29  ;;  %v1682_v35 = vadd.f32 %v673_v33, %v609_v31  ;;  %695 = vadd.xlane.f32.xlu0 %v694_v34  ;;  %v715_v41 = vsel %vm685_vm1, %v1666_v29, 0.0  ;;  %v747_v46 = vsel %vm685_vm1, %v731_v43, 0.0  ;;  %v734_v63 = vmul.f32 %v1666_v29, %v1666_v29 }
 0x10c   :  { %687 = vst.msk [vmem:[%s1860_s3 + $0x8] sm:$0xff] %vm685_vm1, %v1673_v32  ;;  %707 = vadd.xlane.f32.xlu1 %v706_v36  ;;  %v744_v47 = vsel %vm685_vm1, %v730_v45, 0.0  ;;  %v728_v48 = vmul.f32 %v1673_v32, %v1673_v32  ;;  %v697_v49 = vsel %vm685_vm1, %v1673_v32, 0.0 }
 0x10d   :  { %691 = vst.msk [vmem:[%s1860_s3 + $0x28] sm:$0xff] %vm685_vm1, %v1682_v35  ;;  %v709_v44 = vsel %vm685_vm1, %v1682_v35, 0.0  ;;  %v732_v57 = vmul.f32 %v1682_v35, %v1682_v35  ;;  %v756_v0 = vsel %vm685_vm1, %v734_v63, 0.0  ;;  %s1379_s3 = smov 1  }
 0x10e   :  { %v738_v55 = vsel %vm685_vm1, %v728_v48, 0.0 }
 0x10f   :  { %704 = vadd.xlane.f32.xlu0 %v703_v38  ;;  %v750_v59 = vsel %vm685_vm1, %v732_v57, 0.0 }
 0x110   :  { %742 = vadd.xlane.f32.xlu1 %v741_v39 }
 0x113   :  { %716 = vadd.xlane.f32.xlu0 %v715_v41 }
 0x114   :  { %736 = vadd.xlane.f32.xlu1 %v735_v42 }
 0x117   :  { %710 = vadd.xlane.f32.xlu0 %v709_v44 }
 0x118   :  { %748 = vadd.xlane.f32.xlu1 %v747_v46 }
 0x11b   :  { %745 = vadd.xlane.f32.xlu0 %v744_v47 }
 0x11c   :  { %698 = vadd.xlane.f32.xlu1 %v697_v49 }
 0x11f   :  { %739 = vadd.xlane.f32.xlu0 %v738_v55 }
 0x120   :  { %754 = vadd.xlane.f32.xlu1 %v753_v58 }
 0x123   :  { %751 = vadd.xlane.f32.xlu0 %v750_v59 }
 0x127   :  { %757 = vadd.xlane.f32.xlu0 %v756_v0 }
 0x190   :  { %v702_v3 = vpop.xlane.xlu0 %701 }
 0x191   :  { %v714_v9 = vpop.xlane.xlu1 %713  ;;  %v1728_v2 = vmul.f32 0.03125, %v702_v3 }
 0x192   :  { %v1744_v41 = vmul.f32 0.03125, %v714_v9 }
 0x193   :  { %v769_v7 = vmul.f32 %v1728_v2, %v1728_v2 }
 0x194   :  { %v696_v10 = vpop.xlane.xlu0 %695  ;;  %v773_v57 = vmul.f32 %v1744_v41, %v1744_v41 }
 0x195   :  { %v708_v11 = vpop.xlane.xlu1 %707  ;;  %v1732_v13 = vmul.f32 0.03125, %v696_v10 }
 0x196   :  { %v1734_v15 = vmul.f32 0.03125, %v708_v11 }
 0x197   :  { %v767_v18 = vmul.f32 %v1732_v13, %v1732_v13 }
 0x198   :  { %v705_v4 = vpop.xlane.xlu0 %704  ;;  %v771_v30 = vmul.f32 %v1734_v15, %v1734_v15 }
 0x199   :  { %v743_v5 = vpop.xlane.xlu1 %742  ;;  %v1738_v27 = vmul.f32 0.03125, %v705_v4 }
 0x19a   :  { %v761_v14 = vmul.f32 0.03125, %v743_v5 }
 0x19b   :  { %v770_v38 = vmul.f32 %v1738_v27, %v1738_v27 }
 0x19c   :  { %v777_v16 = vsub.f32 %v761_v14, %v769_v7  ;;  %v717_v19 = vpop.xlane.xlu0 %716 }
 0x19d   :  { %v737_v20 = vpop.xlane.xlu1 %736  ;;  %v726_v0 = vmul.f32 0.03125, %v717_v19 }
 0x19e   :  { %v785_v22 = vmax.f32 %v777_v16, 0.0  ;;  %v759_v23 = vmul.f32 0.03125, %v737_v20 }
 0x1a0   :  { %v793_v6 = vadd.f32 1e-05, %v785_v22  ;;  %v775_v24 = vsub.f32 %v759_v23, %v767_v18  ;;  %v711_v25 = vpop.xlane.xlu0 %710  ;;  %v774_v22 = vmul.f32 %v726_v0, %v726_v0 }
 0x1a1   :  { %v749_v28 = vpop.xlane.xlu1 %748  ;;  %v724_v47 = vmul.f32 0.03125, %v711_v25 }
 0x1a2   :  { %1361 = vrsqrt.f32 %v793_v6  ;;  %v783_v31 = vmax.f32 %v775_v24, 0.0  ;;  %v763_v33 = vmul.f32 0.03125, %v749_v28 }
 0x1a3   :  { %v772_v9 = vmul.f32 %v724_v47, %v724_v47 }
 0x1a4   :  { %v791_v34 = vadd.f32 1e-05, %v783_v31  ;;  %v779_v36 = vsub.f32 %v763_v33, %v771_v30  ;;  %v746_v37 = vpop.xlane.xlu0 %745 }
 0x1a5   :  { %v699_v39 = vpop.xlane.xlu1 %698  ;;  %v762_v40 = vmul.f32 0.03125, %v746_v37 }
 0x1a6   :  { %1363 = vrsqrt.f32 %v791_v34  ;;  %v787_v42 = vmax.f32 %v779_v36, 0.0  ;;  %v720_v43 = vmul.f32 0.03125, %v699_v39 }
 0x1a7   :  { %v778_v44 = vsub.f32 %v762_v40, %v770_v38 }
 0x1a8   :  { %v795_v45 = vadd.f32 1e-05, %v787_v42  ;;  %v740_v46 = vpop.xlane.xlu0 %739  ;;  %v768_v48 = vmul.f32 %v720_v43, %v720_v43 }
 0x1a9   :  { %v786_v49 = vmax.f32 %v778_v44, 0.0  ;;  %v755_v50 = vpop.xlane.xlu1 %754  ;;  %v760_v55 = vmul.f32 0.03125, %v740_v46 }
 0x1aa   :  { %1365 = vrsqrt.f32 %v795_v45  ;;  %v765_v58 = vmul.f32 0.03125, %v755_v50 }
 0x1ab   :  { %v794_v59 = vadd.f32 1e-05, %v786_v49  ;;  %v776_v63 = vsub.f32 %v760_v55, %v768_v48 }
 0x1ac   :  { %v781_v1 = vsub.f32 %v765_v58, %v773_v57  ;;  %v752_v3 = vpop.xlane.xlu0 %751 }
 0x1ad   :  { %1367 = vrsqrt.f32 %v794_v59  ;;  %v784_v10 = vmax.f32 %v776_v63, 0.0  ;;  %v764_v11 = vmul.f32 0.03125, %v752_v3 }
 0x1ae   :  { %v789_v4 = vmax.f32 %v781_v1, 0.0 }
 0x1af   :  { %v1362_v5 = vpop.eup %1361  ;;  %v792_v7 = vadd.f32 1e-05, %v784_v10  ;;  %v780_v14 = vsub.f32 %v764_v11, %v772_v9 }
 0x1b0   :  { %v797_v16 = vadd.f32 1e-05, %v789_v4  ;;  %v758_v20 = vpop.xlane.xlu0 %757  ;;  %v809_v18 = vmul.f32 %v1362_v5, %v1568_v52 }
 0x1b1   :  { %1369 = vrsqrt.f32 %v792_v7  ;;  %v788_v23 = vmax.f32 %v780_v14, 0.0  ;;  %v766_v6 = vmul.f32 0.03125, %v758_v20 }
 0x1b2   :  { %1371 = vrsqrt.f32 %v797_v16  ;;  %v817_v19 = vmul.f32 %v809_v18, %v1728_v2 }
 0x1b3   :  { %v1364_v24 = vpop.eup %1363  ;;  %v796_v25 = vadd.f32 1e-05, %v788_v23  ;;  %v782_v28 = vsub.f32 %v766_v6, %v774_v22 }
 0x1b4   :  { %835 = vrot.lane.b32.xlu1 %v817_v19, %s1379_s3  ;;  %v807_v30 = vmul.f32 %v1364_v24, %v1562_v51 }
 0x1b5   :  { %1373 = vrsqrt.f32 %v796_v25  ;;  %v790_v31 = vmax.f32 %v782_v28, 0.0 }
 0x1b6   :  { %v815_v33 = vmul.f32 %v807_v30, %v1732_v13 }
 0x1b7   :  { %v1366_v34 = vpop.eup %1365  ;;  %v798_v36 = vadd.f32 1e-05, %v790_v31 }
 0x1b8   :  { %831 = vrot.lane.b32.xlu1 %v815_v33, %s1379_s3  ;;  %v811_v37 = vmul.f32 %v1366_v34, %v1588_v56 }
 0x1b9   :  { %1375 = vrsqrt.f32 %v798_v36 }
 0x1ba   :  { %v1368_v2 = vpop.eup %1367  ;;  %v819_v38 = vmul.f32 %v811_v37, %v1734_v15 }
 0x1bb   :  { %v810_v39 = vmul.f32 %v1368_v2, %v1580_v54 }
 0x1bc   :  { %839 = vrot.lane.b32.xlu0 %v819_v38, %s1379_s3 }
 0x1bd   :  { %v818_v40 = vmul.f32 %v810_v39, %v1738_v27 }
 0x1be   :  { %v1370_v42 = vpop.eup %1369 }
 0x1bf   :  { %v1372_v44 = vpop.eup %1371  ;;  %837 = vrot.lane.b32.xlu1 %v818_v40, %s1379_s3  ;;  %v808_v13 = vmul.f32 %v1370_v42, %v1573_v53 }
 0x1c0   :  { %v813_v46 = vmul.f32 %v1372_v44, %v1609_v61 }
 0x1c1   :  { %v816_v45 = vmul.f32 %v808_v13, %v720_v43 }
 0x1c2   :  { %v1374_v48 = vpop.eup %1373  ;;  %v821_v49 = vmul.f32 %v813_v46, %v1744_v41  ;;  %v1380_v41 = vmov 2  }
 0x1c3   :  { %833 = vrot.lane.b32.xlu0 %v816_v45, %s1379_s3  ;;  %v812_v15 = vmul.f32 %v1374_v48, %v1604_v60 }
 0x1c5   :  { %v820_v50 = vmul.f32 %v812_v15, %v724_v47 }
 0x1c6   :  { %v1376_v55 = vpop.eup %1375 }
 0x1c7   :  { %843 = vrot.lane.b32.xlu0 %v821_v49, %s1379_s3  ;;  %841 = vrot.lane.b32.xlu1 %v820_v50, %s1379_s3  ;;  %v814_v27 = vmul.f32 %v1376_v55, %v1618_v62 }
 0x1c9   :  { %v822_v57 = vmul.f32 %v814_v27, %v726_v0 }
 0x1cb   :  { %865 = vperm.xlu0 %1293, %v807_v30   ;;  %845 = vrot.lane.b32.xlu1 %v822_v57, %s1379_s3 }
 0x1cf   :  { %880 = vperm.xlu0 %1293, %v810_v39   ;;  %870 = vperm.xlu1 %1294, %v808_v13  }
 0x1d3   :  { %890 = vperm.xlu0 %1293, %v812_v15   ;;  %875 = vperm.xlu1 %1294, %v809_v18  }
 0x1d7   :  { %900 = vperm.xlu0 %1293, %v814_v27   ;;  %885 = vperm.xlu1 %1294, %v811_v37  }
 0x1db   :  { %895 = vperm.xlu1 %1294, %v813_v46   ;;  %1296 = vset.pattern.permute.xlu0 %v1380_v41 }
 0x1df   :  { %1295 = vset.pattern.permute.xlu1 %v1380_v41 }
 0x226   :  { %v836_v43 = vpop.permute.xlu1 %835 }
 0x227   :  { %v857_v47 = vsub.f32 %v1568_v52, %v836_v43 }
 0x229   :  { %923 = vperm.xlu1 %1295, %v857_v47  }
 0x22a   :  { %v832_v58 = vpop.permute.xlu1 %831 }
 0x22b   :  { %v855_v59 = vsub.f32 %v1562_v51, %v832_v58 }
 0x22d   :  { %913 = vperm.xlu1 %1295, %v855_v59  }
 0x22e   :  { %v840_v63 = vpop.permute.xlu0 %839 }
 0x22f   :  { %v859_v0 = vsub.f32 %v1588_v56, %v840_v63 }
 0x231   :  { %933 = vperm.xlu0 %1296, %v859_v0   ;;  %v838_v1 = vpop.permute.xlu1 %837 }
 0x232   :  { %v858_v3 = vsub.f32 %v1580_v54, %v838_v1 }
 0x234   :  { %928 = vperm.xlu1 %1295, %v858_v3  }
 0x235   :  { %v834_v9 = vpop.permute.xlu0 %833 }
 0x236   :  { %v856_v10 = vsub.f32 %v1573_v53, %v834_v9 }
 0x238   :  { %918 = vperm.xlu0 %1296, %v856_v10  }
 0x239   :  { %v842_v11 = vpop.permute.xlu1 %841  ;;  %v844_v4 = vpop.permute.xlu0 %843 }
 0x23a   :  { %v860_v52 = vsub.f32 %v1604_v60, %v842_v11  ;;  %v861_v5 = vsub.f32 %v1609_v61, %v844_v4 }
 0x23c   :  { %938 = vperm.xlu1 %1295, %v860_v52   ;;  %943 = vperm.xlu0 %1296, %v861_v5  }
 0x23d   :  { %v846_v51 = vpop.permute.xlu1 %845 }
 0x23e   :  { %v862_v56 = vsub.f32 %v1618_v62, %v846_v51 }
 0x240   :  { %948 = vperm.xlu1 %1295, %v862_v56  }
 0x246   :  { %v866_v54 = vpop.permute.xlu0 %865 }
 0x24a   :  { %v871_v7 = vpop.permute.xlu1 %870  ;;  %v881_v20 = vpop.permute.xlu0 %880 }
 0x24b   :  { %v906_v24 = vmul.f32 %v881_v20, %v1659_v26  ;;  %v904_v45 = vmul.f32 %v871_v7, %v1673_v32 }
 0x24e   :  { %v876_v14 = vpop.permute.xlu1 %875  ;;  %v891_v23 = vpop.permute.xlu0 %890 }
 0x24f   :  { %v905_v53 = vmul.f32 %v876_v14, %v1631_v12 }
 0x252   :  { %v886_v16 = vpop.permute.xlu1 %885  ;;  %v901_v62 = vpop.permute.xlu0 %900 }
 0x253   :  { %v910_v38 = vmul.f32 %v901_v62, %v1666_v29  ;;  %v907_v46 = vmul.f32 %v886_v16, %v1650_v8 }
 0x256   :  { %v896_v18 = vpop.permute.xlu1 %895 }
 0x257   :  { %v909_v34 = vmul.f32 %v896_v18, %v1634_v17  ;;  %v903_v17 = vmul.f32 %v866_v54, %v1641_v21  ;;  %v908_v21 = vmul.f32 %v891_v23, %v1682_v35 }
 0x2a4   :  { %v924_v22 = vpop.permute.xlu1 %923 }
 0x2a5   :  { %v953_v6 = vadd.f32 %v924_v22, %v905_v53 }
 0x2a7   :  { %vm961_vm2 = vcmp.ge.f32.partialorder %v953_v6, 0.0  ;;  %v969_v60 = vmul.f32 0.2, %v953_v6 }
 0x2a8   :  { %v914_v19 = vpop.permute.xlu1 %913 }
 0x2a9   :  { %v1778_v61 = vsel %vm961_vm2, %v953_v6, %v969_v60  ;;  %v951_v29 = vadd.f32 %v914_v19, %v903_v17 }
 0x2aa   :  { %995 = vrot.lane.b32.xlu0 %v1778_v61, %s1381_s25 }
 0x2ab   :  { %v967_v48 = vmul.f32 0.2, %v951_v29  ;;  %vm959_vm6 = vcmp.ge.f32.partialorder %v951_v29, 0.0 }
 0x2ac   :  { %v934_v25 = vpop.permute.xlu0 %933 }
 0x2ad   :  { %v955_v15 = vadd.f32 %v934_v25, %v907_v46  ;;  %v975_v57 = vsel %vm959_vm6, %v951_v29, %v967_v48 }
 0x2af   :  { %v929_v28 = vpop.permute.xlu1 %928  ;;  %v971_v50 = vmul.f32 0.2, %v955_v15  ;;  %vm963_vm7 = vcmp.ge.f32.partialorder %v955_v15, 0.0 }
 0x2b0   :  { %v954_v30 = vadd.f32 %v929_v28, %v906_v24 }
 0x2b1   :  { %v979_v41 = vsel %vm963_vm7, %v955_v15, %v971_v50 }
 0x2b2   :  { %vm962_vm3 = vcmp.ge.f32.partialorder %v954_v30, 0.0  ;;  %v970_v12 = vmul.f32 0.2, %v954_v30 }
 0x2b3   :  { %v919_v31 = vpop.permute.xlu0 %918 }
 0x2b4   :  { %v1783_v33 = vsel %vm962_vm3, %v954_v30, %v970_v12  ;;  %v952_v49 = vadd.f32 %v919_v31, %v904_v45 }
 0x2b5   :  { %997 = vrot.lane.b32.xlu1 %v1783_v33, %s1381_s25 }
 0x2b6   :  { %v968_v55 = vmul.f32 0.2, %v952_v49  ;;  %vm960_vm8 = vcmp.ge.f32.partialorder %v952_v49, 0.0 }
 0x2b7   :  { %v939_v36 = vpop.permute.xlu1 %938  ;;  %v944_v37 = vpop.permute.xlu0 %943 }
 0x2b8   :  { %v957_v2 = vadd.f32 %v944_v37, %v909_v34  ;;  %v956_v27 = vadd.f32 %v939_v36, %v908_v21  ;;  %v976_v32 = vsel %vm960_vm8, %v952_v49, %v968_v55 }
 0x2ba   :  { %vm965_vm4 = vcmp.ge.f32.partialorder %v957_v2, 0.0  ;;  %v973_v26 = vmul.f32 0.2, %v957_v2  ;;  %v972_v8 = vmul.f32 0.2, %v956_v27  ;;  %vm964_vm9 = vcmp.ge.f32.partialorder %v956_v27, 0.0 }
 0x2bb   :  { %v949_v39 = vpop.permute.xlu1 %948 }
 0x2bc   :  { %v958_v40 = vadd.f32 %v949_v39, %v910_v38  ;;  %v1789_v42 = vsel %vm965_vm4, %v957_v2, %v973_v26  ;;  %v980_v43 = vsel %vm964_vm9, %v956_v27, %v972_v8 }
 0x2bd   :  { %1003 = vrot.lane.b32.xlu0 %v1789_v42, %s1381_s25 }
 0x2be   :  { %vm966_vm5 = vcmp.ge.f32.partialorder %v958_v40, 0.0  ;;  %v974_v44 = vmul.f32 0.2, %v958_v40 }
 0x2c0   :  { %v1793_v13 = vsel %vm966_vm5, %v958_v40, %v974_v44 }
 0x2c1   :  { %1005 = vrot.lane.b32.xlu1 %v1793_v13, %s1381_s25  ;;  %1027 = vrot.lane.b32.xlu0 %v1778_v61, %s1382_s26 }
 0x2c5   :  { %1029 = vrot.lane.b32.xlu1 %v1783_v33, %s1382_s26  ;;  %1035 = vrot.lane.b32.xlu0 %v1789_v42, %s1382_s26 }
 0x2c9   :  { %1037 = vrot.lane.b32.xlu1 %v1793_v13, %s1382_s26  ;;  %1059 = vrot.lane.b32.xlu0 %v1778_v61, %s1383_s27 }
 0x2cd   :  { %1061 = vrot.lane.b32.xlu1 %v1783_v33, %s1383_s27  ;;  %991 = vrot.lane.b32.xlu0 %v975_v57, %s1381_s25 }
 0x2d1   :  { %993 = vrot.lane.b32.xlu1 %v976_v32, %s1381_s25  ;;  %999 = vrot.lane.b32.xlu0 %v979_v41, %s1381_s25 }
 0x2d5   :  { %1001 = vrot.lane.b32.xlu1 %v980_v43, %s1381_s25  ;;  %1023 = vrot.lane.b32.xlu0 %v975_v57, %s1382_s26 }
 0x2d9   :  { %1025 = vrot.lane.b32.xlu1 %v976_v32, %s1382_s26  ;;  %1031 = vrot.lane.b32.xlu0 %v979_v41, %s1382_s26 }
 0x2dd   :  { %1033 = vrot.lane.b32.xlu1 %v980_v43, %s1382_s26  ;;  %1055 = vrot.lane.b32.xlu0 %v975_v57, %s1383_s27 }
 0x2e1   :  { %1057 = vrot.lane.b32.xlu1 %v976_v32, %s1383_s27  ;;  %1063 = vrot.lane.b32.xlu0 %v979_v41, %s1383_s27 }
 0x2e5   :  { %1065 = vrot.lane.b32.xlu1 %v980_v43, %s1383_s27  ;;  %1067 = vrot.lane.b32.xlu0 %v1789_v42, %s1383_s27 }
 0x2e9   :  { %1069 = vrot.lane.b32.xlu1 %v1793_v13, %s1383_s27 }
 0x31c   :  { %v996_v35 = vpop.permute.xlu0 %995 }
 0x31d   :  { %v1017_v3 = vadd.f32 %v996_v35, %v1778_v61 }
 0x327   :  { %v998_v47 = vpop.permute.xlu1 %997 }
 0x328   :  { %v1018_v4 = vadd.f32 %v998_v47, %v1783_v33 }
 0x32f   :  { %v1004_v58 = vpop.permute.xlu0 %1003 }
 0x330   :  { %v1021_v34 = vadd.f32 %v1004_v58, %v1789_v42 }
 0x333   :  { %v1006_v59 = vpop.permute.xlu1 %1005  ;;  %v1028_v63 = vpop.permute.xlu0 %1027 }
 0x334   :  { %v1049_v9 = vadd.f32 %v1028_v63, %v1017_v3  ;;  %v1022_v29 = vadd.f32 %v1006_v59, %v1793_v13 }
 0x337   :  { %v1030_v0 = vpop.permute.xlu1 %1029  ;;  %v1036_v1 = vpop.permute.xlu0 %1035 }
 0x338   :  { %v1050_v5 = vadd.f32 %v1030_v0, %v1018_v4  ;;  %v1053_v38 = vadd.f32 %v1036_v1, %v1021_v34 }
 0x33b   :  { %v1038_v10 = vpop.permute.xlu1 %1037  ;;  %v1060_v11 = vpop.permute.xlu0 %1059 }
 0x33c   :  { %v1081_v52 = vadd.f32 %v1060_v11, %v1049_v9  ;;  %v1054_v46 = vadd.f32 %v1038_v10, %v1022_v29 }
 0x33e   :  { %v1089_v51 = vmul.f32 0.25, %v1081_v52 }
 0x33f   :  { %v1062_v56 = vpop.permute.xlu1 %1061  ;;  %v992_v7 = vpop.permute.xlu0 %991 }
 0x340   :  { %1098 = vst.msk [vmem:[%s1861_s4 + $0x10] sm:$0xff] %vm1095_vm10, %v1089_v51  ;;  %v1082_v14 = vadd.f32 %v1062_v56, %v1050_v5  ;;  %v1015_v6 = vadd.f32 %v992_v7, %v975_v57 }
 0x342   :  { %v1090_v54 = vmul.f32 0.25, %v1082_v14 }
 0x343   :  { %v994_v16 = vpop.permute.xlu1 %993  ;;  %v1000_v20 = vpop.permute.xlu0 %999 }
 0x344   :  { %1099 = vst.msk [vmem:[%s1861_s4 + $0x18] sm:$0xff] %vm1095_vm10, %v1090_v54  ;;  %v1016_v19 = vadd.f32 %v994_v16, %v976_v32  ;;  %v1019_v24 = vadd.f32 %v1000_v20, %v979_v41 }
 0x347   :  { %v1002_v18 = vpop.permute.xlu1 %1001  ;;  %v1024_v53 = vpop.permute.xlu0 %1023 }
 0x348   :  { %v1047_v60 = vadd.f32 %v1024_v53, %v1015_v6  ;;  %v1020_v36 = vadd.f32 %v1002_v18, %v980_v43 }
 0x34b   :  { %v1026_v22 = vpop.permute.xlu1 %1025  ;;  %v1032_v23 = vpop.permute.xlu0 %1031 }
 0x34c   :  { %v1048_v28 = vadd.f32 %v1026_v22, %v1016_v19  ;;  %v1051_v30 = vadd.f32 %v1032_v23, %v1019_v24 }
 0x34f   :  { %v1034_v61 = vpop.permute.xlu1 %1033  ;;  %v1056_v62 = vpop.permute.xlu0 %1055 }
 0x350   :  { %v1079_v25 = vadd.f32 %v1056_v62, %v1047_v60  ;;  %v1052_v26 = vadd.f32 %v1034_v61, %v1020_v36 }
 0x352   :  { %v1087_v12 = vmul.f32 0.25, %v1079_v25 }
 0x353   :  { %v1058_v31 = vpop.permute.xlu1 %1057  ;;  %v1064_v33 = vpop.permute.xlu0 %1063 }
 0x354   :  { %1096 = vst.msk [vmem:[%s1861_s4] sm:$0xff] %vm1095_vm10, %v1087_v12  ;;  %v1080_v37 = vadd.f32 %v1058_v31, %v1048_v28  ;;  %v1083_v2 = vadd.f32 %v1064_v33, %v1051_v30 }
 0x356   :  { %v1088_v39 = vmul.f32 0.25, %v1080_v37  ;;  %v1091_v40 = vmul.f32 0.25, %v1083_v2 }
 0x357   :  { %v1066_v44 = vpop.permute.xlu1 %1065  ;;  %v1068_v17 = vpop.permute.xlu0 %1067 }
 0x358   :  { %1097 = vst.msk [vmem:[%s1861_s4 + $0x8] sm:$0xff] %vm1095_vm10, %v1088_v39  ;;  %1100 = vst.msk [vmem:[%s1861_s4 + $0x20] sm:$0xff] %vm1095_vm10, %v1091_v40  ;;  %v1084_v42 = vadd.f32 %v1066_v44, %v1052_v26  ;;  %v1085_v45 = vadd.f32 %v1068_v17, %v1053_v38 }
 0x35a   :  { %v1092_v48 = vmul.f32 0.25, %v1084_v42  ;;  %v1093_v15 = vmul.f32 0.25, %v1085_v45 }
 0x35b   :  { %v1070_v49 = vpop.permute.xlu1 %1069 }
 0x35c   :  { %1101 = vst.msk [vmem:[%s1861_s4 + $0x28] sm:$0xff] %vm1095_vm10, %v1092_v48  ;;  %1102 = vst.msk [vmem:[%s1861_s4 + $0x30] sm:$0xff] %vm1095_vm10, %v1093_v15  ;;  %v1086_v13 = vadd.f32 %v1070_v49, %v1054_v46 }
 0x35e   :  { %v1094_v21 = vmul.f32 0.25, %v1086_v13 }
 0x360   :  { %1103 = vst.msk [vmem:[%s1861_s4 + $0x38] sm:$0xff] %vm1095_vm10, %v1094_v21 }

</bundles_post_ra>
